<compile_context>
chip_gen: v5e
topology: v5e:2x2
jax: 0.10.0
libtpu: 0.0.40
codegen_flags: <defaults>
</compile_context>

<pallas_src>
import math
import functools

import jax
import jax.numpy as jnp
from jax.experimental import pallas as pl
from jax.experimental.pallas import tpu as pltpu


# ---------------------------------------------------------------------------
# In-kernel math helpers (f32)
# ---------------------------------------------------------------------------
def _erf(x):
    # Abramowitz & Stegun 7.1.26 polynomial approximation (|err| < 1.5e-7).
    a1, a2, a3, a4, a5 = 0.254829592, -0.284496736, 1.421413741, -1.453152027, 1.061405429
    p = 0.3275911
    sign = jnp.where(x >= 0.0, 1.0, -1.0)
    ax = jnp.abs(x)
    t = 1.0 / (1.0 + p * ax)
    poly = ((((a5 * t + a4) * t + a3) * t + a2) * t + a1) * t
    return sign * (1.0 - poly * jnp.exp(-ax * ax))


def _gelu(x):
    # Exact (erf-based) GELU, matching PyTorch nn.GELU() default.
    return 0.5 * x * (1.0 + _erf(x * (1.0 / math.sqrt(2.0))))


def _layernorm(x, gamma, beta, eps=1e-5):
    mu = jnp.mean(x, axis=-1, keepdims=True)
    var = jnp.mean((x - mu) * (x - mu), axis=-1, keepdims=True)
    return (x - mu) * jax.lax.rsqrt(var + eps) * gamma + beta


def _bf16(x):
    return x.astype(jnp.bfloat16)


# ---------------------------------------------------------------------------
# Kernel 1: transformer encoder stack + sequence-mean pooling
#           grid = (B // block_b, L): batch blocks "parallel", layers "arbitrary"
# ---------------------------------------------------------------------------
def _encoder_kernel(x_ref, wqkv_ref, bqkv_ref, wo_ref, bo_ref, g1_ref, b1_ref,
                    fw1_ref, fb1_ref, fw2_ref, fb2_ref, g2_ref, b2_ref,
                    o_ref, xs_ref, attn_ref, *, nhead):
    bb, S, D = x_ref.shape
    R = bb * S
    hd = D // nhead
    scale = 1.0 / math.sqrt(hd)
    layer = pl.program_id(1)

    # Layer-0 prologue: load the (pos+time-)embedded activations into the
    # resident scratch, flattened to (block_b*S, D) so all matmuls see the
    # full row count.
    @pl.when(layer == 0)
    def _init():
        xs_ref[...] = x_ref[...].reshape(R, D)

    x = xs_ref[...]                                   # (R, D) f32 residual stream
    xb = _bf16(x)

    # --- fused QKV projection: one bf16 matmul, lane-dense (R, 3D) output
    qkv = jnp.dot(xb, wqkv_ref[...],
                  preferred_element_type=jnp.float32) + bqkv_ref[...]

    # --- per-head attention, batched over the batch block (single batch dim
    #     dot_general); head outputs land lane-dense in attn_ref so the
    #     out-projection is a single K = D matmul.
    for h in range(nhead):
        qh = _bf16(qkv[:, h * hd:(h + 1) * hd]).reshape(bb, S, hd)
        kh = _bf16(qkv[:, D + h * hd:D + (h + 1) * hd]).reshape(bb, S, hd)
        vh = _bf16(qkv[:, 2 * D + h * hd:2 * D + (h + 1) * hd]).reshape(bb, S, hd)

        s = jnp.einsum('bqd,bkd->bqk', qh, kh,
                       preferred_element_type=jnp.float32) * scale       # (bb,S,S)
        s = s - jnp.max(s, axis=-1, keepdims=True)
        e = jnp.exp(s)
        p = e / jnp.sum(e, axis=-1, keepdims=True)                        # exact softmax
        ov = jnp.einsum('bqk,bkd->bqd', _bf16(p), vh,
                        preferred_element_type=jnp.float32)               # (bb,S,hd)
        attn_ref[:, h * hd:(h + 1) * hd] = ov.reshape(R, hd)

    attn = jnp.dot(_bf16(attn_ref[...]), wo_ref[...],
                   preferred_element_type=jnp.float32) + bo_ref[...]

    # --- post-norm encoder layer (PyTorch norm_first=False, activation='gelu')
    x1 = _layernorm(x + attn, g1_ref[...], b1_ref[...])
    ff = _gelu(jnp.dot(_bf16(x1), fw1_ref[...],
                       preferred_element_type=jnp.float32) + fb1_ref[...])
    ff = jnp.dot(_bf16(ff), fw2_ref[...],
                 preferred_element_type=jnp.float32) + fb2_ref[...]
    x2 = _layernorm(x1 + ff, g2_ref[...], b2_ref[...])
    xs_ref[...] = x2

    # Last-layer epilogue: pool the sequence mean in VMEM, so no (B,S,D)
    # tensor is ever written back to HBM.
    @pl.when(layer == pl.num_programs(1) - 1)
    def _finalize():
        o_ref[...] = jnp.mean(x2.reshape(bb, S, D), axis=1, keepdims=True)


def encoder_forward(x, params, *, nhead, block_b=1):
    B, S, D = x.shape
    e = params["enc"]
    L = e["wqkv"].shape[0]
    assert B % block_b == 0 and D % nhead == 0
    nb = B // block_b

    def layer_spec(arr):
        nrest = arr.ndim - 1
        return pl.BlockSpec((None,) + arr.shape[1:],
                            lambda b, l, nrest=nrest: (l,) + (0,) * nrest)

    in_specs = [
        pl.BlockSpec((block_b, S, D), lambda b, l: (b, 0, 0)),   # activations
        layer_spec(e["wqkv"]), layer_spec(e["bqkv"]),
        layer_spec(e["wo"]), layer_spec(e["bo"]),
        layer_spec(e["ln1_g"]), layer_spec(e["ln1_b"]),
        layer_spec(e["ff_w1"]), layer_spec(e["ff_b1"]),
        layer_spec(e["ff_w2"]), layer_spec(e["ff_b2"]),
        layer_spec(e["ln2_g"]), layer_spec(e["ln2_b"]),
    ]
    out = pl.pallas_call(
        functools.partial(_encoder_kernel, nhead=nhead),
        out_shape=jax.ShapeDtypeStruct((B, 1, D), jnp.float32),
        grid_spec=pltpu.PrefetchScalarGridSpec(
            num_scalar_prefetch=0,
            grid=(nb, L),
            in_specs=in_specs,
            out_specs=pl.BlockSpec((block_b, 1, D), lambda b, l: (b, 0, 0)),
            scratch_shapes=[pltpu.VMEM((block_b * S, D), jnp.float32),   # residual stream
                            pltpu.VMEM((block_b * S, D), jnp.float32)], # head outputs
        ),
        compiler_params=pltpu.CompilerParams(
            dimension_semantics=("parallel", "arbitrary"),
            vmem_limit_bytes=32 * 1024 * 1024),
    )(x, e["wqkv"], e["bqkv"], e["wo"], e["bo"], e["ln1_g"], e["ln1_b"],
      e["ff_w1"], e["ff_b1"], e["ff_w2"], e["ff_b2"], e["ln2_g"], e["ln2_b"])
    return out.reshape(B, D)


# ---------------------------------------------------------------------------
# Kernel 2: MLP_end (8 residual blocks, unrolled) + output head, single step
# ---------------------------------------------------------------------------
def _head_kernel(xm_ref, miw_ref, mib_ref,
                 rw1_ref, rb1_ref, rg1_ref, rbe1_ref,
                 rw2_ref, rb2_ref, rg2_ref, rbe2_ref,
                 mow_ref, mob_ref, ow1_ref, ob1_ref, ow2_ref, ob2_ref, o_ref):
    n_blocks = rw1_ref.shape[0]

    h = jnp.dot(_bf16(xm_ref[...]), miw_ref[...],
                preferred_element_type=jnp.float32) + mib_ref[...]        # (B, Dm)

    # 8 ResidualBlock_no_time, unrolled in-kernel (weights are tiny and co-resident)
    for i in range(n_blocks):
        x0 = h
        h = _layernorm(_gelu(jnp.dot(_bf16(x0), rw1_ref[i],
                                     preferred_element_type=jnp.float32) + rb1_ref[i]),
                       rg1_ref[i], rbe1_ref[i])
        h = _layernorm(_gelu(jnp.dot(_bf16(h), rw2_ref[i],
                                     preferred_element_type=jnp.float32) + rb2_ref[i]),
                       rg2_ref[i], rbe2_ref[i])
        h = h + x0

    y = jnp.dot(_bf16(h), mow_ref[...],
                preferred_element_type=jnp.float32) + mob_ref[...]        # MLP_end out
    y = _gelu(jnp.dot(_bf16(y), ow1_ref[...],
                      preferred_element_type=jnp.float32) + ob1_ref[...])
    y = jnp.dot(_bf16(y), ow2_ref[...],
                preferred_element_type=jnp.float32) + ob2_ref[...]
    o_ref[...] = jnp.exp(5.0 * jnp.tanh(y * 0.2))        # ExpAct: exp(5*tanh(x/5))


def head_forward(xm, params):
    B, _ = xm.shape
    r = params["res"]
    Od = params["out_w2"].shape[1]
    # Single invocation, whole (tiny) operands in VMEM — no grid overhead.
    return pl.pallas_call(
        _head_kernel,
        out_shape=jax.ShapeDtypeStruct((B, Od), jnp.float32),
    )(xm, params["mlp_in_w"], params["mlp_in_b"],
      r["w1"], r["b1"], r["g1"], r["be1"],
      r["w2"], r["b2"], r["g2"], r["be2"],
      params["mlp_out_w"], params["mlp_out_b"],
      params["out_w1"], params["out_b1"], params["out_w2"], params["out_b2"])


# ---------------------------------------------------------------------------
# Parameter init (synthetic, deterministic).  Matmul weights stored in bf16,
# biases / LayerNorm params / embeddings in f32.
# ---------------------------------------------------------------------------
def init_params(key, *, d_model, nhead, num_layers, dim_ff, time_emb,
                dim_mlp_end, output_dim, num_classes, max_seq_len,
                num_res_blocks=8):
    keys = iter(jax.random.split(key, 64))

    def w32(shape, scale=0.1):
        return (scale * jax.random.normal(next(keys), shape)).astype(jnp.float32)

    def w16(shape, scale=0.1):
        return w32(shape, scale).astype(jnp.bfloat16)

    def zeros(shape):
        return jnp.zeros(shape, jnp.float32)

    def ones(shape):
        return jnp.ones(shape, jnp.float32)

    L, NB, D, F, Dm = num_layers, num_res_blocks, d_model, dim_ff, dim_mlp_end
    enc = {
        "wqkv": w16((L, D, 3 * D)), "bqkv": zeros((L, 1, 3 * D)),
        "wo": w16((L, D, D)), "bo": zeros((L, 1, D)),
        "ln1_g": ones((L, 1, D)), "ln1_b": zeros((L, 1, D)),
        "ff_w1": w16((L, D, F)), "ff_b1": zeros((L, 1, F)),
        "ff_w2": w16((L, F, D)), "ff_b2": zeros((L, 1, D)),
        "ln2_g": ones((L, 1, D)), "ln2_b": zeros((L, 1, D)),
    }
    res = {
        "w1": w16((NB, Dm, Dm)), "b1": zeros((NB, 1, Dm)),
        "g1": ones((NB, 1, Dm)), "be1": zeros((NB, 1, Dm)),
        "w2": w16((NB, Dm, Dm)), "b2": zeros((NB, 1, Dm)),
        "g2": ones((NB, 1, Dm)), "be2": zeros((NB, 1, Dm)),
    }
    return {
        "token_embedding": w32((num_classes, D), 1.0),
        "pos_encoding": zeros((1, max_seq_len, D)),       # nn.Parameter(torch.zeros(...))
        "time_w1": w32((1, time_emb)), "time_b1": zeros((1, time_emb)),
        "time_w2": w32((time_emb, D)), "time_b2": zeros((1, D)),
        "enc": enc,
        "mlp_in_w": w16((D, Dm)), "mlp_in_b": zeros((1, Dm)),
        "res": res,
        "mlp_out_w": w16((Dm, D)), "mlp_out_b": zeros((1, D)),
        "out_w1": w16((D, D)), "out_b1": zeros((1, D)),
        "out_w2": w16((D, output_dim)), "out_b2": zeros((1, output_dim)),
    }


# ---------------------------------------------------------------------------
# Forward pass
# ---------------------------------------------------------------------------
def forward(params, inputs, t, *, nhead, block_b=1):
    b, s = inputs.shape
    # TODO(synk): the nn.Embedding gather is a data-dependent lookup left in
    # plain JAX (XLA gather); everything downstream of embedding+time-add runs
    # inside the two Pallas kernels.  The tiny time-MLP (1 -> Te -> D on a
    # (B, 1) input) is folded into this glue so no prologue-only weights stay
    # resident across the encoder grid.  No attention mask is applied (the
    # reference uses TransformerEncoder without src_mask); dropout rate is 0.
    x = params["token_embedding"][inputs] + params["pos_encoding"][:, :s, :]   # (B,S,D)
    t_col = t.astype(jnp.float32)[:, None]
    temb = jax.nn.gelu(t_col @ params["time_w1"] + params["time_b1"], approximate=False)
    temb = temb @ params["time_w2"] + params["time_b2"]                        # (B, D)
    x = x + temb[:, None, :]

    xm = encoder_forward(x, params, nhead=nhead, block_b=block_b)              # (B, D)
    score = head_forward(xm, params)                                           # (B, out)
    return score


# ---------------------------------------------------------------------------
if __name__ == "__main__":
    B, S = 2, 8
    D_MODEL, NHEAD, NUM_LAYERS = 32, 4, 2
    DIM_FF = 4 * D_MODEL
    TIME_EMB = 16
    DIM_MLP_END = 32
    OUTPUT_DIM = 8
    NUM_CLASSES = 5
    MAX_SEQ_LEN = 16
    BLOCK_B = 1          # grid = (B // BLOCK_B, L): batch axis is "parallel" (v7x megacore)

    key = jax.random.PRNGKey(0)
    pkey, ikey, tkey = jax.random.split(key, 3)

    params = init_params(
        pkey, d_model=D_MODEL, nhead=NHEAD, num_layers=NUM_LAYERS,
        dim_ff=DIM_FF, time_emb=TIME_EMB, dim_mlp_end=DIM_MLP_END,
        output_dim=OUTPUT_DIM, num_classes=NUM_CLASSES, max_seq_len=MAX_SEQ_LEN)

    inputs = jax.random.randint(ikey, (B, S), 0, NUM_CLASSES, dtype=jnp.int32)
    t = jax.random.uniform(tkey, (B,), dtype=jnp.float32)

    fwd = jax.jit(functools.partial(forward, nhead=NHEAD, block_b=BLOCK_B))
    score = fwd(params, inputs, t)
    score = jax.block_until_ready(score)

    assert score.shape == (B, OUTPUT_DIM), score.shape
    assert bool(jnp.all(jnp.isfinite(score)))
    print("KERNEL_OK")
</pallas_src>

<mosaic_0001>
module attributes {stable_mosaic.version = 11 : i64} {
  func.func @_encoder_kernel(%arg0: i32, %arg1: i32, %arg2: memref<1x8x32xf32, #tpu.memory_space<vmem>>, %arg3: memref<1x32x96xbf16, #tpu.memory_space<vmem>>, %arg4: memref<1x1x96xf32, #tpu.memory_space<vmem>>, %arg5: memref<1x32x32xbf16, #tpu.memory_space<vmem>>, %arg6: memref<1x1x32xf32, #tpu.memory_space<vmem>>, %arg7: memref<1x1x32xf32, #tpu.memory_space<vmem>>, %arg8: memref<1x1x32xf32, #tpu.memory_space<vmem>>, %arg9: memref<1x32x128xbf16, #tpu.memory_space<vmem>>, %arg10: memref<1x1x128xf32, #tpu.memory_space<vmem>>, %arg11: memref<1x128x32xbf16, #tpu.memory_space<vmem>>, %arg12: memref<1x1x32xf32, #tpu.memory_space<vmem>>, %arg13: memref<1x1x32xf32, #tpu.memory_space<vmem>>, %arg14: memref<1x1x32xf32, #tpu.memory_space<vmem>>, %arg15: memref<1x1x32xf32, #tpu.memory_space<vmem>>, %arg16: memref<8x32xf32, #tpu.memory_space<vmem>>, %arg17: memref<8x32xf32, #tpu.memory_space<vmem>>) attributes {dimension_semantics = [#tpu.dimension_semantics<parallel>, #tpu.dimension_semantics<arbitrary>], iteration_bounds = array<i64: 2, 2>, scalar_prefetch = 0 : i64, scratch_operands = 2 : i64, tpu.core_type = #tpu.core_type<tc>, window_params = [{transform_indices = @transform_0, window_bounds = array<i64: 1, 8, 32>}, {transform_indices = @transform_1, window_bounds = array<i64: 1, 32, 96>}, {transform_indices = @transform_2, window_bounds = array<i64: 1, 1, 96>}, {transform_indices = @transform_3, window_bounds = array<i64: 1, 32, 32>}, {transform_indices = @transform_4, window_bounds = array<i64: 1, 1, 32>}, {transform_indices = @transform_5, window_bounds = array<i64: 1, 1, 32>}, {transform_indices = @transform_6, window_bounds = array<i64: 1, 1, 32>}, {transform_indices = @transform_7, window_bounds = array<i64: 1, 32, 128>}, {transform_indices = @transform_8, window_bounds = array<i64: 1, 1, 128>}, {transform_indices = @transform_9, window_bounds = array<i64: 1, 128, 32>}, {transform_indices = @transform_10, window_bounds = array<i64: 1, 1, 32>}, {transform_indices = @transform_11, window_bounds = array<i64: 1, 1, 32>}, {transform_indices = @transform_12, window_bounds = array<i64: 1, 1, 32>}, {transform_indices = @transform_13, window_bounds = array<i64: 1, 1, 32>}]} {
    %c0_i32 = arith.constant 0 : i32
    %0 = arith.cmpi eq, %arg1, %c0_i32 : i32
    %1 = arith.extui %0 : i1 to i32
    %c0_i32_0 = arith.constant 0 : i32
    %2 = arith.cmpi ne, %1, %c0_i32_0 : i32
    scf.if %2 {
      %c0_97 = arith.constant 0 : index
      %c0_98 = arith.constant 0 : index
      %c0_99 = arith.constant 0 : index
      %240 = vector.load %arg2[%c0_97, %c0_98, %c0_99] : memref<1x8x32xf32, #tpu.memory_space<vmem>>, vector<1x8x32xf32>
      %241 = vector.shape_cast %240 : vector<1x8x32xf32> to vector<8x32xf32>
      %c0_100 = arith.constant 0 : index
      %c0_101 = arith.constant 0 : index
      %242 = vector.load %arg16[%c0_100, %c0_101] : memref<8x32xf32, #tpu.memory_space<vmem>>, vector<8x32xf32>
      tpu.vector_store %arg16[%c0_100, %c0_101], %241 {strides = array<i32>} : memref<8x32xf32, #tpu.memory_space<vmem>>, vector<8x32xf32>,
    } else {
    }
    %c0 = arith.constant 0 : index
    %c0_1 = arith.constant 0 : index
    %3 = vector.load %arg16[%c0, %c0_1] : memref<8x32xf32, #tpu.memory_space<vmem>>, vector<8x32xf32>
    %4 = arith.truncf %3 : vector<8x32xf32> to vector<8x32xbf16>
    %c0_2 = arith.constant 0 : index
    %c0_3 = arith.constant 0 : index
    %c0_4 = arith.constant 0 : index
    %5 = vector.load %arg3[%c0_2, %c0_3, %c0_4] : memref<1x32x96xbf16, #tpu.memory_space<vmem>>, vector<1x32x96xbf16>
    %6 = vector.shape_cast %5 : vector<1x32x96xbf16> to vector<32x96xbf16>
    %cst = arith.constant dense<0.000000e+00> : vector<8x96xf32>
    %7 = tpu.matmul %4, %6, %cst {dimension_numbers = #tpu.dot_dimension_numbers<[1], [0], [0], [1], [0, 0, 1, 1], [], []>} : vector<8x32xbf16>, vector<32x96xbf16>, vector<8x96xf32> -> vector<8x96xf32>
    %c0_5 = arith.constant 0 : index
    %c0_6 = arith.constant 0 : index
    %c0_7 = arith.constant 0 : index
    %8 = vector.load %arg4[%c0_5, %c0_6, %c0_7] : memref<1x1x96xf32, #tpu.memory_space<vmem>>, vector<1x1x96xf32>
    %9 = vector.shape_cast %8 : vector<1x1x96xf32> to vector<1x96xf32>
    %10 = vector.broadcast %9 : vector<1x96xf32> to vector<8x96xf32>
    %11 = arith.addf %7, %10 : vector<8x96xf32>
    %12 = vector.extract_strided_slice %11 {offsets = [0, 0], sizes = [8, 8], strides = [1, 1]} : vector<8x96xf32> to vector<8x8xf32>
    %13 = arith.truncf %12 : vector<8x8xf32> to vector<8x8xbf16>
    %14 = vector.shape_cast %13 : vector<8x8xbf16> to vector<1x8x8xbf16>
    %15 = vector.extract_strided_slice %11 {offsets = [0, 32], sizes = [8, 8], strides = [1, 1]} : vector<8x96xf32> to vector<8x8xf32>
    %16 = arith.truncf %15 : vector<8x8xf32> to vector<8x8xbf16>
    %17 = vector.shape_cast %16 : vector<8x8xbf16> to vector<1x8x8xbf16>
    %18 = vector.extract_strided_slice %11 {offsets = [0, 64], sizes = [8, 8], strides = [1, 1]} : vector<8x96xf32> to vector<8x8xf32>
    %19 = arith.truncf %18 : vector<8x8xf32> to vector<8x8xbf16>
    %20 = vector.shape_cast %19 : vector<8x8xbf16> to vector<1x8x8xbf16>
    "tpu.trace_start"() <{level = 10 : i32, message = "bqd,bkd->bqk"}> : () -> ()
    %cst_8 = arith.constant dense<0.000000e+00> : vector<1x8x8xf32>
    %21 = tpu.matmul %14, %17, %cst_8 {dimension_numbers = #tpu.dot_dimension_numbers<[2], [2], [1], [1], [0, 0, 0, 1, 1, 1], [0], [0]>} : vector<1x8x8xbf16>, vector<1x8x8xbf16>, vector<1x8x8xf32> -> vector<1x8x8xf32>
    "tpu.trace_stop"() : () -> ()
    %cst_9 = arith.constant 0.353553385 : f32
    %22 = vector.broadcast %cst_9 : f32 to vector<1x8x8xf32>
    %23 = arith.mulf %21, %22 : vector<1x8x8xf32>
    %cst_10 = arith.constant dense<0xFF800000> : vector<1x8xf32>
    %24 = vector.multi_reduction <maximumf>, %23, %cst_10 [2] : vector<1x8x8xf32> to vector<1x8xf32>
    %25 = vector.shape_cast %24 : vector<1x8xf32> to vector<1x8x1xf32>
    %26 = vector.broadcast %25 : vector<1x8x1xf32> to vector<1x8x8xf32>
    %27 = arith.subf %23, %26 : vector<1x8x8xf32>
    %28 = math.exp %27 : vector<1x8x8xf32>
    %cst_11 = arith.constant dense<0.000000e+00> : vector<1x8xf32>
    %29 = vector.multi_reduction <add>, %28, %cst_11 [2] : vector<1x8x8xf32> to vector<1x8xf32>
    %30 = vector.shape_cast %29 : vector<1x8xf32> to vector<1x8x1xf32>
    %31 = vector.broadcast %30 : vector<1x8x1xf32> to vector<1x8x8xf32>
    %32 = arith.divf %28, %31 : vector<1x8x8xf32>
    %33 = arith.truncf %32 : vector<1x8x8xf32> to vector<1x8x8xbf16>
    "tpu.trace_start"() <{level = 10 : i32, message = "bqk,bkd->bqd"}> : () -> ()
    %cst_12 = arith.constant dense<0.000000e+00> : vector<1x8x8xf32>
    %34 = tpu.matmul %33, %20, %cst_12 {dimension_numbers = #tpu.dot_dimension_numbers<[2], [1], [1], [2], [0, 0, 0, 1, 1, 2], [0], [0]>} : vector<1x8x8xbf16>, vector<1x8x8xbf16>, vector<1x8x8xf32> -> vector<1x8x8xf32>
    "tpu.trace_stop"() : () -> ()
    %35 = vector.shape_cast %34 : vector<1x8x8xf32> to vector<8x8xf32>
    %c0_13 = arith.constant 0 : index
    %c0_14 = arith.constant 0 : index
    %36 = vector.load %arg17[%c0_13, %c0_14] : memref<8x32xf32, #tpu.memory_space<vmem>>, vector<8x8xf32>
    tpu.vector_store %arg17[%c0_13, %c0_14], %35 {strides = array<i32>} : memref<8x32xf32, #tpu.memory_space<vmem>>, vector<8x8xf32>,
    %37 = vector.extract_strided_slice %11 {offsets = [0, 8], sizes = [8, 8], strides = [1, 1]} : vector<8x96xf32> to vector<8x8xf32>
    %38 = arith.truncf %37 : vector<8x8xf32> to vector<8x8xbf16>
    %39 = vector.shape_cast %38 : vector<8x8xbf16> to vector<1x8x8xbf16>
    %40 = vector.extract_strided_slice %11 {offsets = [0, 40], sizes = [8, 8], strides = [1, 1]} : vector<8x96xf32> to vector<8x8xf32>
    %41 = arith.truncf %40 : vector<8x8xf32> to vector<8x8xbf16>
    %42 = vector.shape_cast %41 : vector<8x8xbf16> to vector<1x8x8xbf16>
    %43 = vector.extract_strided_slice %11 {offsets = [0, 72], sizes = [8, 8], strides = [1, 1]} : vector<8x96xf32> to vector<8x8xf32>
    %44 = arith.truncf %43 : vector<8x8xf32> to vector<8x8xbf16>
    %45 = vector.shape_cast %44 : vector<8x8xbf16> to vector<1x8x8xbf16>
    "tpu.trace_start"() <{level = 10 : i32, message = "bqd,bkd->bqk"}> : () -> ()
    %cst_15 = arith.constant dense<0.000000e+00> : vector<1x8x8xf32>
    %46 = tpu.matmul %39, %42, %cst_15 {dimension_numbers = #tpu.dot_dimension_numbers<[2], [2], [1], [1], [0, 0, 0, 1, 1, 1], [0], [0]>} : vector<1x8x8xbf16>, vector<1x8x8xbf16>, vector<1x8x8xf32> -> vector<1x8x8xf32>
    "tpu.trace_stop"() : () -> ()
    %cst_16 = arith.constant 0.353553385 : f32
    %47 = vector.broadcast %cst_16 : f32 to vector<1x8x8xf32>
    %48 = arith.mulf %46, %47 : vector<1x8x8xf32>
    %cst_17 = arith.constant dense<0xFF800000> : vector<1x8xf32>
    %49 = vector.multi_reduction <maximumf>, %48, %cst_17 [2] : vector<1x8x8xf32> to vector<1x8xf32>
    %50 = vector.shape_cast %49 : vector<1x8xf32> to vector<1x8x1xf32>
    %51 = vector.broadcast %50 : vector<1x8x1xf32> to vector<1x8x8xf32>
    %52 = arith.subf %48, %51 : vector<1x8x8xf32>
    %53 = math.exp %52 : vector<1x8x8xf32>
    %cst_18 = arith.constant dense<0.000000e+00> : vector<1x8xf32>
    %54 = vector.multi_reduction <add>, %53, %cst_18 [2] : vector<1x8x8xf32> to vector<1x8xf32>
    %55 = vector.shape_cast %54 : vector<1x8xf32> to vector<1x8x1xf32>
    %56 = vector.broadcast %55 : vector<1x8x1xf32> to vector<1x8x8xf32>
    %57 = arith.divf %53, %56 : vector<1x8x8xf32>
    %58 = arith.truncf %57 : vector<1x8x8xf32> to vector<1x8x8xbf16>
    "tpu.trace_start"() <{level = 10 : i32, message = "bqk,bkd->bqd"}> : () -> ()
    %cst_19 = arith.constant dense<0.000000e+00> : vector<1x8x8xf32>
    %59 = tpu.matmul %58, %45, %cst_19 {dimension_numbers = #tpu.dot_dimension_numbers<[2], [1], [1], [2], [0, 0, 0, 1, 1, 2], [0], [0]>} : vector<1x8x8xbf16>, vector<1x8x8xbf16>, vector<1x8x8xf32> -> vector<1x8x8xf32>
    "tpu.trace_stop"() : () -> ()
    %60 = vector.shape_cast %59 : vector<1x8x8xf32> to vector<8x8xf32>
    %c0_20 = arith.constant 0 : index
    %c8 = arith.constant 8 : index
    %61 = vector.load %arg17[%c0_20, %c8] : memref<8x32xf32, #tpu.memory_space<vmem>>, vector<8x8xf32>
    tpu.vector_store %arg17[%c0_20, %c8], %60 {strides = array<i32>} : memref<8x32xf32, #tpu.memory_space<vmem>>, vector<8x8xf32>,
    %62 = vector.extract_strided_slice %11 {offsets = [0, 16], sizes = [8, 8], strides = [1, 1]} : vector<8x96xf32> to vector<8x8xf32>
    %63 = arith.truncf %62 : vector<8x8xf32> to vector<8x8xbf16>
    %64 = vector.shape_cast %63 : vector<8x8xbf16> to vector<1x8x8xbf16>
    %65 = vector.extract_strided_slice %11 {offsets = [0, 48], sizes = [8, 8], strides = [1, 1]} : vector<8x96xf32> to vector<8x8xf32>
    %66 = arith.truncf %65 : vector<8x8xf32> to vector<8x8xbf16>
    %67 = vector.shape_cast %66 : vector<8x8xbf16> to vector<1x8x8xbf16>
    %68 = vector.extract_strided_slice %11 {offsets = [0, 80], sizes = [8, 8], strides = [1, 1]} : vector<8x96xf32> to vector<8x8xf32>
    %69 = arith.truncf %68 : vector<8x8xf32> to vector<8x8xbf16>
    %70 = vector.shape_cast %69 : vector<8x8xbf16> to vector<1x8x8xbf16>
    "tpu.trace_start"() <{level = 10 : i32, message = "bqd,bkd->bqk"}> : () -> ()
    %cst_21 = arith.constant dense<0.000000e+00> : vector<1x8x8xf32>
    %71 = tpu.matmul %64, %67, %cst_21 {dimension_numbers = #tpu.dot_dimension_numbers<[2], [2], [1], [1], [0, 0, 0, 1, 1, 1], [0], [0]>} : vector<1x8x8xbf16>, vector<1x8x8xbf16>, vector<1x8x8xf32> -> vector<1x8x8xf32>
    "tpu.trace_stop"() : () -> ()
    %cst_22 = arith.constant 0.353553385 : f32
    %72 = vector.broadcast %cst_22 : f32 to vector<1x8x8xf32>
    %73 = arith.mulf %71, %72 : vector<1x8x8xf32>
    %cst_23 = arith.constant dense<0xFF800000> : vector<1x8xf32>
    %74 = vector.multi_reduction <maximumf>, %73, %cst_23 [2] : vector<1x8x8xf32> to vector<1x8xf32>
    %75 = vector.shape_cast %74 : vector<1x8xf32> to vector<1x8x1xf32>
    %76 = vector.broadcast %75 : vector<1x8x1xf32> to vector<1x8x8xf32>
    %77 = arith.subf %73, %76 : vector<1x8x8xf32>
    %78 = math.exp %77 : vector<1x8x8xf32>
    %cst_24 = arith.constant dense<0.000000e+00> : vector<1x8xf32>
    %79 = vector.multi_reduction <add>, %78, %cst_24 [2] : vector<1x8x8xf32> to vector<1x8xf32>
    %80 = vector.shape_cast %79 : vector<1x8xf32> to vector<1x8x1xf32>
    %81 = vector.broadcast %80 : vector<1x8x1xf32> to vector<1x8x8xf32>
    %82 = arith.divf %78, %81 : vector<1x8x8xf32>
    %83 = arith.truncf %82 : vector<1x8x8xf32> to vector<1x8x8xbf16>
    "tpu.trace_start"() <{level = 10 : i32, message = "bqk,bkd->bqd"}> : () -> ()
    %cst_25 = arith.constant dense<0.000000e+00> : vector<1x8x8xf32>
    %84 = tpu.matmul %83, %70, %cst_25 {dimension_numbers = #tpu.dot_dimension_numbers<[2], [1], [1], [2], [0, 0, 0, 1, 1, 2], [0], [0]>} : vector<1x8x8xbf16>, vector<1x8x8xbf16>, vector<1x8x8xf32> -> vector<1x8x8xf32>
    "tpu.trace_stop"() : () -> ()
    %85 = vector.shape_cast %84 : vector<1x8x8xf32> to vector<8x8xf32>
    %c0_26 = arith.constant 0 : index
    %c16 = arith.constant 16 : index
    %86 = vector.load %arg17[%c0_26, %c16] : memref<8x32xf32, #tpu.memory_space<vmem>>, vector<8x8xf32>
    tpu.vector_store %arg17[%c0_26, %c16], %85 {strides = array<i32>} : memref<8x32xf32, #tpu.memory_space<vmem>>, vector<8x8xf32>,
    %87 = vector.extract_strided_slice %11 {offsets = [0, 24], sizes = [8, 8], strides = [1, 1]} : vector<8x96xf32> to vector<8x8xf32>
    %88 = arith.truncf %87 : vector<8x8xf32> to vector<8x8xbf16>
    %89 = vector.shape_cast %88 : vector<8x8xbf16> to vector<1x8x8xbf16>
    %90 = vector.extract_strided_slice %11 {offsets = [0, 56], sizes = [8, 8], strides = [1, 1]} : vector<8x96xf32> to vector<8x8xf32>
    %91 = arith.truncf %90 : vector<8x8xf32> to vector<8x8xbf16>
    %92 = vector.shape_cast %91 : vector<8x8xbf16> to vector<1x8x8xbf16>
    %93 = vector.extract_strided_slice %11 {offsets = [0, 88], sizes = [8, 8], strides = [1, 1]} : vector<8x96xf32> to vector<8x8xf32>
    %94 = arith.truncf %93 : vector<8x8xf32> to vector<8x8xbf16>
    %95 = vector.shape_cast %94 : vector<8x8xbf16> to vector<1x8x8xbf16>
    "tpu.trace_start"() <{level = 10 : i32, message = "bqd,bkd->bqk"}> : () -> ()
    %cst_27 = arith.constant dense<0.000000e+00> : vector<1x8x8xf32>
    %96 = tpu.matmul %89, %92, %cst_27 {dimension_numbers = #tpu.dot_dimension_numbers<[2], [2], [1], [1], [0, 0, 0, 1, 1, 1], [0], [0]>} : vector<1x8x8xbf16>, vector<1x8x8xbf16>, vector<1x8x8xf32> -> vector<1x8x8xf32>
    "tpu.trace_stop"() : () -> ()
    %cst_28 = arith.constant 0.353553385 : f32
    %97 = vector.broadcast %cst_28 : f32 to vector<1x8x8xf32>
    %98 = arith.mulf %96, %97 : vector<1x8x8xf32>
    %cst_29 = arith.constant dense<0xFF800000> : vector<1x8xf32>
    %99 = vector.multi_reduction <maximumf>, %98, %cst_29 [2] : vector<1x8x8xf32> to vector<1x8xf32>
    %100 = vector.shape_cast %99 : vector<1x8xf32> to vector<1x8x1xf32>
    %101 = vector.broadcast %100 : vector<1x8x1xf32> to vector<1x8x8xf32>
    %102 = arith.subf %98, %101 : vector<1x8x8xf32>
    %103 = math.exp %102 : vector<1x8x8xf32>
    %cst_30 = arith.constant dense<0.000000e+00> : vector<1x8xf32>
    %104 = vector.multi_reduction <add>, %103, %cst_30 [2] : vector<1x8x8xf32> to vector<1x8xf32>
    %105 = vector.shape_cast %104 : vector<1x8xf32> to vector<1x8x1xf32>
    %106 = vector.broadcast %105 : vector<1x8x1xf32> to vector<1x8x8xf32>
    %107 = arith.divf %103, %106 : vector<1x8x8xf32>
    %108 = arith.truncf %107 : vector<1x8x8xf32> to vector<1x8x8xbf16>
    "tpu.trace_start"() <{level = 10 : i32, message = "bqk,bkd->bqd"}> : () -> ()
    %cst_31 = arith.constant dense<0.000000e+00> : vector<1x8x8xf32>
    %109 = tpu.matmul %108, %95, %cst_31 {dimension_numbers = #tpu.dot_dimension_numbers<[2], [1], [1], [2], [0, 0, 0, 1, 1, 2], [0], [0]>} : vector<1x8x8xbf16>, vector<1x8x8xbf16>, vector<1x8x8xf32> -> vector<1x8x8xf32>
    "tpu.trace_stop"() : () -> ()
    %110 = vector.shape_cast %109 : vector<1x8x8xf32> to vector<8x8xf32>
    %c0_32 = arith.constant 0 : index
    %c24 = arith.constant 24 : index
    %111 = vector.load %arg17[%c0_32, %c24] : memref<8x32xf32, #tpu.memory_space<vmem>>, vector<8x8xf32>
    tpu.vector_store %arg17[%c0_32, %c24], %110 {strides = array<i32>} : memref<8x32xf32, #tpu.memory_space<vmem>>, vector<8x8xf32>,
    %c0_33 = arith.constant 0 : index
    %c0_34 = arith.constant 0 : index
    %112 = vector.load %arg17[%c0_33, %c0_34] : memref<8x32xf32, #tpu.memory_space<vmem>>, vector<8x32xf32>
    %113 = arith.truncf %112 : vector<8x32xf32> to vector<8x32xbf16>
    %c0_35 = arith.constant 0 : index
    %c0_36 = arith.constant 0 : index
    %c0_37 = arith.constant 0 : index
    %114 = vector.load %arg5[%c0_35, %c0_36, %c0_37] : memref<1x32x32xbf16, #tpu.memory_space<vmem>>, vector<1x32x32xbf16>
    %115 = vector.shape_cast %114 : vector<1x32x32xbf16> to vector<32x32xbf16>
    %cst_38 = arith.constant dense<0.000000e+00> : vector<8x32xf32>
    %116 = tpu.matmul %113, %115, %cst_38 {dimension_numbers = #tpu.dot_dimension_numbers<[1], [0], [0], [1], [0, 0, 1, 1], [], []>} : vector<8x32xbf16>, vector<32x32xbf16>, vector<8x32xf32> -> vector<8x32xf32>
    %c0_39 = arith.constant 0 : index
    %c0_40 = arith.constant 0 : index
    %c0_41 = arith.constant 0 : index
    %117 = vector.load %arg6[%c0_39, %c0_40, %c0_41] : memref<1x1x32xf32, #tpu.memory_space<vmem>>, vector<1x1x32xf32>
    %118 = vector.shape_cast %117 : vector<1x1x32xf32> to vector<1x32xf32>
    %119 = vector.broadcast %118 : vector<1x32xf32> to vector<8x32xf32>
    %120 = arith.addf %116, %119 : vector<8x32xf32>
    %121 = arith.addf %3, %120 : vector<8x32xf32>
    %c0_42 = arith.constant 0 : index
    %c0_43 = arith.constant 0 : index
    %c0_44 = arith.constant 0 : index
    %122 = vector.load %arg7[%c0_42, %c0_43, %c0_44] : memref<1x1x32xf32, #tpu.memory_space<vmem>>, vector<1x1x32xf32>
    %123 = vector.shape_cast %122 : vector<1x1x32xf32> to vector<1x32xf32>
    %c0_45 = arith.constant 0 : index
    %c0_46 = arith.constant 0 : index
    %c0_47 = arith.constant 0 : index
    %124 = vector.load %arg8[%c0_45, %c0_46, %c0_47] : memref<1x1x32xf32, #tpu.memory_space<vmem>>, vector<1x1x32xf32>
    %125 = vector.shape_cast %124 : vector<1x1x32xf32> to vector<1x32xf32>
    %cst_48 = arith.constant dense<0.000000e+00> : vector<8xf32>
    %126 = vector.multi_reduction <add>, %121, %cst_48 [1] : vector<8x32xf32> to vector<8xf32>
    %127 = vector.shape_cast %126 : vector<8xf32> to vector<8x1xf32>
    %cst_49 = arith.constant 3.200000e+01 : f32
    %128 = vector.broadcast %cst_49 : f32 to vector<8x1xf32>
    %129 = arith.divf %127, %128 : vector<8x1xf32>
    %130 = vector.broadcast %129 : vector<8x1xf32> to vector<8x32xf32>
    %131 = arith.subf %121, %130 : vector<8x32xf32>
    %132 = vector.broadcast %129 : vector<8x1xf32> to vector<8x32xf32>
    %133 = arith.subf %121, %132 : vector<8x32xf32>
    %134 = arith.mulf %131, %133 : vector<8x32xf32>
    %cst_50 = arith.constant dense<0.000000e+00> : vector<8xf32>
    %135 = vector.multi_reduction <add>, %134, %cst_50 [1] : vector<8x32xf32> to vector<8xf32>
    %136 = vector.shape_cast %135 : vector<8xf32> to vector<8x1xf32>
    %cst_51 = arith.constant 3.200000e+01 : f32
    %137 = vector.broadcast %cst_51 : f32 to vector<8x1xf32>
    %138 = arith.divf %136, %137 : vector<8x1xf32>
    %139 = vector.broadcast %129 : vector<8x1xf32> to vector<8x32xf32>
    %140 = arith.subf %121, %139 : vector<8x32xf32>
    %cst_52 = arith.constant 9.99999974E-6 : f32
    %141 = vector.broadcast %cst_52 : f32 to vector<8x1xf32>
    %142 = arith.addf %138, %141 : vector<8x1xf32>
    %143 = math.rsqrt %142 : vector<8x1xf32>
    %144 = vector.broadcast %143 : vector<8x1xf32> to vector<8x32xf32>
    %145 = arith.mulf %140, %144 : vector<8x32xf32>
    %146 = vector.broadcast %123 : vector<1x32xf32> to vector<8x32xf32>
    %147 = arith.mulf %145, %146 : vector<8x32xf32>
    %148 = vector.broadcast %125 : vector<1x32xf32> to vector<8x32xf32>
    %149 = arith.addf %147, %148 : vector<8x32xf32>
    %150 = arith.truncf %149 : vector<8x32xf32> to vector<8x32xbf16>
    %c0_53 = arith.constant 0 : index
    %c0_54 = arith.constant 0 : index
    %c0_55 = arith.constant 0 : index
    %151 = vector.load %arg9[%c0_53, %c0_54, %c0_55] : memref<1x32x128xbf16, #tpu.memory_space<vmem>>, vector<1x32x128xbf16>
    %152 = vector.shape_cast %151 : vector<1x32x128xbf16> to vector<32x128xbf16>
    %cst_56 = arith.constant dense<0.000000e+00> : vector<8x128xf32>
    %153 = tpu.matmul %150, %152, %cst_56 {dimension_numbers = #tpu.dot_dimension_numbers<[1], [0], [0], [1], [0, 0, 1, 1], [], []>} : vector<8x32xbf16>, vector<32x128xbf16>, vector<8x128xf32> -> vector<8x128xf32>
    %c0_57 = arith.constant 0 : index
    %c0_58 = arith.constant 0 : index
    %c0_59 = arith.constant 0 : index
    %154 = vector.load %arg10[%c0_57, %c0_58, %c0_59] : memref<1x1x128xf32, #tpu.memory_space<vmem>>, vector<1x1x128xf32>
    %155 = vector.shape_cast %154 : vector<1x1x128xf32> to vector<1x128xf32>
    %156 = vector.broadcast %155 : vector<1x128xf32> to vector<8x128xf32>
    %157 = arith.addf %153, %156 : vector<8x128xf32>
    %cst_60 = arith.constant 5.000000e-01 : f32
    %158 = vector.broadcast %cst_60 : f32 to vector<8x128xf32>
    %159 = arith.mulf %158, %157 : vector<8x128xf32>
    %cst_61 = arith.constant 0.707106769 : f32
    %160 = vector.broadcast %cst_61 : f32 to vector<8x128xf32>
    %161 = arith.mulf %157, %160 : vector<8x128xf32>
    %cst_62 = arith.constant 0.000000e+00 : f32
    %162 = vector.broadcast %cst_62 : f32 to vector<8x128xf32>
    %163 = arith.cmpf oge, %161, %162 : vector<8x128xf32>
    %cst_63 = arith.constant 1.000000e+00 : f32
    %cst_64 = arith.constant -1.000000e+00 : f32
    %164 = vector.broadcast %cst_63 : f32 to vector<8x128xf32>
    %165 = vector.broadcast %cst_64 : f32 to vector<8x128xf32>
    %166 = arith.select %163, %164, %165 : vector<8x128xi1>, vector<8x128xf32>
    %167 = math.absf %161 : vector<8x128xf32>
    %cst_65 = arith.constant 0.327591091 : f32
    %168 = vector.broadcast %cst_65 : f32 to vector<8x128xf32>
    %169 = arith.mulf %168, %167 : vector<8x128xf32>
    %cst_66 = arith.constant 1.000000e+00 : f32
    %170 = vector.broadcast %cst_66 : f32 to vector<8x128xf32>
    %171 = arith.addf %170, %169 : vector<8x128xf32>
    %cst_67 = arith.constant 1.000000e+00 : f32
    %172 = vector.broadcast %cst_67 : f32 to vector<8x128xf32>
    %173 = arith.divf %172, %171 : vector<8x128xf32>
    %cst_68 = arith.constant 1.06140542 : f32
    %174 = vector.broadcast %cst_68 : f32 to vector<8x128xf32>
    %175 = arith.mulf %174, %173 : vector<8x128xf32>
    %cst_69 = arith.constant -1.45315206 : f32
    %176 = vector.broadcast %cst_69 : f32 to vector<8x128xf32>
    %177 = arith.addf %175, %176 : vector<8x128xf32>
    %178 = arith.mulf %177, %173 : vector<8x128xf32>
    %cst_70 = arith.constant 1.42141378 : f32
    %179 = vector.broadcast %cst_70 : f32 to vector<8x128xf32>
    %180 = arith.addf %178, %179 : vector<8x128xf32>
    %181 = arith.mulf %180, %173 : vector<8x128xf32>
    %cst_71 = arith.constant -0.284496725 : f32
    %182 = vector.broadcast %cst_71 : f32 to vector<8x128xf32>
    %183 = arith.addf %181, %182 : vector<8x128xf32>
    %184 = arith.mulf %183, %173 : vector<8x128xf32>
    %cst_72 = arith.constant 0.254829586 : f32
    %185 = vector.broadcast %cst_72 : f32 to vector<8x128xf32>
    %186 = arith.addf %184, %185 : vector<8x128xf32>
    %187 = arith.mulf %186, %173 : vector<8x128xf32>
    %cst_73 = arith.constant 0.000000e+00 : f32
    %188 = vector.broadcast %cst_73 : f32 to vector<8x128xf32>
    %189 = arith.subf %188, %167 : vector<8x128xf32>
    %190 = arith.mulf %189, %167 : vector<8x128xf32>
    %191 = math.exp %190 : vector<8x128xf32>
    %192 = arith.mulf %187, %191 : vector<8x128xf32>
    %cst_74 = arith.constant 1.000000e+00 : f32
    %193 = vector.broadcast %cst_74 : f32 to vector<8x128xf32>
    %194 = arith.subf %193, %192 : vector<8x128xf32>
    %195 = arith.mulf %166, %194 : vector<8x128xf32>
    %cst_75 = arith.constant 1.000000e+00 : f32
    %196 = vector.broadcast %cst_75 : f32 to vector<8x128xf32>
    %197 = arith.addf %196, %195 : vector<8x128xf32>
    %198 = arith.mulf %159, %197 : vector<8x128xf32>
    %199 = arith.truncf %198 : vector<8x128xf32> to vector<8x128xbf16>
    %c0_76 = arith.constant 0 : index
    %c0_77 = arith.constant 0 : index
    %c0_78 = arith.constant 0 : index
    %200 = vector.load %arg11[%c0_76, %c0_77, %c0_78] : memref<1x128x32xbf16, #tpu.memory_space<vmem>>, vector<1x128x32xbf16>
    %201 = vector.shape_cast %200 : vector<1x128x32xbf16> to vector<128x32xbf16>
    %cst_79 = arith.constant dense<0.000000e+00> : vector<8x32xf32>
    %202 = tpu.matmul %199, %201, %cst_79 {dimension_numbers = #tpu.dot_dimension_numbers<[1], [0], [0], [1], [0, 0, 1, 1], [], []>} : vector<8x128xbf16>, vector<128x32xbf16>, vector<8x32xf32> -> vector<8x32xf32>
    %c0_80 = arith.constant 0 : index
    %c0_81 = arith.constant 0 : index
    %c0_82 = arith.constant 0 : index
    %203 = vector.load %arg12[%c0_80, %c0_81, %c0_82] : memref<1x1x32xf32, #tpu.memory_space<vmem>>, vector<1x1x32xf32>
    %204 = vector.shape_cast %203 : vector<1x1x32xf32> to vector<1x32xf32>
    %205 = vector.broadcast %204 : vector<1x32xf32> to vector<8x32xf32>
    %206 = arith.addf %202, %205 : vector<8x32xf32>
    %207 = arith.addf %149, %206 : vector<8x32xf32>
    %c0_83 = arith.constant 0 : index
    %c0_84 = arith.constant 0 : index
    %c0_85 = arith.constant 0 : index
    %208 = vector.load %arg13[%c0_83, %c0_84, %c0_85] : memref<1x1x32xf32, #tpu.memory_space<vmem>>, vector<1x1x32xf32>
    %209 = vector.shape_cast %208 : vector<1x1x32xf32> to vector<1x32xf32>
    %c0_86 = arith.constant 0 : index
    %c0_87 = arith.constant 0 : index
    %c0_88 = arith.constant 0 : index
    %210 = vector.load %arg14[%c0_86, %c0_87, %c0_88] : memref<1x1x32xf32, #tpu.memory_space<vmem>>, vector<1x1x32xf32>
    %211 = vector.shape_cast %210 : vector<1x1x32xf32> to vector<1x32xf32>
    %cst_89 = arith.constant dense<0.000000e+00> : vector<8xf32>
    %212 = vector.multi_reduction <add>, %207, %cst_89 [1] : vector<8x32xf32> to vector<8xf32>
    %213 = vector.shape_cast %212 : vector<8xf32> to vector<8x1xf32>
    %cst_90 = arith.constant 3.200000e+01 : f32
    %214 = vector.broadcast %cst_90 : f32 to vector<8x1xf32>
    %215 = arith.divf %213, %214 : vector<8x1xf32>
    %216 = vector.broadcast %215 : vector<8x1xf32> to vector<8x32xf32>
    %217 = arith.subf %207, %216 : vector<8x32xf32>
    %218 = vector.broadcast %215 : vector<8x1xf32> to vector<8x32xf32>
    %219 = arith.subf %207, %218 : vector<8x32xf32>
    %220 = arith.mulf %217, %219 : vector<8x32xf32>
    %cst_91 = arith.constant dense<0.000000e+00> : vector<8xf32>
    %221 = vector.multi_reduction <add>, %220, %cst_91 [1] : vector<8x32xf32> to vector<8xf32>
    %222 = vector.shape_cast %221 : vector<8xf32> to vector<8x1xf32>
    %cst_92 = arith.constant 3.200000e+01 : f32
    %223 = vector.broadcast %cst_92 : f32 to vector<8x1xf32>
    %224 = arith.divf %222, %223 : vector<8x1xf32>
    %225 = vector.broadcast %215 : vector<8x1xf32> to vector<8x32xf32>
    %226 = arith.subf %207, %225 : vector<8x32xf32>
    %cst_93 = arith.constant 9.99999974E-6 : f32
    %227 = vector.broadcast %cst_93 : f32 to vector<8x1xf32>
    %228 = arith.addf %224, %227 : vector<8x1xf32>
    %229 = math.rsqrt %228 : vector<8x1xf32>
    %230 = vector.broadcast %229 : vector<8x1xf32> to vector<8x32xf32>
    %231 = arith.mulf %226, %230 : vector<8x32xf32>
    %232 = vector.broadcast %209 : vector<1x32xf32> to vector<8x32xf32>
    %233 = arith.mulf %231, %232 : vector<8x32xf32>
    %234 = vector.broadcast %211 : vector<1x32xf32> to vector<8x32xf32>
    %235 = arith.addf %233, %234 : vector<8x32xf32>
    %c0_94 = arith.constant 0 : index
    %c0_95 = arith.constant 0 : index
    %236 = vector.load %arg16[%c0_94, %c0_95] : memref<8x32xf32, #tpu.memory_space<vmem>>, vector<8x32xf32>
    tpu.vector_store %arg16[%c0_94, %c0_95], %235 {strides = array<i32>} : memref<8x32xf32, #tpu.memory_space<vmem>>, vector<8x32xf32>,
    %c1_i32 = arith.constant 1 : i32
    %237 = arith.cmpi eq, %arg1, %c1_i32 : i32
    %238 = arith.extui %237 : i1 to i32
    %c0_i32_96 = arith.constant 0 : i32
    %239 = arith.cmpi ne, %238, %c0_i32_96 : i32
    scf.if %239 {
      %240 = vector.shape_cast %235 : vector<8x32xf32> to vector<1x8x32xf32>
      %cst_97 = arith.constant dense<0.000000e+00> : vector<1x32xf32>
      %241 = vector.multi_reduction <add>, %240, %cst_97 [1] : vector<1x8x32xf32> to vector<1x32xf32>
      %242 = vector.shape_cast %241 : vector<1x32xf32> to vector<1x1x32xf32>
      %cst_98 = arith.constant 8.000000e+00 : f32
      %243 = vector.broadcast %cst_98 : f32 to vector<1x1x32xf32>
      %244 = arith.divf %242, %243 : vector<1x1x32xf32>
      %c0_99 = arith.constant 0 : index
      %c0_100 = arith.constant 0 : index
      %c0_101 = arith.constant 0 : index
      %245 = vector.load %arg15[%c0_99, %c0_100, %c0_101] : memref<1x1x32xf32, #tpu.memory_space<vmem>>, vector<1x1x32xf32>
      tpu.vector_store %arg15[%c0_99, %c0_100, %c0_101], %244 {strides = array<i32>} : memref<1x1x32xf32, #tpu.memory_space<vmem>>, vector<1x1x32xf32>,
    } else {
    }
    return
  }
  func.func @transform_0(%arg0: i32, %arg1: i32) -> (i32, i32, i32) {
    %c0_i32 = arith.constant 0 : i32
    %c0_i32_0 = arith.constant 0 : i32
    %c0_i32_1 = arith.constant 0 : i32
    return %arg0, %c0_i32, %c0_i32_0 : i32, i32, i32
  }
  func.func @transform_1(%arg0: i32, %arg1: i32) -> (i32, i32, i32) {
    %c0_i32 = arith.constant 0 : i32
    %c0_i32_0 = arith.constant 0 : i32
    %c0_i32_1 = arith.constant 0 : i32
    return %arg1, %c0_i32, %c0_i32_0 : i32, i32, i32
  }
  func.func @transform_2(%arg0: i32, %arg1: i32) -> (i32, i32, i32) {
    %c0_i32 = arith.constant 0 : i32
    %c0_i32_0 = arith.constant 0 : i32
    %c0_i32_1 = arith.constant 0 : i32
    return %arg1, %c0_i32, %c0_i32_0 : i32, i32, i32
  }
  func.func @transform_3(%arg0: i32, %arg1: i32) -> (i32, i32, i32) {
    %c0_i32 = arith.constant 0 : i32
    %c0_i32_0 = arith.constant 0 : i32
    %c0_i32_1 = arith.constant 0 : i32
    return %arg1, %c0_i32, %c0_i32_0 : i32, i32, i32
  }
  func.func @transform_4(%arg0: i32, %arg1: i32) -> (i32, i32, i32) {
    %c0_i32 = arith.constant 0 : i32
    %c0_i32_0 = arith.constant 0 : i32
    %c0_i32_1 = arith.constant 0 : i32
    return %arg1, %c0_i32, %c0_i32_0 : i32, i32, i32
  }
  func.func @transform_5(%arg0: i32, %arg1: i32) -> (i32, i32, i32) {
    %c0_i32 = arith.constant 0 : i32
    %c0_i32_0 = arith.constant 0 : i32
    %c0_i32_1 = arith.constant 0 : i32
    return %arg1, %c0_i32, %c0_i32_0 : i32, i32, i32
  }
  func.func @transform_6(%arg0: i32, %arg1: i32) -> (i32, i32, i32) {
    %c0_i32 = arith.constant 0 : i32
    %c0_i32_0 = arith.constant 0 : i32
    %c0_i32_1 = arith.constant 0 : i32
    return %arg1, %c0_i32, %c0_i32_0 : i32, i32, i32
  }
  func.func @transform_7(%arg0: i32, %arg1: i32) -> (i32, i32, i32) {
    %c0_i32 = arith.constant 0 : i32
    %c0_i32_0 = arith.constant 0 : i32
    %c0_i32_1 = arith.constant 0 : i32
    return %arg1, %c0_i32, %c0_i32_0 : i32, i32, i32
  }
  func.func @transform_8(%arg0: i32, %arg1: i32) -> (i32, i32, i32) {
    %c0_i32 = arith.constant 0 : i32
    %c0_i32_0 = arith.constant 0 : i32
    %c0_i32_1 = arith.constant 0 : i32
    return %arg1, %c0_i32, %c0_i32_0 : i32, i32, i32
  }
  func.func @transform_9(%arg0: i32, %arg1: i32) -> (i32, i32, i32) {
    %c0_i32 = arith.constant 0 : i32
    %c0_i32_0 = arith.constant 0 : i32
    %c0_i32_1 = arith.constant 0 : i32
    return %arg1, %c0_i32, %c0_i32_0 : i32, i32, i32
  }
  func.func @transform_10(%arg0: i32, %arg1: i32) -> (i32, i32, i32) {
    %c0_i32 = arith.constant 0 : i32
    %c0_i32_0 = arith.constant 0 : i32
    %c0_i32_1 = arith.constant 0 : i32
    return %arg1, %c0_i32, %c0_i32_0 : i32, i32, i32
  }
  func.func @transform_11(%arg0: i32, %arg1: i32) -> (i32, i32, i32) {
    %c0_i32 = arith.constant 0 : i32
    %c0_i32_0 = arith.constant 0 : i32
    %c0_i32_1 = arith.constant 0 : i32
    return %arg1, %c0_i32, %c0_i32_0 : i32, i32, i32
  }
  func.func @transform_12(%arg0: i32, %arg1: i32) -> (i32, i32, i32) {
    %c0_i32 = arith.constant 0 : i32
    %c0_i32_0 = arith.constant 0 : i32
    %c0_i32_1 = arith.constant 0 : i32
    return %arg1, %c0_i32, %c0_i32_0 : i32, i32, i32
  }
  func.func @transform_13(%arg0: i32, %arg1: i32) -> (i32, i32, i32) {
    %c0_i32 = arith.constant 0 : i32
    %c0_i32_0 = arith.constant 0 : i32
    %c0_i32_1 = arith.constant 0 : i32
    return %arg0, %c0_i32, %c0_i32_0 : i32, i32, i32
  }
}

module attributes {stable_mosaic.version = 11 : i64} {
  func.func @_head_kernel(%arg0: memref<2x32xf32, #tpu.memory_space<vmem>>, %arg1: memref<32x32xbf16, #tpu.memory_space<vmem>>, %arg2: memref<1x32xf32, #tpu.memory_space<vmem>>, %arg3: memref<8x32x32xbf16, #tpu.memory_space<vmem>>, %arg4: memref<8x1x32xf32, #tpu.memory_space<vmem>>, %arg5: memref<8x1x32xf32, #tpu.memory_space<vmem>>, %arg6: memref<8x1x32xf32, #tpu.memory_space<vmem>>, %arg7: memref<8x32x32xbf16, #tpu.memory_space<vmem>>, %arg8: memref<8x1x32xf32, #tpu.memory_space<vmem>>, %arg9: memref<8x1x32xf32, #tpu.memory_space<vmem>>, %arg10: memref<8x1x32xf32, #tpu.memory_space<vmem>>, %arg11: memref<32x32xbf16, #tpu.memory_space<vmem>>, %arg12: memref<1x32xf32, #tpu.memory_space<vmem>>, %arg13: memref<32x32xbf16, #tpu.memory_space<vmem>>, %arg14: memref<1x32xf32, #tpu.memory_space<vmem>>, %arg15: memref<32x8xbf16, #tpu.memory_space<vmem>>, %arg16: memref<1x8xf32, #tpu.memory_space<vmem>>, %arg17: memref<2x8xf32, #tpu.memory_space<vmem>>) attributes {dimension_semantics = [], scalar_prefetch = 0 : i64, scratch_operands = 0 : i64, tpu.core_type = #tpu.core_type<tc>} {
    %c0 = arith.constant 0 : index
    %c0_0 = arith.constant 0 : index
    %0 = vector.load %arg0[%c0, %c0_0] : memref<2x32xf32, #tpu.memory_space<vmem>>, vector<2x32xf32>
    %1 = arith.truncf %0 : vector<2x32xf32> to vector<2x32xbf16>
    %c0_1 = arith.constant 0 : index
    %c0_2 = arith.constant 0 : index
    %2 = vector.load %arg1[%c0_1, %c0_2] : memref<32x32xbf16, #tpu.memory_space<vmem>>, vector<32x32xbf16>
    %cst = arith.constant dense<0.000000e+00> : vector<2x32xf32>
    %3 = tpu.matmul %1, %2, %cst {dimension_numbers = #tpu.dot_dimension_numbers<[1], [0], [0], [1], [0, 0, 1, 1], [], []>} : vector<2x32xbf16>, vector<32x32xbf16>, vector<2x32xf32> -> vector<2x32xf32>
    %c0_3 = arith.constant 0 : index
    %c0_4 = arith.constant 0 : index
    %4 = vector.load %arg2[%c0_3, %c0_4] : memref<1x32xf32, #tpu.memory_space<vmem>>, vector<1x32xf32>
    %5 = vector.broadcast %4 : vector<1x32xf32> to vector<2x32xf32>
    %6 = arith.addf %3, %5 : vector<2x32xf32>
    %7 = arith.truncf %6 : vector<2x32xf32> to vector<2x32xbf16>
    %c0_5 = arith.constant 0 : index
    %c0_6 = arith.constant 0 : index
    %c0_7 = arith.constant 0 : index
    %8 = vector.load %arg3[%c0_5, %c0_6, %c0_7] : memref<8x32x32xbf16, #tpu.memory_space<vmem>>, vector<1x32x32xbf16>
    %9 = vector.shape_cast %8 : vector<1x32x32xbf16> to vector<32x32xbf16>
    %cst_8 = arith.constant dense<0.000000e+00> : vector<2x32xf32>
    %10 = tpu.matmul %7, %9, %cst_8 {dimension_numbers = #tpu.dot_dimension_numbers<[1], [0], [0], [1], [0, 0, 1, 1], [], []>} : vector<2x32xbf16>, vector<32x32xbf16>, vector<2x32xf32> -> vector<2x32xf32>
    %c0_9 = arith.constant 0 : index
    %c0_10 = arith.constant 0 : index
    %c0_11 = arith.constant 0 : index
    %11 = vector.load %arg4[%c0_9, %c0_10, %c0_11] : memref<8x1x32xf32, #tpu.memory_space<vmem>>, vector<1x1x32xf32>
    %12 = vector.shape_cast %11 : vector<1x1x32xf32> to vector<1x32xf32>
    %13 = vector.broadcast %12 : vector<1x32xf32> to vector<2x32xf32>
    %14 = arith.addf %10, %13 : vector<2x32xf32>
    %cst_12 = arith.constant 5.000000e-01 : f32
    %15 = vector.broadcast %cst_12 : f32 to vector<2x32xf32>
    %16 = arith.mulf %15, %14 : vector<2x32xf32>
    %cst_13 = arith.constant 0.707106769 : f32
    %17 = vector.broadcast %cst_13 : f32 to vector<2x32xf32>
    %18 = arith.mulf %14, %17 : vector<2x32xf32>
    %cst_14 = arith.constant 0.000000e+00 : f32
    %19 = vector.broadcast %cst_14 : f32 to vector<2x32xf32>
    %20 = arith.cmpf oge, %18, %19 : vector<2x32xf32>
    %cst_15 = arith.constant 1.000000e+00 : f32
    %cst_16 = arith.constant -1.000000e+00 : f32
    %21 = vector.broadcast %cst_15 : f32 to vector<2x32xf32>
    %22 = vector.broadcast %cst_16 : f32 to vector<2x32xf32>
    %23 = arith.select %20, %21, %22 : vector<2x32xi1>, vector<2x32xf32>
    %24 = math.absf %18 : vector<2x32xf32>
    %cst_17 = arith.constant 0.327591091 : f32
    %25 = vector.broadcast %cst_17 : f32 to vector<2x32xf32>
    %26 = arith.mulf %25, %24 : vector<2x32xf32>
    %cst_18 = arith.constant 1.000000e+00 : f32
    %27 = vector.broadcast %cst_18 : f32 to vector<2x32xf32>
    %28 = arith.addf %27, %26 : vector<2x32xf32>
    %cst_19 = arith.constant 1.000000e+00 : f32
    %29 = vector.broadcast %cst_19 : f32 to vector<2x32xf32>
    %30 = arith.divf %29, %28 : vector<2x32xf32>
    %cst_20 = arith.constant 1.06140542 : f32
    %31 = vector.broadcast %cst_20 : f32 to vector<2x32xf32>
    %32 = arith.mulf %31, %30 : vector<2x32xf32>
    %cst_21 = arith.constant -1.45315206 : f32
    %33 = vector.broadcast %cst_21 : f32 to vector<2x32xf32>
    %34 = arith.addf %32, %33 : vector<2x32xf32>
    %35 = arith.mulf %34, %30 : vector<2x32xf32>
    %cst_22 = arith.constant 1.42141378 : f32
    %36 = vector.broadcast %cst_22 : f32 to vector<2x32xf32>
    %37 = arith.addf %35, %36 : vector<2x32xf32>
    %38 = arith.mulf %37, %30 : vector<2x32xf32>
    %cst_23 = arith.constant -0.284496725 : f32
    %39 = vector.broadcast %cst_23 : f32 to vector<2x32xf32>
    %40 = arith.addf %38, %39 : vector<2x32xf32>
    %41 = arith.mulf %40, %30 : vector<2x32xf32>
    %cst_24 = arith.constant 0.254829586 : f32
    %42 = vector.broadcast %cst_24 : f32 to vector<2x32xf32>
    %43 = arith.addf %41, %42 : vector<2x32xf32>
    %44 = arith.mulf %43, %30 : vector<2x32xf32>
    %cst_25 = arith.constant 0.000000e+00 : f32
    %45 = vector.broadcast %cst_25 : f32 to vector<2x32xf32>
    %46 = arith.subf %45, %24 : vector<2x32xf32>
    %47 = arith.mulf %46, %24 : vector<2x32xf32>
    %48 = math.exp %47 : vector<2x32xf32>
    %49 = arith.mulf %44, %48 : vector<2x32xf32>
    %cst_26 = arith.constant 1.000000e+00 : f32
    %50 = vector.broadcast %cst_26 : f32 to vector<2x32xf32>
    %51 = arith.subf %50, %49 : vector<2x32xf32>
    %52 = arith.mulf %23, %51 : vector<2x32xf32>
    %cst_27 = arith.constant 1.000000e+00 : f32
    %53 = vector.broadcast %cst_27 : f32 to vector<2x32xf32>
    %54 = arith.addf %53, %52 : vector<2x32xf32>
    %55 = arith.mulf %16, %54 : vector<2x32xf32>
    %c0_28 = arith.constant 0 : index
    %c0_29 = arith.constant 0 : index
    %c0_30 = arith.constant 0 : index
    %56 = vector.load %arg5[%c0_28, %c0_29, %c0_30] : memref<8x1x32xf32, #tpu.memory_space<vmem>>, vector<1x1x32xf32>
    %57 = vector.shape_cast %56 : vector<1x1x32xf32> to vector<1x32xf32>
    %c0_31 = arith.constant 0 : index
    %c0_32 = arith.constant 0 : index
    %c0_33 = arith.constant 0 : index
    %58 = vector.load %arg6[%c0_31, %c0_32, %c0_33] : memref<8x1x32xf32, #tpu.memory_space<vmem>>, vector<1x1x32xf32>
    %59 = vector.shape_cast %58 : vector<1x1x32xf32> to vector<1x32xf32>
    %cst_34 = arith.constant dense<0.000000e+00> : vector<2xf32>
    %60 = vector.multi_reduction <add>, %55, %cst_34 [1] : vector<2x32xf32> to vector<2xf32>
    %61 = vector.shape_cast %60 : vector<2xf32> to vector<2x1xf32>
    %cst_35 = arith.constant 3.200000e+01 : f32
    %62 = vector.broadcast %cst_35 : f32 to vector<2x1xf32>
    %63 = arith.divf %61, %62 : vector<2x1xf32>
    %64 = vector.broadcast %63 : vector<2x1xf32> to vector<2x32xf32>
    %65 = arith.subf %55, %64 : vector<2x32xf32>
    %66 = vector.broadcast %63 : vector<2x1xf32> to vector<2x32xf32>
    %67 = arith.subf %55, %66 : vector<2x32xf32>
    %68 = arith.mulf %65, %67 : vector<2x32xf32>
    %cst_36 = arith.constant dense<0.000000e+00> : vector<2xf32>
    %69 = vector.multi_reduction <add>, %68, %cst_36 [1] : vector<2x32xf32> to vector<2xf32>
    %70 = vector.shape_cast %69 : vector<2xf32> to vector<2x1xf32>
    %cst_37 = arith.constant 3.200000e+01 : f32
    %71 = vector.broadcast %cst_37 : f32 to vector<2x1xf32>
    %72 = arith.divf %70, %71 : vector<2x1xf32>
    %73 = vector.broadcast %63 : vector<2x1xf32> to vector<2x32xf32>
    %74 = arith.subf %55, %73 : vector<2x32xf32>
    %cst_38 = arith.constant 9.99999974E-6 : f32
    %75 = vector.broadcast %cst_38 : f32 to vector<2x1xf32>
    %76 = arith.addf %72, %75 : vector<2x1xf32>
    %77 = math.rsqrt %76 : vector<2x1xf32>
    %78 = vector.broadcast %77 : vector<2x1xf32> to vector<2x32xf32>
    %79 = arith.mulf %74, %78 : vector<2x32xf32>
    %80 = vector.broadcast %57 : vector<1x32xf32> to vector<2x32xf32>
    %81 = arith.mulf %79, %80 : vector<2x32xf32>
    %82 = vector.broadcast %59 : vector<1x32xf32> to vector<2x32xf32>
    %83 = arith.addf %81, %82 : vector<2x32xf32>
    %84 = arith.truncf %83 : vector<2x32xf32> to vector<2x32xbf16>
    %c0_39 = arith.constant 0 : index
    %c0_40 = arith.constant 0 : index
    %c0_41 = arith.constant 0 : index
    %85 = vector.load %arg7[%c0_39, %c0_40, %c0_41] : memref<8x32x32xbf16, #tpu.memory_space<vmem>>, vector<1x32x32xbf16>
    %86 = vector.shape_cast %85 : vector<1x32x32xbf16> to vector<32x32xbf16>
    %cst_42 = arith.constant dense<0.000000e+00> : vector<2x32xf32>
    %87 = tpu.matmul %84, %86, %cst_42 {dimension_numbers = #tpu.dot_dimension_numbers<[1], [0], [0], [1], [0, 0, 1, 1], [], []>} : vector<2x32xbf16>, vector<32x32xbf16>, vector<2x32xf32> -> vector<2x32xf32>
    %c0_43 = arith.constant 0 : index
    %c0_44 = arith.constant 0 : index
    %c0_45 = arith.constant 0 : index
    %88 = vector.load %arg8[%c0_43, %c0_44, %c0_45] : memref<8x1x32xf32, #tpu.memory_space<vmem>>, vector<1x1x32xf32>
    %89 = vector.shape_cast %88 : vector<1x1x32xf32> to vector<1x32xf32>
    %90 = vector.broadcast %89 : vector<1x32xf32> to vector<2x32xf32>
    %91 = arith.addf %87, %90 : vector<2x32xf32>
    %cst_46 = arith.constant 5.000000e-01 : f32
    %92 = vector.broadcast %cst_46 : f32 to vector<2x32xf32>
    %93 = arith.mulf %92, %91 : vector<2x32xf32>
    %cst_47 = arith.constant 0.707106769 : f32
    %94 = vector.broadcast %cst_47 : f32 to vector<2x32xf32>
    %95 = arith.mulf %91, %94 : vector<2x32xf32>
    %cst_48 = arith.constant 0.000000e+00 : f32
    %96 = vector.broadcast %cst_48 : f32 to vector<2x32xf32>
    %97 = arith.cmpf oge, %95, %96 : vector<2x32xf32>
    %cst_49 = arith.constant 1.000000e+00 : f32
    %cst_50 = arith.constant -1.000000e+00 : f32
    %98 = vector.broadcast %cst_49 : f32 to vector<2x32xf32>
    %99 = vector.broadcast %cst_50 : f32 to vector<2x32xf32>
    %100 = arith.select %97, %98, %99 : vector<2x32xi1>, vector<2x32xf32>
    %101 = math.absf %95 : vector<2x32xf32>
    %cst_51 = arith.constant 0.327591091 : f32
    %102 = vector.broadcast %cst_51 : f32 to vector<2x32xf32>
    %103 = arith.mulf %102, %101 : vector<2x32xf32>
    %cst_52 = arith.constant 1.000000e+00 : f32
    %104 = vector.broadcast %cst_52 : f32 to vector<2x32xf32>
    %105 = arith.addf %104, %103 : vector<2x32xf32>
    %cst_53 = arith.constant 1.000000e+00 : f32
    %106 = vector.broadcast %cst_53 : f32 to vector<2x32xf32>
    %107 = arith.divf %106, %105 : vector<2x32xf32>
    %cst_54 = arith.constant 1.06140542 : f32
    %108 = vector.broadcast %cst_54 : f32 to vector<2x32xf32>
    %109 = arith.mulf %108, %107 : vector<2x32xf32>
    %cst_55 = arith.constant -1.45315206 : f32
    %110 = vector.broadcast %cst_55 : f32 to vector<2x32xf32>
    %111 = arith.addf %109, %110 : vector<2x32xf32>
    %112 = arith.mulf %111, %107 : vector<2x32xf32>
    %cst_56 = arith.constant 1.42141378 : f32
    %113 = vector.broadcast %cst_56 : f32 to vector<2x32xf32>
    %114 = arith.addf %112, %113 : vector<2x32xf32>
    %115 = arith.mulf %114, %107 : vector<2x32xf32>
    %cst_57 = arith.constant -0.284496725 : f32
    %116 = vector.broadcast %cst_57 : f32 to vector<2x32xf32>
    %117 = arith.addf %115, %116 : vector<2x32xf32>
    %118 = arith.mulf %117, %107 : vector<2x32xf32>
    %cst_58 = arith.constant 0.254829586 : f32
    %119 = vector.broadcast %cst_58 : f32 to vector<2x32xf32>
    %120 = arith.addf %118, %119 : vector<2x32xf32>
    %121 = arith.mulf %120, %107 : vector<2x32xf32>
    %cst_59 = arith.constant 0.000000e+00 : f32
    %122 = vector.broadcast %cst_59 : f32 to vector<2x32xf32>
    %123 = arith.subf %122, %101 : vector<2x32xf32>
    %124 = arith.mulf %123, %101 : vector<2x32xf32>
    %125 = math.exp %124 : vector<2x32xf32>
    %126 = arith.mulf %121, %125 : vector<2x32xf32>
    %cst_60 = arith.constant 1.000000e+00 : f32
    %127 = vector.broadcast %cst_60 : f32 to vector<2x32xf32>
    %128 = arith.subf %127, %126 : vector<2x32xf32>
    %129 = arith.mulf %100, %128 : vector<2x32xf32>
    %cst_61 = arith.constant 1.000000e+00 : f32
    %130 = vector.broadcast %cst_61 : f32 to vector<2x32xf32>
    %131 = arith.addf %130, %129 : vector<2x32xf32>
    %132 = arith.mulf %93, %131 : vector<2x32xf32>
    %c0_62 = arith.constant 0 : index
    %c0_63 = arith.constant 0 : index
    %c0_64 = arith.constant 0 : index
    %133 = vector.load %arg9[%c0_62, %c0_63, %c0_64] : memref<8x1x32xf32, #tpu.memory_space<vmem>>, vector<1x1x32xf32>
    %134 = vector.shape_cast %133 : vector<1x1x32xf32> to vector<1x32xf32>
    %c0_65 = arith.constant 0 : index
    %c0_66 = arith.constant 0 : index
    %c0_67 = arith.constant 0 : index
    %135 = vector.load %arg10[%c0_65, %c0_66, %c0_67] : memref<8x1x32xf32, #tpu.memory_space<vmem>>, vector<1x1x32xf32>
    %136 = vector.shape_cast %135 : vector<1x1x32xf32> to vector<1x32xf32>
    %cst_68 = arith.constant dense<0.000000e+00> : vector<2xf32>
    %137 = vector.multi_reduction <add>, %132, %cst_68 [1] : vector<2x32xf32> to vector<2xf32>
    %138 = vector.shape_cast %137 : vector<2xf32> to vector<2x1xf32>
    %cst_69 = arith.constant 3.200000e+01 : f32
    %139 = vector.broadcast %cst_69 : f32 to vector<2x1xf32>
    %140 = arith.divf %138, %139 : vector<2x1xf32>
    %141 = vector.broadcast %140 : vector<2x1xf32> to vector<2x32xf32>
    %142 = arith.subf %132, %141 : vector<2x32xf32>
    %143 = vector.broadcast %140 : vector<2x1xf32> to vector<2x32xf32>
    %144 = arith.subf %132, %143 : vector<2x32xf32>
    %145 = arith.mulf %142, %144 : vector<2x32xf32>
    %cst_70 = arith.constant dense<0.000000e+00> : vector<2xf32>
    %146 = vector.multi_reduction <add>, %145, %cst_70 [1] : vector<2x32xf32> to vector<2xf32>
    %147 = vector.shape_cast %146 : vector<2xf32> to vector<2x1xf32>
    %cst_71 = arith.constant 3.200000e+01 : f32
    %148 = vector.broadcast %cst_71 : f32 to vector<2x1xf32>
    %149 = arith.divf %147, %148 : vector<2x1xf32>
    %150 = vector.broadcast %140 : vector<2x1xf32> to vector<2x32xf32>
    %151 = arith.subf %132, %150 : vector<2x32xf32>
    %cst_72 = arith.constant 9.99999974E-6 : f32
    %152 = vector.broadcast %cst_72 : f32 to vector<2x1xf32>
    %153 = arith.addf %149, %152 : vector<2x1xf32>
    %154 = math.rsqrt %153 : vector<2x1xf32>
    %155 = vector.broadcast %154 : vector<2x1xf32> to vector<2x32xf32>
    %156 = arith.mulf %151, %155 : vector<2x32xf32>
    %157 = vector.broadcast %134 : vector<1x32xf32> to vector<2x32xf32>
    %158 = arith.mulf %156, %157 : vector<2x32xf32>
    %159 = vector.broadcast %136 : vector<1x32xf32> to vector<2x32xf32>
    %160 = arith.addf %158, %159 : vector<2x32xf32>
    %161 = arith.addf %160, %6 : vector<2x32xf32>
    %162 = arith.truncf %161 : vector<2x32xf32> to vector<2x32xbf16>
    %c1 = arith.constant 1 : index
    %c0_73 = arith.constant 0 : index
    %c0_74 = arith.constant 0 : index
    %163 = vector.load %arg3[%c1, %c0_73, %c0_74] : memref<8x32x32xbf16, #tpu.memory_space<vmem>>, vector<1x32x32xbf16>
    %164 = vector.shape_cast %163 : vector<1x32x32xbf16> to vector<32x32xbf16>
    %cst_75 = arith.constant dense<0.000000e+00> : vector<2x32xf32>
    %165 = tpu.matmul %162, %164, %cst_75 {dimension_numbers = #tpu.dot_dimension_numbers<[1], [0], [0], [1], [0, 0, 1, 1], [], []>} : vector<2x32xbf16>, vector<32x32xbf16>, vector<2x32xf32> -> vector<2x32xf32>
    %c1_76 = arith.constant 1 : index
    %c0_77 = arith.constant 0 : index
    %c0_78 = arith.constant 0 : index
    %166 = vector.load %arg4[%c1_76, %c0_77, %c0_78] : memref<8x1x32xf32, #tpu.memory_space<vmem>>, vector<1x1x32xf32>
    %167 = vector.shape_cast %166 : vector<1x1x32xf32> to vector<1x32xf32>
    %168 = vector.broadcast %167 : vector<1x32xf32> to vector<2x32xf32>
    %169 = arith.addf %165, %168 : vector<2x32xf32>
    %cst_79 = arith.constant 5.000000e-01 : f32
    %170 = vector.broadcast %cst_79 : f32 to vector<2x32xf32>
    %171 = arith.mulf %170, %169 : vector<2x32xf32>
    %cst_80 = arith.constant 0.707106769 : f32
    %172 = vector.broadcast %cst_80 : f32 to vector<2x32xf32>
    %173 = arith.mulf %169, %172 : vector<2x32xf32>
    %cst_81 = arith.constant 0.000000e+00 : f32
    %174 = vector.broadcast %cst_81 : f32 to vector<2x32xf32>
    %175 = arith.cmpf oge, %173, %174 : vector<2x32xf32>
    %cst_82 = arith.constant 1.000000e+00 : f32
    %cst_83 = arith.constant -1.000000e+00 : f32
    %176 = vector.broadcast %cst_82 : f32 to vector<2x32xf32>
    %177 = vector.broadcast %cst_83 : f32 to vector<2x32xf32>
    %178 = arith.select %175, %176, %177 : vector<2x32xi1>, vector<2x32xf32>
    %179 = math.absf %173 : vector<2x32xf32>
    %cst_84 = arith.constant 0.327591091 : f32
    %180 = vector.broadcast %cst_84 : f32 to vector<2x32xf32>
    %181 = arith.mulf %180, %179 : vector<2x32xf32>
    %cst_85 = arith.constant 1.000000e+00 : f32
    %182 = vector.broadcast %cst_85 : f32 to vector<2x32xf32>
    %183 = arith.addf %182, %181 : vector<2x32xf32>
    %cst_86 = arith.constant 1.000000e+00 : f32
    %184 = vector.broadcast %cst_86 : f32 to vector<2x32xf32>
    %185 = arith.divf %184, %183 : vector<2x32xf32>
    %cst_87 = arith.constant 1.06140542 : f32
    %186 = vector.broadcast %cst_87 : f32 to vector<2x32xf32>
    %187 = arith.mulf %186, %185 : vector<2x32xf32>
    %cst_88 = arith.constant -1.45315206 : f32
    %188 = vector.broadcast %cst_88 : f32 to vector<2x32xf32>
    %189 = arith.addf %187, %188 : vector<2x32xf32>
    %190 = arith.mulf %189, %185 : vector<2x32xf32>
    %cst_89 = arith.constant 1.42141378 : f32
    %191 = vector.broadcast %cst_89 : f32 to vector<2x32xf32>
    %192 = arith.addf %190, %191 : vector<2x32xf32>
    %193 = arith.mulf %192, %185 : vector<2x32xf32>
    %cst_90 = arith.constant -0.284496725 : f32
    %194 = vector.broadcast %cst_90 : f32 to vector<2x32xf32>
    %195 = arith.addf %193, %194 : vector<2x32xf32>
    %196 = arith.mulf %195, %185 : vector<2x32xf32>
    %cst_91 = arith.constant 0.254829586 : f32
    %197 = vector.broadcast %cst_91 : f32 to vector<2x32xf32>
    %198 = arith.addf %196, %197 : vector<2x32xf32>
    %199 = arith.mulf %198, %185 : vector<2x32xf32>
    %cst_92 = arith.constant 0.000000e+00 : f32
    %200 = vector.broadcast %cst_92 : f32 to vector<2x32xf32>
    %201 = arith.subf %200, %179 : vector<2x32xf32>
    %202 = arith.mulf %201, %179 : vector<2x32xf32>
    %203 = math.exp %202 : vector<2x32xf32>
    %204 = arith.mulf %199, %203 : vector<2x32xf32>
    %cst_93 = arith.constant 1.000000e+00 : f32
    %205 = vector.broadcast %cst_93 : f32 to vector<2x32xf32>
    %206 = arith.subf %205, %204 : vector<2x32xf32>
    %207 = arith.mulf %178, %206 : vector<2x32xf32>
    %cst_94 = arith.constant 1.000000e+00 : f32
    %208 = vector.broadcast %cst_94 : f32 to vector<2x32xf32>
    %209 = arith.addf %208, %207 : vector<2x32xf32>
    %210 = arith.mulf %171, %209 : vector<2x32xf32>
    %c1_95 = arith.constant 1 : index
    %c0_96 = arith.constant 0 : index
    %c0_97 = arith.constant 0 : index
    %211 = vector.load %arg5[%c1_95, %c0_96, %c0_97] : memref<8x1x32xf32, #tpu.memory_space<vmem>>, vector<1x1x32xf32>
    %212 = vector.shape_cast %211 : vector<1x1x32xf32> to vector<1x32xf32>
    %c1_98 = arith.constant 1 : index
    %c0_99 = arith.constant 0 : index
    %c0_100 = arith.constant 0 : index
    %213 = vector.load %arg6[%c1_98, %c0_99, %c0_100] : memref<8x1x32xf32, #tpu.memory_space<vmem>>, vector<1x1x32xf32>
    %214 = vector.shape_cast %213 : vector<1x1x32xf32> to vector<1x32xf32>
    %cst_101 = arith.constant dense<0.000000e+00> : vector<2xf32>
    %215 = vector.multi_reduction <add>, %210, %cst_101 [1] : vector<2x32xf32> to vector<2xf32>
    %216 = vector.shape_cast %215 : vector<2xf32> to vector<2x1xf32>
    %cst_102 = arith.constant 3.200000e+01 : f32
    %217 = vector.broadcast %cst_102 : f32 to vector<2x1xf32>
    %218 = arith.divf %216, %217 : vector<2x1xf32>
    %219 = vector.broadcast %218 : vector<2x1xf32> to vector<2x32xf32>
    %220 = arith.subf %210, %219 : vector<2x32xf32>
    %221 = vector.broadcast %218 : vector<2x1xf32> to vector<2x32xf32>
    %222 = arith.subf %210, %221 : vector<2x32xf32>
    %223 = arith.mulf %220, %222 : vector<2x32xf32>
    %cst_103 = arith.constant dense<0.000000e+00> : vector<2xf32>
    %224 = vector.multi_reduction <add>, %223, %cst_103 [1] : vector<2x32xf32> to vector<2xf32>
    %225 = vector.shape_cast %224 : vector<2xf32> to vector<2x1xf32>
    %cst_104 = arith.constant 3.200000e+01 : f32
    %226 = vector.broadcast %cst_104 : f32 to vector<2x1xf32>
    %227 = arith.divf %225, %226 : vector<2x1xf32>
    %228 = vector.broadcast %218 : vector<2x1xf32> to vector<2x32xf32>
    %229 = arith.subf %210, %228 : vector<2x32xf32>
    %cst_105 = arith.constant 9.99999974E-6 : f32
    %230 = vector.broadcast %cst_105 : f32 to vector<2x1xf32>
    %231 = arith.addf %227, %230 : vector<2x1xf32>
    %232 = math.rsqrt %231 : vector<2x1xf32>
    %233 = vector.broadcast %232 : vector<2x1xf32> to vector<2x32xf32>
    %234 = arith.mulf %229, %233 : vector<2x32xf32>
    %235 = vector.broadcast %212 : vector<1x32xf32> to vector<2x32xf32>
    %236 = arith.mulf %234, %235 : vector<2x32xf32>
    %237 = vector.broadcast %214 : vector<1x32xf32> to vector<2x32xf32>
    %238 = arith.addf %236, %237 : vector<2x32xf32>
    %239 = arith.truncf %238 : vector<2x32xf32> to vector<2x32xbf16>
    %c1_106 = arith.constant 1 : index
    %c0_107 = arith.constant 0 : index
    %c0_108 = arith.constant 0 : index
    %240 = vector.load %arg7[%c1_106, %c0_107, %c0_108] : memref<8x32x32xbf16, #tpu.memory_space<vmem>>, vector<1x32x32xbf16>
    %241 = vector.shape_cast %240 : vector<1x32x32xbf16> to vector<32x32xbf16>
    %cst_109 = arith.constant dense<0.000000e+00> : vector<2x32xf32>
    %242 = tpu.matmul %239, %241, %cst_109 {dimension_numbers = #tpu.dot_dimension_numbers<[1], [0], [0], [1], [0, 0, 1, 1], [], []>} : vector<2x32xbf16>, vector<32x32xbf16>, vector<2x32xf32> -> vector<2x32xf32>
    %c1_110 = arith.constant 1 : index
    %c0_111 = arith.constant 0 : index
    %c0_112 = arith.constant 0 : index
    %243 = vector.load %arg8[%c1_110, %c0_111, %c0_112] : memref<8x1x32xf32, #tpu.memory_space<vmem>>, vector<1x1x32xf32>
    %244 = vector.shape_cast %243 : vector<1x1x32xf32> to vector<1x32xf32>
    %245 = vector.broadcast %244 : vector<1x32xf32> to vector<2x32xf32>
    %246 = arith.addf %242, %245 : vector<2x32xf32>
    %cst_113 = arith.constant 5.000000e-01 : f32
    %247 = vector.broadcast %cst_113 : f32 to vector<2x32xf32>
    %248 = arith.mulf %247, %246 : vector<2x32xf32>
    %cst_114 = arith.constant 0.707106769 : f32
    %249 = vector.broadcast %cst_114 : f32 to vector<2x32xf32>
    %250 = arith.mulf %246, %249 : vector<2x32xf32>
    %cst_115 = arith.constant 0.000000e+00 : f32
    %251 = vector.broadcast %cst_115 : f32 to vector<2x32xf32>
    %252 = arith.cmpf oge, %250, %251 : vector<2x32xf32>
    %cst_116 = arith.constant 1.000000e+00 : f32
    %cst_117 = arith.constant -1.000000e+00 : f32
    %253 = vector.broadcast %cst_116 : f32 to vector<2x32xf32>
    %254 = vector.broadcast %cst_117 : f32 to vector<2x32xf32>
    %255 = arith.select %252, %253, %254 : vector<2x32xi1>, vector<2x32xf32>
    %256 = math.absf %250 : vector<2x32xf32>
    %cst_118 = arith.constant 0.327591091 : f32
    %257 = vector.broadcast %cst_118 : f32 to vector<2x32xf32>
    %258 = arith.mulf %257, %256 : vector<2x32xf32>
    %cst_119 = arith.constant 1.000000e+00 : f32
    %259 = vector.broadcast %cst_119 : f32 to vector<2x32xf32>
    %260 = arith.addf %259, %258 : vector<2x32xf32>
    %cst_120 = arith.constant 1.000000e+00 : f32
    %261 = vector.broadcast %cst_120 : f32 to vector<2x32xf32>
    %262 = arith.divf %261, %260 : vector<2x32xf32>
    %cst_121 = arith.constant 1.06140542 : f32
    %263 = vector.broadcast %cst_121 : f32 to vector<2x32xf32>
    %264 = arith.mulf %263, %262 : vector<2x32xf32>
    %cst_122 = arith.constant -1.45315206 : f32
    %265 = vector.broadcast %cst_122 : f32 to vector<2x32xf32>
    %266 = arith.addf %264, %265 : vector<2x32xf32>
    %267 = arith.mulf %266, %262 : vector<2x32xf32>
    %cst_123 = arith.constant 1.42141378 : f32
    %268 = vector.broadcast %cst_123 : f32 to vector<2x32xf32>
    %269 = arith.addf %267, %268 : vector<2x32xf32>
    %270 = arith.mulf %269, %262 : vector<2x32xf32>
    %cst_124 = arith.constant -0.284496725 : f32
    %271 = vector.broadcast %cst_124 : f32 to vector<2x32xf32>
    %272 = arith.addf %270, %271 : vector<2x32xf32>
    %273 = arith.mulf %272, %262 : vector<2x32xf32>
    %cst_125 = arith.constant 0.254829586 : f32
    %274 = vector.broadcast %cst_125 : f32 to vector<2x32xf32>
    %275 = arith.addf %273, %274 : vector<2x32xf32>
    %276 = arith.mulf %275, %262 : vector<2x32xf32>
    %cst_126 = arith.constant 0.000000e+00 : f32
    %277 = vector.broadcast %cst_126 : f32 to vector<2x32xf32>
    %278 = arith.subf %277, %256 : vector<2x32xf32>
    %279 = arith.mulf %278, %256 : vector<2x32xf32>
    %280 = math.exp %279 : vector<2x32xf32>
    %281 = arith.mulf %276, %280 : vector<2x32xf32>
    %cst_127 = arith.constant 1.000000e+00 : f32
    %282 = vector.broadcast %cst_127 : f32 to vector<2x32xf32>
    %283 = arith.subf %282, %281 : vector<2x32xf32>
    %284 = arith.mulf %255, %283 : vector<2x32xf32>
    %cst_128 = arith.constant 1.000000e+00 : f32
    %285 = vector.broadcast %cst_128 : f32 to vector<2x32xf32>
    %286 = arith.addf %285, %284 : vector<2x32xf32>
    %287 = arith.mulf %248, %286 : vector<2x32xf32>
    %c1_129 = arith.constant 1 : index
    %c0_130 = arith.constant 0 : index
    %c0_131 = arith.constant 0 : index
    %288 = vector.load %arg9[%c1_129, %c0_130, %c0_131] : memref<8x1x32xf32, #tpu.memory_space<vmem>>, vector<1x1x32xf32>
    %289 = vector.shape_cast %288 : vector<1x1x32xf32> to vector<1x32xf32>
    %c1_132 = arith.constant 1 : index
    %c0_133 = arith.constant 0 : index
    %c0_134 = arith.constant 0 : index
    %290 = vector.load %arg10[%c1_132, %c0_133, %c0_134] : memref<8x1x32xf32, #tpu.memory_space<vmem>>, vector<1x1x32xf32>
    %291 = vector.shape_cast %290 : vector<1x1x32xf32> to vector<1x32xf32>
    %cst_135 = arith.constant dense<0.000000e+00> : vector<2xf32>
    %292 = vector.multi_reduction <add>, %287, %cst_135 [1] : vector<2x32xf32> to vector<2xf32>
    %293 = vector.shape_cast %292 : vector<2xf32> to vector<2x1xf32>
    %cst_136 = arith.constant 3.200000e+01 : f32
    %294 = vector.broadcast %cst_136 : f32 to vector<2x1xf32>
    %295 = arith.divf %293, %294 : vector<2x1xf32>
    %296 = vector.broadcast %295 : vector<2x1xf32> to vector<2x32xf32>
    %297 = arith.subf %287, %296 : vector<2x32xf32>
    %298 = vector.broadcast %295 : vector<2x1xf32> to vector<2x32xf32>
    %299 = arith.subf %287, %298 : vector<2x32xf32>
    %300 = arith.mulf %297, %299 : vector<2x32xf32>
    %cst_137 = arith.constant dense<0.000000e+00> : vector<2xf32>
    %301 = vector.multi_reduction <add>, %300, %cst_137 [1] : vector<2x32xf32> to vector<2xf32>
    %302 = vector.shape_cast %301 : vector<2xf32> to vector<2x1xf32>
    %cst_138 = arith.constant 3.200000e+01 : f32
    %303 = vector.broadcast %cst_138 : f32 to vector<2x1xf32>
    %304 = arith.divf %302, %303 : vector<2x1xf32>
    %305 = vector.broadcast %295 : vector<2x1xf32> to vector<2x32xf32>
    %306 = arith.subf %287, %305 : vector<2x32xf32>
    %cst_139 = arith.constant 9.99999974E-6 : f32
    %307 = vector.broadcast %cst_139 : f32 to vector<2x1xf32>
    %308 = arith.addf %304, %307 : vector<2x1xf32>
    %309 = math.rsqrt %308 : vector<2x1xf32>
    %310 = vector.broadcast %309 : vector<2x1xf32> to vector<2x32xf32>
    %311 = arith.mulf %306, %310 : vector<2x32xf32>
    %312 = vector.broadcast %289 : vector<1x32xf32> to vector<2x32xf32>
    %313 = arith.mulf %311, %312 : vector<2x32xf32>
    %314 = vector.broadcast %291 : vector<1x32xf32> to vector<2x32xf32>
    %315 = arith.addf %313, %314 : vector<2x32xf32>
    %316 = arith.addf %315, %161 : vector<2x32xf32>
    %317 = arith.truncf %316 : vector<2x32xf32> to vector<2x32xbf16>
    %c2 = arith.constant 2 : index
    %c0_140 = arith.constant 0 : index
    %c0_141 = arith.constant 0 : index
    %318 = vector.load %arg3[%c2, %c0_140, %c0_141] : memref<8x32x32xbf16, #tpu.memory_space<vmem>>, vector<1x32x32xbf16>
    %319 = vector.shape_cast %318 : vector<1x32x32xbf16> to vector<32x32xbf16>
    %cst_142 = arith.constant dense<0.000000e+00> : vector<2x32xf32>
    %320 = tpu.matmul %317, %319, %cst_142 {dimension_numbers = #tpu.dot_dimension_numbers<[1], [0], [0], [1], [0, 0, 1, 1], [], []>} : vector<2x32xbf16>, vector<32x32xbf16>, vector<2x32xf32> -> vector<2x32xf32>
    %c2_143 = arith.constant 2 : index
    %c0_144 = arith.constant 0 : index
    %c0_145 = arith.constant 0 : index
    %321 = vector.load %arg4[%c2_143, %c0_144, %c0_145] : memref<8x1x32xf32, #tpu.memory_space<vmem>>, vector<1x1x32xf32>
    %322 = vector.shape_cast %321 : vector<1x1x32xf32> to vector<1x32xf32>
    %323 = vector.broadcast %322 : vector<1x32xf32> to vector<2x32xf32>
    %324 = arith.addf %320, %323 : vector<2x32xf32>
    %cst_146 = arith.constant 5.000000e-01 : f32
    %325 = vector.broadcast %cst_146 : f32 to vector<2x32xf32>
    %326 = arith.mulf %325, %324 : vector<2x32xf32>
    %cst_147 = arith.constant 0.707106769 : f32
    %327 = vector.broadcast %cst_147 : f32 to vector<2x32xf32>
    %328 = arith.mulf %324, %327 : vector<2x32xf32>
    %cst_148 = arith.constant 0.000000e+00 : f32
    %329 = vector.broadcast %cst_148 : f32 to vector<2x32xf32>
    %330 = arith.cmpf oge, %328, %329 : vector<2x32xf32>
    %cst_149 = arith.constant 1.000000e+00 : f32
    %cst_150 = arith.constant -1.000000e+00 : f32
    %331 = vector.broadcast %cst_149 : f32 to vector<2x32xf32>
    %332 = vector.broadcast %cst_150 : f32 to vector<2x32xf32>
    %333 = arith.select %330, %331, %332 : vector<2x32xi1>, vector<2x32xf32>
    %334 = math.absf %328 : vector<2x32xf32>
    %cst_151 = arith.constant 0.327591091 : f32
    %335 = vector.broadcast %cst_151 : f32 to vector<2x32xf32>
    %336 = arith.mulf %335, %334 : vector<2x32xf32>
    %cst_152 = arith.constant 1.000000e+00 : f32
    %337 = vector.broadcast %cst_152 : f32 to vector<2x32xf32>
    %338 = arith.addf %337, %336 : vector<2x32xf32>
    %cst_153 = arith.constant 1.000000e+00 : f32
    %339 = vector.broadcast %cst_153 : f32 to vector<2x32xf32>
    %340 = arith.divf %339, %338 : vector<2x32xf32>
    %cst_154 = arith.constant 1.06140542 : f32
    %341 = vector.broadcast %cst_154 : f32 to vector<2x32xf32>
    %342 = arith.mulf %341, %340 : vector<2x32xf32>
    %cst_155 = arith.constant -1.45315206 : f32
    %343 = vector.broadcast %cst_155 : f32 to vector<2x32xf32>
    %344 = arith.addf %342, %343 : vector<2x32xf32>
    %345 = arith.mulf %344, %340 : vector<2x32xf32>
    %cst_156 = arith.constant 1.42141378 : f32
    %346 = vector.broadcast %cst_156 : f32 to vector<2x32xf32>
    %347 = arith.addf %345, %346 : vector<2x32xf32>
    %348 = arith.mulf %347, %340 : vector<2x32xf32>
    %cst_157 = arith.constant -0.284496725 : f32
    %349 = vector.broadcast %cst_157 : f32 to vector<2x32xf32>
    %350 = arith.addf %348, %349 : vector<2x32xf32>
    %351 = arith.mulf %350, %340 : vector<2x32xf32>
    %cst_158 = arith.constant 0.254829586 : f32
    %352 = vector.broadcast %cst_158 : f32 to vector<2x32xf32>
    %353 = arith.addf %351, %352 : vector<2x32xf32>
    %354 = arith.mulf %353, %340 : vector<2x32xf32>
    %cst_159 = arith.constant 0.000000e+00 : f32
    %355 = vector.broadcast %cst_159 : f32 to vector<2x32xf32>
    %356 = arith.subf %355, %334 : vector<2x32xf32>
    %357 = arith.mulf %356, %334 : vector<2x32xf32>
    %358 = math.exp %357 : vector<2x32xf32>
    %359 = arith.mulf %354, %358 : vector<2x32xf32>
    %cst_160 = arith.constant 1.000000e+00 : f32
    %360 = vector.broadcast %cst_160 : f32 to vector<2x32xf32>
    %361 = arith.subf %360, %359 : vector<2x32xf32>
    %362 = arith.mulf %333, %361 : vector<2x32xf32>
    %cst_161 = arith.constant 1.000000e+00 : f32
    %363 = vector.broadcast %cst_161 : f32 to vector<2x32xf32>
    %364 = arith.addf %363, %362 : vector<2x32xf32>
    %365 = arith.mulf %326, %364 : vector<2x32xf32>
    %c2_162 = arith.constant 2 : index
    %c0_163 = arith.constant 0 : index
    %c0_164 = arith.constant 0 : index
    %366 = vector.load %arg5[%c2_162, %c0_163, %c0_164] : memref<8x1x32xf32, #tpu.memory_space<vmem>>, vector<1x1x32xf32>
    %367 = vector.shape_cast %366 : vector<1x1x32xf32> to vector<1x32xf32>
    %c2_165 = arith.constant 2 : index
    %c0_166 = arith.constant 0 : index
    %c0_167 = arith.constant 0 : index
    %368 = vector.load %arg6[%c2_165, %c0_166, %c0_167] : memref<8x1x32xf32, #tpu.memory_space<vmem>>, vector<1x1x32xf32>
    %369 = vector.shape_cast %368 : vector<1x1x32xf32> to vector<1x32xf32>
    %cst_168 = arith.constant dense<0.000000e+00> : vector<2xf32>
    %370 = vector.multi_reduction <add>, %365, %cst_168 [1] : vector<2x32xf32> to vector<2xf32>
    %371 = vector.shape_cast %370 : vector<2xf32> to vector<2x1xf32>
    %cst_169 = arith.constant 3.200000e+01 : f32
    %372 = vector.broadcast %cst_169 : f32 to vector<2x1xf32>
    %373 = arith.divf %371, %372 : vector<2x1xf32>
    %374 = vector.broadcast %373 : vector<2x1xf32> to vector<2x32xf32>
    %375 = arith.subf %365, %374 : vector<2x32xf32>
    %376 = vector.broadcast %373 : vector<2x1xf32> to vector<2x32xf32>
    %377 = arith.subf %365, %376 : vector<2x32xf32>
    %378 = arith.mulf %375, %377 : vector<2x32xf32>
    %cst_170 = arith.constant dense<0.000000e+00> : vector<2xf32>
    %379 = vector.multi_reduction <add>, %378, %cst_170 [1] : vector<2x32xf32> to vector<2xf32>
    %380 = vector.shape_cast %379 : vector<2xf32> to vector<2x1xf32>
    %cst_171 = arith.constant 3.200000e+01 : f32
    %381 = vector.broadcast %cst_171 : f32 to vector<2x1xf32>
    %382 = arith.divf %380, %381 : vector<2x1xf32>
    %383 = vector.broadcast %373 : vector<2x1xf32> to vector<2x32xf32>
    %384 = arith.subf %365, %383 : vector<2x32xf32>
    %cst_172 = arith.constant 9.99999974E-6 : f32
    %385 = vector.broadcast %cst_172 : f32 to vector<2x1xf32>
    %386 = arith.addf %382, %385 : vector<2x1xf32>
    %387 = math.rsqrt %386 : vector<2x1xf32>
    %388 = vector.broadcast %387 : vector<2x1xf32> to vector<2x32xf32>
    %389 = arith.mulf %384, %388 : vector<2x32xf32>
    %390 = vector.broadcast %367 : vector<1x32xf32> to vector<2x32xf32>
    %391 = arith.mulf %389, %390 : vector<2x32xf32>
    %392 = vector.broadcast %369 : vector<1x32xf32> to vector<2x32xf32>
    %393 = arith.addf %391, %392 : vector<2x32xf32>
    %394 = arith.truncf %393 : vector<2x32xf32> to vector<2x32xbf16>
    %c2_173 = arith.constant 2 : index
    %c0_174 = arith.constant 0 : index
    %c0_175 = arith.constant 0 : index
    %395 = vector.load %arg7[%c2_173, %c0_174, %c0_175] : memref<8x32x32xbf16, #tpu.memory_space<vmem>>, vector<1x32x32xbf16>
    %396 = vector.shape_cast %395 : vector<1x32x32xbf16> to vector<32x32xbf16>
    %cst_176 = arith.constant dense<0.000000e+00> : vector<2x32xf32>
    %397 = tpu.matmul %394, %396, %cst_176 {dimension_numbers = #tpu.dot_dimension_numbers<[1], [0], [0], [1], [0, 0, 1, 1], [], []>} : vector<2x32xbf16>, vector<32x32xbf16>, vector<2x32xf32> -> vector<2x32xf32>
    %c2_177 = arith.constant 2 : index
    %c0_178 = arith.constant 0 : index
    %c0_179 = arith.constant 0 : index
    %398 = vector.load %arg8[%c2_177, %c0_178, %c0_179] : memref<8x1x32xf32, #tpu.memory_space<vmem>>, vector<1x1x32xf32>
    %399 = vector.shape_cast %398 : vector<1x1x32xf32> to vector<1x32xf32>
    %400 = vector.broadcast %399 : vector<1x32xf32> to vector<2x32xf32>
    %401 = arith.addf %397, %400 : vector<2x32xf32>
    %cst_180 = arith.constant 5.000000e-01 : f32
    %402 = vector.broadcast %cst_180 : f32 to vector<2x32xf32>
    %403 = arith.mulf %402, %401 : vector<2x32xf32>
    %cst_181 = arith.constant 0.707106769 : f32
    %404 = vector.broadcast %cst_181 : f32 to vector<2x32xf32>
    %405 = arith.mulf %401, %404 : vector<2x32xf32>
    %cst_182 = arith.constant 0.000000e+00 : f32
    %406 = vector.broadcast %cst_182 : f32 to vector<2x32xf32>
    %407 = arith.cmpf oge, %405, %406 : vector<2x32xf32>
    %cst_183 = arith.constant 1.000000e+00 : f32
    %cst_184 = arith.constant -1.000000e+00 : f32
    %408 = vector.broadcast %cst_183 : f32 to vector<2x32xf32>
    %409 = vector.broadcast %cst_184 : f32 to vector<2x32xf32>
    %410 = arith.select %407, %408, %409 : vector<2x32xi1>, vector<2x32xf32>
    %411 = math.absf %405 : vector<2x32xf32>
    %cst_185 = arith.constant 0.327591091 : f32
    %412 = vector.broadcast %cst_185 : f32 to vector<2x32xf32>
    %413 = arith.mulf %412, %411 : vector<2x32xf32>
    %cst_186 = arith.constant 1.000000e+00 : f32
    %414 = vector.broadcast %cst_186 : f32 to vector<2x32xf32>
    %415 = arith.addf %414, %413 : vector<2x32xf32>
    %cst_187 = arith.constant 1.000000e+00 : f32
    %416 = vector.broadcast %cst_187 : f32 to vector<2x32xf32>
    %417 = arith.divf %416, %415 : vector<2x32xf32>
    %cst_188 = arith.constant 1.06140542 : f32
    %418 = vector.broadcast %cst_188 : f32 to vector<2x32xf32>
    %419 = arith.mulf %418, %417 : vector<2x32xf32>
    %cst_189 = arith.constant -1.45315206 : f32
    %420 = vector.broadcast %cst_189 : f32 to vector<2x32xf32>
    %421 = arith.addf %419, %420 : vector<2x32xf32>
    %422 = arith.mulf %421, %417 : vector<2x32xf32>
    %cst_190 = arith.constant 1.42141378 : f32
    %423 = vector.broadcast %cst_190 : f32 to vector<2x32xf32>
    %424 = arith.addf %422, %423 : vector<2x32xf32>
    %425 = arith.mulf %424, %417 : vector<2x32xf32>
    %cst_191 = arith.constant -0.284496725 : f32
    %426 = vector.broadcast %cst_191 : f32 to vector<2x32xf32>
    %427 = arith.addf %425, %426 : vector<2x32xf32>
    %428 = arith.mulf %427, %417 : vector<2x32xf32>
    %cst_192 = arith.constant 0.254829586 : f32
    %429 = vector.broadcast %cst_192 : f32 to vector<2x32xf32>
    %430 = arith.addf %428, %429 : vector<2x32xf32>
    %431 = arith.mulf %430, %417 : vector<2x32xf32>
    %cst_193 = arith.constant 0.000000e+00 : f32
    %432 = vector.broadcast %cst_193 : f32 to vector<2x32xf32>
    %433 = arith.subf %432, %411 : vector<2x32xf32>
    %434 = arith.mulf %433, %411 : vector<2x32xf32>
    %435 = math.exp %434 : vector<2x32xf32>
    %436 = arith.mulf %431, %435 : vector<2x32xf32>
    %cst_194 = arith.constant 1.000000e+00 : f32
    %437 = vector.broadcast %cst_194 : f32 to vector<2x32xf32>
    %438 = arith.subf %437, %436 : vector<2x32xf32>
    %439 = arith.mulf %410, %438 : vector<2x32xf32>
    %cst_195 = arith.constant 1.000000e+00 : f32
    %440 = vector.broadcast %cst_195 : f32 to vector<2x32xf32>
    %441 = arith.addf %440, %439 : vector<2x32xf32>
    %442 = arith.mulf %403, %441 : vector<2x32xf32>
    %c2_196 = arith.constant 2 : index
    %c0_197 = arith.constant 0 : index
    %c0_198 = arith.constant 0 : index
    %443 = vector.load %arg9[%c2_196, %c0_197, %c0_198] : memref<8x1x32xf32, #tpu.memory_space<vmem>>, vector<1x1x32xf32>
    %444 = vector.shape_cast %443 : vector<1x1x32xf32> to vector<1x32xf32>
    %c2_199 = arith.constant 2 : index
    %c0_200 = arith.constant 0 : index
    %c0_201 = arith.constant 0 : index
    %445 = vector.load %arg10[%c2_199, %c0_200, %c0_201] : memref<8x1x32xf32, #tpu.memory_space<vmem>>, vector<1x1x32xf32>
    %446 = vector.shape_cast %445 : vector<1x1x32xf32> to vector<1x32xf32>
    %cst_202 = arith.constant dense<0.000000e+00> : vector<2xf32>
    %447 = vector.multi_reduction <add>, %442, %cst_202 [1] : vector<2x32xf32> to vector<2xf32>
    %448 = vector.shape_cast %447 : vector<2xf32> to vector<2x1xf32>
    %cst_203 = arith.constant 3.200000e+01 : f32
    %449 = vector.broadcast %cst_203 : f32 to vector<2x1xf32>
    %450 = arith.divf %448, %449 : vector<2x1xf32>
    %451 = vector.broadcast %450 : vector<2x1xf32> to vector<2x32xf32>
    %452 = arith.subf %442, %451 : vector<2x32xf32>
    %453 = vector.broadcast %450 : vector<2x1xf32> to vector<2x32xf32>
    %454 = arith.subf %442, %453 : vector<2x32xf32>
    %455 = arith.mulf %452, %454 : vector<2x32xf32>
    %cst_204 = arith.constant dense<0.000000e+00> : vector<2xf32>
    %456 = vector.multi_reduction <add>, %455, %cst_204 [1] : vector<2x32xf32> to vector<2xf32>
    %457 = vector.shape_cast %456 : vector<2xf32> to vector<2x1xf32>
    %cst_205 = arith.constant 3.200000e+01 : f32
    %458 = vector.broadcast %cst_205 : f32 to vector<2x1xf32>
    %459 = arith.divf %457, %458 : vector<2x1xf32>
    %460 = vector.broadcast %450 : vector<2x1xf32> to vector<2x32xf32>
    %461 = arith.subf %442, %460 : vector<2x32xf32>
    %cst_206 = arith.constant 9.99999974E-6 : f32
    %462 = vector.broadcast %cst_206 : f32 to vector<2x1xf32>
    %463 = arith.addf %459, %462 : vector<2x1xf32>
    %464 = math.rsqrt %463 : vector<2x1xf32>
    %465 = vector.broadcast %464 : vector<2x1xf32> to vector<2x32xf32>
    %466 = arith.mulf %461, %465 : vector<2x32xf32>
    %467 = vector.broadcast %444 : vector<1x32xf32> to vector<2x32xf32>
    %468 = arith.mulf %466, %467 : vector<2x32xf32>
    %469 = vector.broadcast %446 : vector<1x32xf32> to vector<2x32xf32>
    %470 = arith.addf %468, %469 : vector<2x32xf32>
    %471 = arith.addf %470, %316 : vector<2x32xf32>
    %472 = arith.truncf %471 : vector<2x32xf32> to vector<2x32xbf16>
    %c3 = arith.constant 3 : index
    %c0_207 = arith.constant 0 : index
    %c0_208 = arith.constant 0 : index
    %473 = vector.load %arg3[%c3, %c0_207, %c0_208] : memref<8x32x32xbf16, #tpu.memory_space<vmem>>, vector<1x32x32xbf16>
    %474 = vector.shape_cast %473 : vector<1x32x32xbf16> to vector<32x32xbf16>
    %cst_209 = arith.constant dense<0.000000e+00> : vector<2x32xf32>
    %475 = tpu.matmul %472, %474, %cst_209 {dimension_numbers = #tpu.dot_dimension_numbers<[1], [0], [0], [1], [0, 0, 1, 1], [], []>} : vector<2x32xbf16>, vector<32x32xbf16>, vector<2x32xf32> -> vector<2x32xf32>
    %c3_210 = arith.constant 3 : index
    %c0_211 = arith.constant 0 : index
    %c0_212 = arith.constant 0 : index
    %476 = vector.load %arg4[%c3_210, %c0_211, %c0_212] : memref<8x1x32xf32, #tpu.memory_space<vmem>>, vector<1x1x32xf32>
    %477 = vector.shape_cast %476 : vector<1x1x32xf32> to vector<1x32xf32>
    %478 = vector.broadcast %477 : vector<1x32xf32> to vector<2x32xf32>
    %479 = arith.addf %475, %478 : vector<2x32xf32>
    %cst_213 = arith.constant 5.000000e-01 : f32
    %480 = vector.broadcast %cst_213 : f32 to vector<2x32xf32>
    %481 = arith.mulf %480, %479 : vector<2x32xf32>
    %cst_214 = arith.constant 0.707106769 : f32
    %482 = vector.broadcast %cst_214 : f32 to vector<2x32xf32>
    %483 = arith.mulf %479, %482 : vector<2x32xf32>
    %cst_215 = arith.constant 0.000000e+00 : f32
    %484 = vector.broadcast %cst_215 : f32 to vector<2x32xf32>
    %485 = arith.cmpf oge, %483, %484 : vector<2x32xf32>
    %cst_216 = arith.constant 1.000000e+00 : f32
    %cst_217 = arith.constant -1.000000e+00 : f32
    %486 = vector.broadcast %cst_216 : f32 to vector<2x32xf32>
    %487 = vector.broadcast %cst_217 : f32 to vector<2x32xf32>
    %488 = arith.select %485, %486, %487 : vector<2x32xi1>, vector<2x32xf32>
    %489 = math.absf %483 : vector<2x32xf32>
    %cst_218 = arith.constant 0.327591091 : f32
    %490 = vector.broadcast %cst_218 : f32 to vector<2x32xf32>
    %491 = arith.mulf %490, %489 : vector<2x32xf32>
    %cst_219 = arith.constant 1.000000e+00 : f32
    %492 = vector.broadcast %cst_219 : f32 to vector<2x32xf32>
    %493 = arith.addf %492, %491 : vector<2x32xf32>
    %cst_220 = arith.constant 1.000000e+00 : f32
    %494 = vector.broadcast %cst_220 : f32 to vector<2x32xf32>
    %495 = arith.divf %494, %493 : vector<2x32xf32>
    %cst_221 = arith.constant 1.06140542 : f32
    %496 = vector.broadcast %cst_221 : f32 to vector<2x32xf32>
    %497 = arith.mulf %496, %495 : vector<2x32xf32>
    %cst_222 = arith.constant -1.45315206 : f32
    %498 = vector.broadcast %cst_222 : f32 to vector<2x32xf32>
    %499 = arith.addf %497, %498 : vector<2x32xf32>
    %500 = arith.mulf %499, %495 : vector<2x32xf32>
    %cst_223 = arith.constant 1.42141378 : f32
    %501 = vector.broadcast %cst_223 : f32 to vector<2x32xf32>
    %502 = arith.addf %500, %501 : vector<2x32xf32>
    %503 = arith.mulf %502, %495 : vector<2x32xf32>
    %cst_224 = arith.constant -0.284496725 : f32
    %504 = vector.broadcast %cst_224 : f32 to vector<2x32xf32>
    %505 = arith.addf %503, %504 : vector<2x32xf32>
    %506 = arith.mulf %505, %495 : vector<2x32xf32>
    %cst_225 = arith.constant 0.254829586 : f32
    %507 = vector.broadcast %cst_225 : f32 to vector<2x32xf32>
    %508 = arith.addf %506, %507 : vector<2x32xf32>
    %509 = arith.mulf %508, %495 : vector<2x32xf32>
    %cst_226 = arith.constant 0.000000e+00 : f32
    %510 = vector.broadcast %cst_226 : f32 to vector<2x32xf32>
    %511 = arith.subf %510, %489 : vector<2x32xf32>
    %512 = arith.mulf %511, %489 : vector<2x32xf32>
    %513 = math.exp %512 : vector<2x32xf32>
    %514 = arith.mulf %509, %513 : vector<2x32xf32>
    %cst_227 = arith.constant 1.000000e+00 : f32
    %515 = vector.broadcast %cst_227 : f32 to vector<2x32xf32>
    %516 = arith.subf %515, %514 : vector<2x32xf32>
    %517 = arith.mulf %488, %516 : vector<2x32xf32>
    %cst_228 = arith.constant 1.000000e+00 : f32
    %518 = vector.broadcast %cst_228 : f32 to vector<2x32xf32>
    %519 = arith.addf %518, %517 : vector<2x32xf32>
    %520 = arith.mulf %481, %519 : vector<2x32xf32>
    %c3_229 = arith.constant 3 : index
    %c0_230 = arith.constant 0 : index
    %c0_231 = arith.constant 0 : index
    %521 = vector.load %arg5[%c3_229, %c0_230, %c0_231] : memref<8x1x32xf32, #tpu.memory_space<vmem>>, vector<1x1x32xf32>
    %522 = vector.shape_cast %521 : vector<1x1x32xf32> to vector<1x32xf32>
    %c3_232 = arith.constant 3 : index
    %c0_233 = arith.constant 0 : index
    %c0_234 = arith.constant 0 : index
    %523 = vector.load %arg6[%c3_232, %c0_233, %c0_234] : memref<8x1x32xf32, #tpu.memory_space<vmem>>, vector<1x1x32xf32>
    %524 = vector.shape_cast %523 : vector<1x1x32xf32> to vector<1x32xf32>
    %cst_235 = arith.constant dense<0.000000e+00> : vector<2xf32>
    %525 = vector.multi_reduction <add>, %520, %cst_235 [1] : vector<2x32xf32> to vector<2xf32>
    %526 = vector.shape_cast %525 : vector<2xf32> to vector<2x1xf32>
    %cst_236 = arith.constant 3.200000e+01 : f32
    %527 = vector.broadcast %cst_236 : f32 to vector<2x1xf32>
    %528 = arith.divf %526, %527 : vector<2x1xf32>
    %529 = vector.broadcast %528 : vector<2x1xf32> to vector<2x32xf32>
    %530 = arith.subf %520, %529 : vector<2x32xf32>
    %531 = vector.broadcast %528 : vector<2x1xf32> to vector<2x32xf32>
    %532 = arith.subf %520, %531 : vector<2x32xf32>
    %533 = arith.mulf %530, %532 : vector<2x32xf32>
    %cst_237 = arith.constant dense<0.000000e+00> : vector<2xf32>
    %534 = vector.multi_reduction <add>, %533, %cst_237 [1] : vector<2x32xf32> to vector<2xf32>
    %535 = vector.shape_cast %534 : vector<2xf32> to vector<2x1xf32>
    %cst_238 = arith.constant 3.200000e+01 : f32
    %536 = vector.broadcast %cst_238 : f32 to vector<2x1xf32>
    %537 = arith.divf %535, %536 : vector<2x1xf32>
    %538 = vector.broadcast %528 : vector<2x1xf32> to vector<2x32xf32>
    %539 = arith.subf %520, %538 : vector<2x32xf32>
    %cst_239 = arith.constant 9.99999974E-6 : f32
    %540 = vector.broadcast %cst_239 : f32 to vector<2x1xf32>
    %541 = arith.addf %537, %540 : vector<2x1xf32>
    %542 = math.rsqrt %541 : vector<2x1xf32>
    %543 = vector.broadcast %542 : vector<2x1xf32> to vector<2x32xf32>
    %544 = arith.mulf %539, %543 : vector<2x32xf32>
    %545 = vector.broadcast %522 : vector<1x32xf32> to vector<2x32xf32>
    %546 = arith.mulf %544, %545 : vector<2x32xf32>
    %547 = vector.broadcast %524 : vector<1x32xf32> to vector<2x32xf32>
    %548 = arith.addf %546, %547 : vector<2x32xf32>
    %549 = arith.truncf %548 : vector<2x32xf32> to vector<2x32xbf16>
    %c3_240 = arith.constant 3 : index
    %c0_241 = arith.constant 0 : index
    %c0_242 = arith.constant 0 : index
    %550 = vector.load %arg7[%c3_240, %c0_241, %c0_242] : memref<8x32x32xbf16, #tpu.memory_space<vmem>>, vector<1x32x32xbf16>
    %551 = vector.shape_cast %550 : vector<1x32x32xbf16> to vector<32x32xbf16>
    %cst_243 = arith.constant dense<0.000000e+00> : vector<2x32xf32>
    %552 = tpu.matmul %549, %551, %cst_243 {dimension_numbers = #tpu.dot_dimension_numbers<[1], [0], [0], [1], [0, 0, 1, 1], [], []>} : vector<2x32xbf16>, vector<32x32xbf16>, vector<2x32xf32> -> vector<2x32xf32>
    %c3_244 = arith.constant 3 : index
    %c0_245 = arith.constant 0 : index
    %c0_246 = arith.constant 0 : index
    %553 = vector.load %arg8[%c3_244, %c0_245, %c0_246] : memref<8x1x32xf32, #tpu.memory_space<vmem>>, vector<1x1x32xf32>
    %554 = vector.shape_cast %553 : vector<1x1x32xf32> to vector<1x32xf32>
    %555 = vector.broadcast %554 : vector<1x32xf32> to vector<2x32xf32>
    %556 = arith.addf %552, %555 : vector<2x32xf32>
    %cst_247 = arith.constant 5.000000e-01 : f32
    %557 = vector.broadcast %cst_247 : f32 to vector<2x32xf32>
    %558 = arith.mulf %557, %556 : vector<2x32xf32>
    %cst_248 = arith.constant 0.707106769 : f32
    %559 = vector.broadcast %cst_248 : f32 to vector<2x32xf32>
    %560 = arith.mulf %556, %559 : vector<2x32xf32>
    %cst_249 = arith.constant 0.000000e+00 : f32
    %561 = vector.broadcast %cst_249 : f32 to vector<2x32xf32>
    %562 = arith.cmpf oge, %560, %561 : vector<2x32xf32>
    %cst_250 = arith.constant 1.000000e+00 : f32
    %cst_251 = arith.constant -1.000000e+00 : f32
    %563 = vector.broadcast %cst_250 : f32 to vector<2x32xf32>
    %564 = vector.broadcast %cst_251 : f32 to vector<2x32xf32>
    %565 = arith.select %562, %563, %564 : vector<2x32xi1>, vector<2x32xf32>
    %566 = math.absf %560 : vector<2x32xf32>
    %cst_252 = arith.constant 0.327591091 : f32
    %567 = vector.broadcast %cst_252 : f32 to vector<2x32xf32>
    %568 = arith.mulf %567, %566 : vector<2x32xf32>
    %cst_253 = arith.constant 1.000000e+00 : f32
    %569 = vector.broadcast %cst_253 : f32 to vector<2x32xf32>
    %570 = arith.addf %569, %568 : vector<2x32xf32>
    %cst_254 = arith.constant 1.000000e+00 : f32
    %571 = vector.broadcast %cst_254 : f32 to vector<2x32xf32>
    %572 = arith.divf %571, %570 : vector<2x32xf32>
    %cst_255 = arith.constant 1.06140542 : f32
    %573 = vector.broadcast %cst_255 : f32 to vector<2x32xf32>
    %574 = arith.mulf %573, %572 : vector<2x32xf32>
    %cst_256 = arith.constant -1.45315206 : f32
    %575 = vector.broadcast %cst_256 : f32 to vector<2x32xf32>
    %576 = arith.addf %574, %575 : vector<2x32xf32>
    %577 = arith.mulf %576, %572 : vector<2x32xf32>
    %cst_257 = arith.constant 1.42141378 : f32
    %578 = vector.broadcast %cst_257 : f32 to vector<2x32xf32>
    %579 = arith.addf %577, %578 : vector<2x32xf32>
    %580 = arith.mulf %579, %572 : vector<2x32xf32>
    %cst_258 = arith.constant -0.284496725 : f32
    %581 = vector.broadcast %cst_258 : f32 to vector<2x32xf32>
    %582 = arith.addf %580, %581 : vector<2x32xf32>
    %583 = arith.mulf %582, %572 : vector<2x32xf32>
    %cst_259 = arith.constant 0.254829586 : f32
    %584 = vector.broadcast %cst_259 : f32 to vector<2x32xf32>
    %585 = arith.addf %583, %584 : vector<2x32xf32>
    %586 = arith.mulf %585, %572 : vector<2x32xf32>
    %cst_260 = arith.constant 0.000000e+00 : f32
    %587 = vector.broadcast %cst_260 : f32 to vector<2x32xf32>
    %588 = arith.subf %587, %566 : vector<2x32xf32>
    %589 = arith.mulf %588, %566 : vector<2x32xf32>
    %590 = math.exp %589 : vector<2x32xf32>
    %591 = arith.mulf %586, %590 : vector<2x32xf32>
    %cst_261 = arith.constant 1.000000e+00 : f32
    %592 = vector.broadcast %cst_261 : f32 to vector<2x32xf32>
    %593 = arith.subf %592, %591 : vector<2x32xf32>
    %594 = arith.mulf %565, %593 : vector<2x32xf32>
    %cst_262 = arith.constant 1.000000e+00 : f32
    %595 = vector.broadcast %cst_262 : f32 to vector<2x32xf32>
    %596 = arith.addf %595, %594 : vector<2x32xf32>
    %597 = arith.mulf %558, %596 : vector<2x32xf32>
    %c3_263 = arith.constant 3 : index
    %c0_264 = arith.constant 0 : index
    %c0_265 = arith.constant 0 : index
    %598 = vector.load %arg9[%c3_263, %c0_264, %c0_265] : memref<8x1x32xf32, #tpu.memory_space<vmem>>, vector<1x1x32xf32>
    %599 = vector.shape_cast %598 : vector<1x1x32xf32> to vector<1x32xf32>
    %c3_266 = arith.constant 3 : index
    %c0_267 = arith.constant 0 : index
    %c0_268 = arith.constant 0 : index
    %600 = vector.load %arg10[%c3_266, %c0_267, %c0_268] : memref<8x1x32xf32, #tpu.memory_space<vmem>>, vector<1x1x32xf32>
    %601 = vector.shape_cast %600 : vector<1x1x32xf32> to vector<1x32xf32>
    %cst_269 = arith.constant dense<0.000000e+00> : vector<2xf32>
    %602 = vector.multi_reduction <add>, %597, %cst_269 [1] : vector<2x32xf32> to vector<2xf32>
    %603 = vector.shape_cast %602 : vector<2xf32> to vector<2x1xf32>
    %cst_270 = arith.constant 3.200000e+01 : f32
    %604 = vector.broadcast %cst_270 : f32 to vector<2x1xf32>
    %605 = arith.divf %603, %604 : vector<2x1xf32>
    %606 = vector.broadcast %605 : vector<2x1xf32> to vector<2x32xf32>
    %607 = arith.subf %597, %606 : vector<2x32xf32>
    %608 = vector.broadcast %605 : vector<2x1xf32> to vector<2x32xf32>
    %609 = arith.subf %597, %608 : vector<2x32xf32>
    %610 = arith.mulf %607, %609 : vector<2x32xf32>
    %cst_271 = arith.constant dense<0.000000e+00> : vector<2xf32>
    %611 = vector.multi_reduction <add>, %610, %cst_271 [1] : vector<2x32xf32> to vector<2xf32>
    %612 = vector.shape_cast %611 : vector<2xf32> to vector<2x1xf32>
    %cst_272 = arith.constant 3.200000e+01 : f32
    %613 = vector.broadcast %cst_272 : f32 to vector<2x1xf32>
    %614 = arith.divf %612, %613 : vector<2x1xf32>
    %615 = vector.broadcast %605 : vector<2x1xf32> to vector<2x32xf32>
    %616 = arith.subf %597, %615 : vector<2x32xf32>
    %cst_273 = arith.constant 9.99999974E-6 : f32
    %617 = vector.broadcast %cst_273 : f32 to vector<2x1xf32>
    %618 = arith.addf %614, %617 : vector<2x1xf32>
    %619 = math.rsqrt %618 : vector<2x1xf32>
    %620 = vector.broadcast %619 : vector<2x1xf32> to vector<2x32xf32>
    %621 = arith.mulf %616, %620 : vector<2x32xf32>
    %622 = vector.broadcast %599 : vector<1x32xf32> to vector<2x32xf32>
    %623 = arith.mulf %621, %622 : vector<2x32xf32>
    %624 = vector.broadcast %601 : vector<1x32xf32> to vector<2x32xf32>
    %625 = arith.addf %623, %624 : vector<2x32xf32>
    %626 = arith.addf %625, %471 : vector<2x32xf32>
    %627 = arith.truncf %626 : vector<2x32xf32> to vector<2x32xbf16>
    %c4 = arith.constant 4 : index
    %c0_274 = arith.constant 0 : index
    %c0_275 = arith.constant 0 : index
    %628 = vector.load %arg3[%c4, %c0_274, %c0_275] : memref<8x32x32xbf16, #tpu.memory_space<vmem>>, vector<1x32x32xbf16>
    %629 = vector.shape_cast %628 : vector<1x32x32xbf16> to vector<32x32xbf16>
    %cst_276 = arith.constant dense<0.000000e+00> : vector<2x32xf32>
    %630 = tpu.matmul %627, %629, %cst_276 {dimension_numbers = #tpu.dot_dimension_numbers<[1], [0], [0], [1], [0, 0, 1, 1], [], []>} : vector<2x32xbf16>, vector<32x32xbf16>, vector<2x32xf32> -> vector<2x32xf32>
    %c4_277 = arith.constant 4 : index
    %c0_278 = arith.constant 0 : index
    %c0_279 = arith.constant 0 : index
    %631 = vector.load %arg4[%c4_277, %c0_278, %c0_279] : memref<8x1x32xf32, #tpu.memory_space<vmem>>, vector<1x1x32xf32>
    %632 = vector.shape_cast %631 : vector<1x1x32xf32> to vector<1x32xf32>
    %633 = vector.broadcast %632 : vector<1x32xf32> to vector<2x32xf32>
    %634 = arith.addf %630, %633 : vector<2x32xf32>
    %cst_280 = arith.constant 5.000000e-01 : f32
    %635 = vector.broadcast %cst_280 : f32 to vector<2x32xf32>
    %636 = arith.mulf %635, %634 : vector<2x32xf32>
    %cst_281 = arith.constant 0.707106769 : f32
    %637 = vector.broadcast %cst_281 : f32 to vector<2x32xf32>
    %638 = arith.mulf %634, %637 : vector<2x32xf32>
    %cst_282 = arith.constant 0.000000e+00 : f32
    %639 = vector.broadcast %cst_282 : f32 to vector<2x32xf32>
    %640 = arith.cmpf oge, %638, %639 : vector<2x32xf32>
    %cst_283 = arith.constant 1.000000e+00 : f32
    %cst_284 = arith.constant -1.000000e+00 : f32
    %641 = vector.broadcast %cst_283 : f32 to vector<2x32xf32>
    %642 = vector.broadcast %cst_284 : f32 to vector<2x32xf32>
    %643 = arith.select %640, %641, %642 : vector<2x32xi1>, vector<2x32xf32>
    %644 = math.absf %638 : vector<2x32xf32>
    %cst_285 = arith.constant 0.327591091 : f32
    %645 = vector.broadcast %cst_285 : f32 to vector<2x32xf32>
    %646 = arith.mulf %645, %644 : vector<2x32xf32>
    %cst_286 = arith.constant 1.000000e+00 : f32
    %647 = vector.broadcast %cst_286 : f32 to vector<2x32xf32>
    %648 = arith.addf %647, %646 : vector<2x32xf32>
    %cst_287 = arith.constant 1.000000e+00 : f32
    %649 = vector.broadcast %cst_287 : f32 to vector<2x32xf32>
    %650 = arith.divf %649, %648 : vector<2x32xf32>
    %cst_288 = arith.constant 1.06140542 : f32
    %651 = vector.broadcast %cst_288 : f32 to vector<2x32xf32>
    %652 = arith.mulf %651, %650 : vector<2x32xf32>
    %cst_289 = arith.constant -1.45315206 : f32
    %653 = vector.broadcast %cst_289 : f32 to vector<2x32xf32>
    %654 = arith.addf %652, %653 : vector<2x32xf32>
    %655 = arith.mulf %654, %650 : vector<2x32xf32>
    %cst_290 = arith.constant 1.42141378 : f32
    %656 = vector.broadcast %cst_290 : f32 to vector<2x32xf32>
    %657 = arith.addf %655, %656 : vector<2x32xf32>
    %658 = arith.mulf %657, %650 : vector<2x32xf32>
    %cst_291 = arith.constant -0.284496725 : f32
    %659 = vector.broadcast %cst_291 : f32 to vector<2x32xf32>
    %660 = arith.addf %658, %659 : vector<2x32xf32>
    %661 = arith.mulf %660, %650 : vector<2x32xf32>
    %cst_292 = arith.constant 0.254829586 : f32
    %662 = vector.broadcast %cst_292 : f32 to vector<2x32xf32>
    %663 = arith.addf %661, %662 : vector<2x32xf32>
    %664 = arith.mulf %663, %650 : vector<2x32xf32>
    %cst_293 = arith.constant 0.000000e+00 : f32
    %665 = vector.broadcast %cst_293 : f32 to vector<2x32xf32>
    %666 = arith.subf %665, %644 : vector<2x32xf32>
    %667 = arith.mulf %666, %644 : vector<2x32xf32>
    %668 = math.exp %667 : vector<2x32xf32>
    %669 = arith.mulf %664, %668 : vector<2x32xf32>
    %cst_294 = arith.constant 1.000000e+00 : f32
    %670 = vector.broadcast %cst_294 : f32 to vector<2x32xf32>
    %671 = arith.subf %670, %669 : vector<2x32xf32>
    %672 = arith.mulf %643, %671 : vector<2x32xf32>
    %cst_295 = arith.constant 1.000000e+00 : f32
    %673 = vector.broadcast %cst_295 : f32 to vector<2x32xf32>
    %674 = arith.addf %673, %672 : vector<2x32xf32>
    %675 = arith.mulf %636, %674 : vector<2x32xf32>
    %c4_296 = arith.constant 4 : index
    %c0_297 = arith.constant 0 : index
    %c0_298 = arith.constant 0 : index
    %676 = vector.load %arg5[%c4_296, %c0_297, %c0_298] : memref<8x1x32xf32, #tpu.memory_space<vmem>>, vector<1x1x32xf32>
    %677 = vector.shape_cast %676 : vector<1x1x32xf32> to vector<1x32xf32>
    %c4_299 = arith.constant 4 : index
    %c0_300 = arith.constant 0 : index
    %c0_301 = arith.constant 0 : index
    %678 = vector.load %arg6[%c4_299, %c0_300, %c0_301] : memref<8x1x32xf32, #tpu.memory_space<vmem>>, vector<1x1x32xf32>
    %679 = vector.shape_cast %678 : vector<1x1x32xf32> to vector<1x32xf32>
    %cst_302 = arith.constant dense<0.000000e+00> : vector<2xf32>
    %680 = vector.multi_reduction <add>, %675, %cst_302 [1] : vector<2x32xf32> to vector<2xf32>
    %681 = vector.shape_cast %680 : vector<2xf32> to vector<2x1xf32>
    %cst_303 = arith.constant 3.200000e+01 : f32
    %682 = vector.broadcast %cst_303 : f32 to vector<2x1xf32>
    %683 = arith.divf %681, %682 : vector<2x1xf32>
    %684 = vector.broadcast %683 : vector<2x1xf32> to vector<2x32xf32>
    %685 = arith.subf %675, %684 : vector<2x32xf32>
    %686 = vector.broadcast %683 : vector<2x1xf32> to vector<2x32xf32>
    %687 = arith.subf %675, %686 : vector<2x32xf32>
    %688 = arith.mulf %685, %687 : vector<2x32xf32>
    %cst_304 = arith.constant dense<0.000000e+00> : vector<2xf32>
    %689 = vector.multi_reduction <add>, %688, %cst_304 [1] : vector<2x32xf32> to vector<2xf32>
    %690 = vector.shape_cast %689 : vector<2xf32> to vector<2x1xf32>
    %cst_305 = arith.constant 3.200000e+01 : f32
    %691 = vector.broadcast %cst_305 : f32 to vector<2x1xf32>
    %692 = arith.divf %690, %691 : vector<2x1xf32>
    %693 = vector.broadcast %683 : vector<2x1xf32> to vector<2x32xf32>
    %694 = arith.subf %675, %693 : vector<2x32xf32>
    %cst_306 = arith.constant 9.99999974E-6 : f32
    %695 = vector.broadcast %cst_306 : f32 to vector<2x1xf32>
    %696 = arith.addf %692, %695 : vector<2x1xf32>
    %697 = math.rsqrt %696 : vector<2x1xf32>
    %698 = vector.broadcast %697 : vector<2x1xf32> to vector<2x32xf32>
    %699 = arith.mulf %694, %698 : vector<2x32xf32>
    %700 = vector.broadcast %677 : vector<1x32xf32> to vector<2x32xf32>
    %701 = arith.mulf %699, %700 : vector<2x32xf32>
    %702 = vector.broadcast %679 : vector<1x32xf32> to vector<2x32xf32>
    %703 = arith.addf %701, %702 : vector<2x32xf32>
    %704 = arith.truncf %703 : vector<2x32xf32> to vector<2x32xbf16>
    %c4_307 = arith.constant 4 : index
    %c0_308 = arith.constant 0 : index
    %c0_309 = arith.constant 0 : index
    %705 = vector.load %arg7[%c4_307, %c0_308, %c0_309] : memref<8x32x32xbf16, #tpu.memory_space<vmem>>, vector<1x32x32xbf16>
    %706 = vector.shape_cast %705 : vector<1x32x32xbf16> to vector<32x32xbf16>
    %cst_310 = arith.constant dense<0.000000e+00> : vector<2x32xf32>
    %707 = tpu.matmul %704, %706, %cst_310 {dimension_numbers = #tpu.dot_dimension_numbers<[1], [0], [0], [1], [0, 0, 1, 1], [], []>} : vector<2x32xbf16>, vector<32x32xbf16>, vector<2x32xf32> -> vector<2x32xf32>
    %c4_311 = arith.constant 4 : index
    %c0_312 = arith.constant 0 : index
    %c0_313 = arith.constant 0 : index
    %708 = vector.load %arg8[%c4_311, %c0_312, %c0_313] : memref<8x1x32xf32, #tpu.memory_space<vmem>>, vector<1x1x32xf32>
    %709 = vector.shape_cast %708 : vector<1x1x32xf32> to vector<1x32xf32>
    %710 = vector.broadcast %709 : vector<1x32xf32> to vector<2x32xf32>
    %711 = arith.addf %707, %710 : vector<2x32xf32>
    %cst_314 = arith.constant 5.000000e-01 : f32
    %712 = vector.broadcast %cst_314 : f32 to vector<2x32xf32>
    %713 = arith.mulf %712, %711 : vector<2x32xf32>
    %cst_315 = arith.constant 0.707106769 : f32
    %714 = vector.broadcast %cst_315 : f32 to vector<2x32xf32>
    %715 = arith.mulf %711, %714 : vector<2x32xf32>
    %cst_316 = arith.constant 0.000000e+00 : f32
    %716 = vector.broadcast %cst_316 : f32 to vector<2x32xf32>
    %717 = arith.cmpf oge, %715, %716 : vector<2x32xf32>
    %cst_317 = arith.constant 1.000000e+00 : f32
    %cst_318 = arith.constant -1.000000e+00 : f32
    %718 = vector.broadcast %cst_317 : f32 to vector<2x32xf32>
    %719 = vector.broadcast %cst_318 : f32 to vector<2x32xf32>
    %720 = arith.select %717, %718, %719 : vector<2x32xi1>, vector<2x32xf32>
    %721 = math.absf %715 : vector<2x32xf32>
    %cst_319 = arith.constant 0.327591091 : f32
    %722 = vector.broadcast %cst_319 : f32 to vector<2x32xf32>
    %723 = arith.mulf %722, %721 : vector<2x32xf32>
    %cst_320 = arith.constant 1.000000e+00 : f32
    %724 = vector.broadcast %cst_320 : f32 to vector<2x32xf32>
    %725 = arith.addf %724, %723 : vector<2x32xf32>
    %cst_321 = arith.constant 1.000000e+00 : f32
    %726 = vector.broadcast %cst_321 : f32 to vector<2x32xf32>
    %727 = arith.divf %726, %725 : vector<2x32xf32>
    %cst_322 = arith.constant 1.06140542 : f32
    %728 = vector.broadcast %cst_322 : f32 to vector<2x32xf32>
    %729 = arith.mulf %728, %727 : vector<2x32xf32>
    %cst_323 = arith.constant -1.45315206 : f32
    %730 = vector.broadcast %cst_323 : f32 to vector<2x32xf32>
    %731 = arith.addf %729, %730 : vector<2x32xf32>
    %732 = arith.mulf %731, %727 : vector<2x32xf32>
    %cst_324 = arith.constant 1.42141378 : f32
    %733 = vector.broadcast %cst_324 : f32 to vector<2x32xf32>
    %734 = arith.addf %732, %733 : vector<2x32xf32>
    %735 = arith.mulf %734, %727 : vector<2x32xf32>
    %cst_325 = arith.constant -0.284496725 : f32
    %736 = vector.broadcast %cst_325 : f32 to vector<2x32xf32>
    %737 = arith.addf %735, %736 : vector<2x32xf32>
    %738 = arith.mulf %737, %727 : vector<2x32xf32>
    %cst_326 = arith.constant 0.254829586 : f32
    %739 = vector.broadcast %cst_326 : f32 to vector<2x32xf32>
    %740 = arith.addf %738, %739 : vector<2x32xf32>
    %741 = arith.mulf %740, %727 : vector<2x32xf32>
    %cst_327 = arith.constant 0.000000e+00 : f32
    %742 = vector.broadcast %cst_327 : f32 to vector<2x32xf32>
    %743 = arith.subf %742, %721 : vector<2x32xf32>
    %744 = arith.mulf %743, %721 : vector<2x32xf32>
    %745 = math.exp %744 : vector<2x32xf32>
    %746 = arith.mulf %741, %745 : vector<2x32xf32>
    %cst_328 = arith.constant 1.000000e+00 : f32
    %747 = vector.broadcast %cst_328 : f32 to vector<2x32xf32>
    %748 = arith.subf %747, %746 : vector<2x32xf32>
    %749 = arith.mulf %720, %748 : vector<2x32xf32>
    %cst_329 = arith.constant 1.000000e+00 : f32
    %750 = vector.broadcast %cst_329 : f32 to vector<2x32xf32>
    %751 = arith.addf %750, %749 : vector<2x32xf32>
    %752 = arith.mulf %713, %751 : vector<2x32xf32>
    %c4_330 = arith.constant 4 : index
    %c0_331 = arith.constant 0 : index
    %c0_332 = arith.constant 0 : index
    %753 = vector.load %arg9[%c4_330, %c0_331, %c0_332] : memref<8x1x32xf32, #tpu.memory_space<vmem>>, vector<1x1x32xf32>
    %754 = vector.shape_cast %753 : vector<1x1x32xf32> to vector<1x32xf32>
    %c4_333 = arith.constant 4 : index
    %c0_334 = arith.constant 0 : index
    %c0_335 = arith.constant 0 : index
    %755 = vector.load %arg10[%c4_333, %c0_334, %c0_335] : memref<8x1x32xf32, #tpu.memory_space<vmem>>, vector<1x1x32xf32>
    %756 = vector.shape_cast %755 : vector<1x1x32xf32> to vector<1x32xf32>
    %cst_336 = arith.constant dense<0.000000e+00> : vector<2xf32>
    %757 = vector.multi_reduction <add>, %752, %cst_336 [1] : vector<2x32xf32> to vector<2xf32>
    %758 = vector.shape_cast %757 : vector<2xf32> to vector<2x1xf32>
    %cst_337 = arith.constant 3.200000e+01 : f32
    %759 = vector.broadcast %cst_337 : f32 to vector<2x1xf32>
    %760 = arith.divf %758, %759 : vector<2x1xf32>
    %761 = vector.broadcast %760 : vector<2x1xf32> to vector<2x32xf32>
    %762 = arith.subf %752, %761 : vector<2x32xf32>
    %763 = vector.broadcast %760 : vector<2x1xf32> to vector<2x32xf32>
    %764 = arith.subf %752, %763 : vector<2x32xf32>
    %765 = arith.mulf %762, %764 : vector<2x32xf32>
    %cst_338 = arith.constant dense<0.000000e+00> : vector<2xf32>
    %766 = vector.multi_reduction <add>, %765, %cst_338 [1] : vector<2x32xf32> to vector<2xf32>
    %767 = vector.shape_cast %766 : vector<2xf32> to vector<2x1xf32>
    %cst_339 = arith.constant 3.200000e+01 : f32
    %768 = vector.broadcast %cst_339 : f32 to vector<2x1xf32>
    %769 = arith.divf %767, %768 : vector<2x1xf32>
    %770 = vector.broadcast %760 : vector<2x1xf32> to vector<2x32xf32>
    %771 = arith.subf %752, %770 : vector<2x32xf32>
    %cst_340 = arith.constant 9.99999974E-6 : f32
    %772 = vector.broadcast %cst_340 : f32 to vector<2x1xf32>
    %773 = arith.addf %769, %772 : vector<2x1xf32>
    %774 = math.rsqrt %773 : vector<2x1xf32>
    %775 = vector.broadcast %774 : vector<2x1xf32> to vector<2x32xf32>
    %776 = arith.mulf %771, %775 : vector<2x32xf32>
    %777 = vector.broadcast %754 : vector<1x32xf32> to vector<2x32xf32>
    %778 = arith.mulf %776, %777 : vector<2x32xf32>
    %779 = vector.broadcast %756 : vector<1x32xf32> to vector<2x32xf32>
    %780 = arith.addf %778, %779 : vector<2x32xf32>
    %781 = arith.addf %780, %626 : vector<2x32xf32>
    %782 = arith.truncf %781 : vector<2x32xf32> to vector<2x32xbf16>
    %c5 = arith.constant 5 : index
    %c0_341 = arith.constant 0 : index
    %c0_342 = arith.constant 0 : index
    %783 = vector.load %arg3[%c5, %c0_341, %c0_342] : memref<8x32x32xbf16, #tpu.memory_space<vmem>>, vector<1x32x32xbf16>
    %784 = vector.shape_cast %783 : vector<1x32x32xbf16> to vector<32x32xbf16>
    %cst_343 = arith.constant dense<0.000000e+00> : vector<2x32xf32>
    %785 = tpu.matmul %782, %784, %cst_343 {dimension_numbers = #tpu.dot_dimension_numbers<[1], [0], [0], [1], [0, 0, 1, 1], [], []>} : vector<2x32xbf16>, vector<32x32xbf16>, vector<2x32xf32> -> vector<2x32xf32>
    %c5_344 = arith.constant 5 : index
    %c0_345 = arith.constant 0 : index
    %c0_346 = arith.constant 0 : index
    %786 = vector.load %arg4[%c5_344, %c0_345, %c0_346] : memref<8x1x32xf32, #tpu.memory_space<vmem>>, vector<1x1x32xf32>
    %787 = vector.shape_cast %786 : vector<1x1x32xf32> to vector<1x32xf32>
    %788 = vector.broadcast %787 : vector<1x32xf32> to vector<2x32xf32>
    %789 = arith.addf %785, %788 : vector<2x32xf32>
    %cst_347 = arith.constant 5.000000e-01 : f32
    %790 = vector.broadcast %cst_347 : f32 to vector<2x32xf32>
    %791 = arith.mulf %790, %789 : vector<2x32xf32>
    %cst_348 = arith.constant 0.707106769 : f32
    %792 = vector.broadcast %cst_348 : f32 to vector<2x32xf32>
    %793 = arith.mulf %789, %792 : vector<2x32xf32>
    %cst_349 = arith.constant 0.000000e+00 : f32
    %794 = vector.broadcast %cst_349 : f32 to vector<2x32xf32>
    %795 = arith.cmpf oge, %793, %794 : vector<2x32xf32>
    %cst_350 = arith.constant 1.000000e+00 : f32
    %cst_351 = arith.constant -1.000000e+00 : f32
    %796 = vector.broadcast %cst_350 : f32 to vector<2x32xf32>
    %797 = vector.broadcast %cst_351 : f32 to vector<2x32xf32>
    %798 = arith.select %795, %796, %797 : vector<2x32xi1>, vector<2x32xf32>
    %799 = math.absf %793 : vector<2x32xf32>
    %cst_352 = arith.constant 0.327591091 : f32
    %800 = vector.broadcast %cst_352 : f32 to vector<2x32xf32>
    %801 = arith.mulf %800, %799 : vector<2x32xf32>
    %cst_353 = arith.constant 1.000000e+00 : f32
    %802 = vector.broadcast %cst_353 : f32 to vector<2x32xf32>
    %803 = arith.addf %802, %801 : vector<2x32xf32>
    %cst_354 = arith.constant 1.000000e+00 : f32
    %804 = vector.broadcast %cst_354 : f32 to vector<2x32xf32>
    %805 = arith.divf %804, %803 : vector<2x32xf32>
    %cst_355 = arith.constant 1.06140542 : f32
    %806 = vector.broadcast %cst_355 : f32 to vector<2x32xf32>
    %807 = arith.mulf %806, %805 : vector<2x32xf32>
    %cst_356 = arith.constant -1.45315206 : f32
    %808 = vector.broadcast %cst_356 : f32 to vector<2x32xf32>
    %809 = arith.addf %807, %808 : vector<2x32xf32>
    %810 = arith.mulf %809, %805 : vector<2x32xf32>
    %cst_357 = arith.constant 1.42141378 : f32
    %811 = vector.broadcast %cst_357 : f32 to vector<2x32xf32>
    %812 = arith.addf %810, %811 : vector<2x32xf32>
    %813 = arith.mulf %812, %805 : vector<2x32xf32>
    %cst_358 = arith.constant -0.284496725 : f32
    %814 = vector.broadcast %cst_358 : f32 to vector<2x32xf32>
    %815 = arith.addf %813, %814 : vector<2x32xf32>
    %816 = arith.mulf %815, %805 : vector<2x32xf32>
    %cst_359 = arith.constant 0.254829586 : f32
    %817 = vector.broadcast %cst_359 : f32 to vector<2x32xf32>
    %818 = arith.addf %816, %817 : vector<2x32xf32>
    %819 = arith.mulf %818, %805 : vector<2x32xf32>
    %cst_360 = arith.constant 0.000000e+00 : f32
    %820 = vector.broadcast %cst_360 : f32 to vector<2x32xf32>
    %821 = arith.subf %820, %799 : vector<2x32xf32>
    %822 = arith.mulf %821, %799 : vector<2x32xf32>
    %823 = math.exp %822 : vector<2x32xf32>
    %824 = arith.mulf %819, %823 : vector<2x32xf32>
    %cst_361 = arith.constant 1.000000e+00 : f32
    %825 = vector.broadcast %cst_361 : f32 to vector<2x32xf32>
    %826 = arith.subf %825, %824 : vector<2x32xf32>
    %827 = arith.mulf %798, %826 : vector<2x32xf32>
    %cst_362 = arith.constant 1.000000e+00 : f32
    %828 = vector.broadcast %cst_362 : f32 to vector<2x32xf32>
    %829 = arith.addf %828, %827 : vector<2x32xf32>
    %830 = arith.mulf %791, %829 : vector<2x32xf32>
    %c5_363 = arith.constant 5 : index
    %c0_364 = arith.constant 0 : index
    %c0_365 = arith.constant 0 : index
    %831 = vector.load %arg5[%c5_363, %c0_364, %c0_365] : memref<8x1x32xf32, #tpu.memory_space<vmem>>, vector<1x1x32xf32>
    %832 = vector.shape_cast %831 : vector<1x1x32xf32> to vector<1x32xf32>
    %c5_366 = arith.constant 5 : index
    %c0_367 = arith.constant 0 : index
    %c0_368 = arith.constant 0 : index
    %833 = vector.load %arg6[%c5_366, %c0_367, %c0_368] : memref<8x1x32xf32, #tpu.memory_space<vmem>>, vector<1x1x32xf32>
    %834 = vector.shape_cast %833 : vector<1x1x32xf32> to vector<1x32xf32>
    %cst_369 = arith.constant dense<0.000000e+00> : vector<2xf32>
    %835 = vector.multi_reduction <add>, %830, %cst_369 [1] : vector<2x32xf32> to vector<2xf32>
    %836 = vector.shape_cast %835 : vector<2xf32> to vector<2x1xf32>
    %cst_370 = arith.constant 3.200000e+01 : f32
    %837 = vector.broadcast %cst_370 : f32 to vector<2x1xf32>
    %838 = arith.divf %836, %837 : vector<2x1xf32>
    %839 = vector.broadcast %838 : vector<2x1xf32> to vector<2x32xf32>
    %840 = arith.subf %830, %839 : vector<2x32xf32>
    %841 = vector.broadcast %838 : vector<2x1xf32> to vector<2x32xf32>
    %842 = arith.subf %830, %841 : vector<2x32xf32>
    %843 = arith.mulf %840, %842 : vector<2x32xf32>
    %cst_371 = arith.constant dense<0.000000e+00> : vector<2xf32>
    %844 = vector.multi_reduction <add>, %843, %cst_371 [1] : vector<2x32xf32> to vector<2xf32>
    %845 = vector.shape_cast %844 : vector<2xf32> to vector<2x1xf32>
    %cst_372 = arith.constant 3.200000e+01 : f32
    %846 = vector.broadcast %cst_372 : f32 to vector<2x1xf32>
    %847 = arith.divf %845, %846 : vector<2x1xf32>
    %848 = vector.broadcast %838 : vector<2x1xf32> to vector<2x32xf32>
    %849 = arith.subf %830, %848 : vector<2x32xf32>
    %cst_373 = arith.constant 9.99999974E-6 : f32
    %850 = vector.broadcast %cst_373 : f32 to vector<2x1xf32>
    %851 = arith.addf %847, %850 : vector<2x1xf32>
    %852 = math.rsqrt %851 : vector<2x1xf32>
    %853 = vector.broadcast %852 : vector<2x1xf32> to vector<2x32xf32>
    %854 = arith.mulf %849, %853 : vector<2x32xf32>
    %855 = vector.broadcast %832 : vector<1x32xf32> to vector<2x32xf32>
    %856 = arith.mulf %854, %855 : vector<2x32xf32>
    %857 = vector.broadcast %834 : vector<1x32xf32> to vector<2x32xf32>
    %858 = arith.addf %856, %857 : vector<2x32xf32>
    %859 = arith.truncf %858 : vector<2x32xf32> to vector<2x32xbf16>
    %c5_374 = arith.constant 5 : index
    %c0_375 = arith.constant 0 : index
    %c0_376 = arith.constant 0 : index
    %860 = vector.load %arg7[%c5_374, %c0_375, %c0_376] : memref<8x32x32xbf16, #tpu.memory_space<vmem>>, vector<1x32x32xbf16>
    %861 = vector.shape_cast %860 : vector<1x32x32xbf16> to vector<32x32xbf16>
    %cst_377 = arith.constant dense<0.000000e+00> : vector<2x32xf32>
    %862 = tpu.matmul %859, %861, %cst_377 {dimension_numbers = #tpu.dot_dimension_numbers<[1], [0], [0], [1], [0, 0, 1, 1], [], []>} : vector<2x32xbf16>, vector<32x32xbf16>, vector<2x32xf32> -> vector<2x32xf32>
    %c5_378 = arith.constant 5 : index
    %c0_379 = arith.constant 0 : index
    %c0_380 = arith.constant 0 : index
    %863 = vector.load %arg8[%c5_378, %c0_379, %c0_380] : memref<8x1x32xf32, #tpu.memory_space<vmem>>, vector<1x1x32xf32>
    %864 = vector.shape_cast %863 : vector<1x1x32xf32> to vector<1x32xf32>
    %865 = vector.broadcast %864 : vector<1x32xf32> to vector<2x32xf32>
    %866 = arith.addf %862, %865 : vector<2x32xf32>
    %cst_381 = arith.constant 5.000000e-01 : f32
    %867 = vector.broadcast %cst_381 : f32 to vector<2x32xf32>
    %868 = arith.mulf %867, %866 : vector<2x32xf32>
    %cst_382 = arith.constant 0.707106769 : f32
    %869 = vector.broadcast %cst_382 : f32 to vector<2x32xf32>
    %870 = arith.mulf %866, %869 : vector<2x32xf32>
    %cst_383 = arith.constant 0.000000e+00 : f32
    %871 = vector.broadcast %cst_383 : f32 to vector<2x32xf32>
    %872 = arith.cmpf oge, %870, %871 : vector<2x32xf32>
    %cst_384 = arith.constant 1.000000e+00 : f32
    %cst_385 = arith.constant -1.000000e+00 : f32
    %873 = vector.broadcast %cst_384 : f32 to vector<2x32xf32>
    %874 = vector.broadcast %cst_385 : f32 to vector<2x32xf32>
    %875 = arith.select %872, %873, %874 : vector<2x32xi1>, vector<2x32xf32>
    %876 = math.absf %870 : vector<2x32xf32>
    %cst_386 = arith.constant 0.327591091 : f32
    %877 = vector.broadcast %cst_386 : f32 to vector<2x32xf32>
    %878 = arith.mulf %877, %876 : vector<2x32xf32>
    %cst_387 = arith.constant 1.000000e+00 : f32
    %879 = vector.broadcast %cst_387 : f32 to vector<2x32xf32>
    %880 = arith.addf %879, %878 : vector<2x32xf32>
    %cst_388 = arith.constant 1.000000e+00 : f32
    %881 = vector.broadcast %cst_388 : f32 to vector<2x32xf32>
    %882 = arith.divf %881, %880 : vector<2x32xf32>
    %cst_389 = arith.constant 1.06140542 : f32
    %883 = vector.broadcast %cst_389 : f32 to vector<2x32xf32>
    %884 = arith.mulf %883, %882 : vector<2x32xf32>
    %cst_390 = arith.constant -1.45315206 : f32
    %885 = vector.broadcast %cst_390 : f32 to vector<2x32xf32>
    %886 = arith.addf %884, %885 : vector<2x32xf32>
    %887 = arith.mulf %886, %882 : vector<2x32xf32>
    %cst_391 = arith.constant 1.42141378 : f32
    %888 = vector.broadcast %cst_391 : f32 to vector<2x32xf32>
    %889 = arith.addf %887, %888 : vector<2x32xf32>
    %890 = arith.mulf %889, %882 : vector<2x32xf32>
    %cst_392 = arith.constant -0.284496725 : f32
    %891 = vector.broadcast %cst_392 : f32 to vector<2x32xf32>
    %892 = arith.addf %890, %891 : vector<2x32xf32>
    %893 = arith.mulf %892, %882 : vector<2x32xf32>
    %cst_393 = arith.constant 0.254829586 : f32
    %894 = vector.broadcast %cst_393 : f32 to vector<2x32xf32>
    %895 = arith.addf %893, %894 : vector<2x32xf32>
    %896 = arith.mulf %895, %882 : vector<2x32xf32>
    %cst_394 = arith.constant 0.000000e+00 : f32
    %897 = vector.broadcast %cst_394 : f32 to vector<2x32xf32>
    %898 = arith.subf %897, %876 : vector<2x32xf32>
    %899 = arith.mulf %898, %876 : vector<2x32xf32>
    %900 = math.exp %899 : vector<2x32xf32>
    %901 = arith.mulf %896, %900 : vector<2x32xf32>
    %cst_395 = arith.constant 1.000000e+00 : f32
    %902 = vector.broadcast %cst_395 : f32 to vector<2x32xf32>
    %903 = arith.subf %902, %901 : vector<2x32xf32>
    %904 = arith.mulf %875, %903 : vector<2x32xf32>
    %cst_396 = arith.constant 1.000000e+00 : f32
    %905 = vector.broadcast %cst_396 : f32 to vector<2x32xf32>
    %906 = arith.addf %905, %904 : vector<2x32xf32>
    %907 = arith.mulf %868, %906 : vector<2x32xf32>
    %c5_397 = arith.constant 5 : index
    %c0_398 = arith.constant 0 : index
    %c0_399 = arith.constant 0 : index
    %908 = vector.load %arg9[%c5_397, %c0_398, %c0_399] : memref<8x1x32xf32, #tpu.memory_space<vmem>>, vector<1x1x32xf32>
    %909 = vector.shape_cast %908 : vector<1x1x32xf32> to vector<1x32xf32>
    %c5_400 = arith.constant 5 : index
    %c0_401 = arith.constant 0 : index
    %c0_402 = arith.constant 0 : index
    %910 = vector.load %arg10[%c5_400, %c0_401, %c0_402] : memref<8x1x32xf32, #tpu.memory_space<vmem>>, vector<1x1x32xf32>
    %911 = vector.shape_cast %910 : vector<1x1x32xf32> to vector<1x32xf32>
    %cst_403 = arith.constant dense<0.000000e+00> : vector<2xf32>
    %912 = vector.multi_reduction <add>, %907, %cst_403 [1] : vector<2x32xf32> to vector<2xf32>
    %913 = vector.shape_cast %912 : vector<2xf32> to vector<2x1xf32>
    %cst_404 = arith.constant 3.200000e+01 : f32
    %914 = vector.broadcast %cst_404 : f32 to vector<2x1xf32>
    %915 = arith.divf %913, %914 : vector<2x1xf32>
    %916 = vector.broadcast %915 : vector<2x1xf32> to vector<2x32xf32>
    %917 = arith.subf %907, %916 : vector<2x32xf32>
    %918 = vector.broadcast %915 : vector<2x1xf32> to vector<2x32xf32>
    %919 = arith.subf %907, %918 : vector<2x32xf32>
    %920 = arith.mulf %917, %919 : vector<2x32xf32>
    %cst_405 = arith.constant dense<0.000000e+00> : vector<2xf32>
    %921 = vector.multi_reduction <add>, %920, %cst_405 [1] : vector<2x32xf32> to vector<2xf32>
    %922 = vector.shape_cast %921 : vector<2xf32> to vector<2x1xf32>
    %cst_406 = arith.constant 3.200000e+01 : f32
    %923 = vector.broadcast %cst_406 : f32 to vector<2x1xf32>
    %924 = arith.divf %922, %923 : vector<2x1xf32>
    %925 = vector.broadcast %915 : vector<2x1xf32> to vector<2x32xf32>
    %926 = arith.subf %907, %925 : vector<2x32xf32>
    %cst_407 = arith.constant 9.99999974E-6 : f32
    %927 = vector.broadcast %cst_407 : f32 to vector<2x1xf32>
    %928 = arith.addf %924, %927 : vector<2x1xf32>
    %929 = math.rsqrt %928 : vector<2x1xf32>
    %930 = vector.broadcast %929 : vector<2x1xf32> to vector<2x32xf32>
    %931 = arith.mulf %926, %930 : vector<2x32xf32>
    %932 = vector.broadcast %909 : vector<1x32xf32> to vector<2x32xf32>
    %933 = arith.mulf %931, %932 : vector<2x32xf32>
    %934 = vector.broadcast %911 : vector<1x32xf32> to vector<2x32xf32>
    %935 = arith.addf %933, %934 : vector<2x32xf32>
    %936 = arith.addf %935, %781 : vector<2x32xf32>
    %937 = arith.truncf %936 : vector<2x32xf32> to vector<2x32xbf16>
    %c6 = arith.constant 6 : index
    %c0_408 = arith.constant 0 : index
    %c0_409 = arith.constant 0 : index
    %938 = vector.load %arg3[%c6, %c0_408, %c0_409] : memref<8x32x32xbf16, #tpu.memory_space<vmem>>, vector<1x32x32xbf16>
    %939 = vector.shape_cast %938 : vector<1x32x32xbf16> to vector<32x32xbf16>
    %cst_410 = arith.constant dense<0.000000e+00> : vector<2x32xf32>
    %940 = tpu.matmul %937, %939, %cst_410 {dimension_numbers = #tpu.dot_dimension_numbers<[1], [0], [0], [1], [0, 0, 1, 1], [], []>} : vector<2x32xbf16>, vector<32x32xbf16>, vector<2x32xf32> -> vector<2x32xf32>
    %c6_411 = arith.constant 6 : index
    %c0_412 = arith.constant 0 : index
    %c0_413 = arith.constant 0 : index
    %941 = vector.load %arg4[%c6_411, %c0_412, %c0_413] : memref<8x1x32xf32, #tpu.memory_space<vmem>>, vector<1x1x32xf32>
    %942 = vector.shape_cast %941 : vector<1x1x32xf32> to vector<1x32xf32>
    %943 = vector.broadcast %942 : vector<1x32xf32> to vector<2x32xf32>
    %944 = arith.addf %940, %943 : vector<2x32xf32>
    %cst_414 = arith.constant 5.000000e-01 : f32
    %945 = vector.broadcast %cst_414 : f32 to vector<2x32xf32>
    %946 = arith.mulf %945, %944 : vector<2x32xf32>
    %cst_415 = arith.constant 0.707106769 : f32
    %947 = vector.broadcast %cst_415 : f32 to vector<2x32xf32>
    %948 = arith.mulf %944, %947 : vector<2x32xf32>
    %cst_416 = arith.constant 0.000000e+00 : f32
    %949 = vector.broadcast %cst_416 : f32 to vector<2x32xf32>
    %950 = arith.cmpf oge, %948, %949 : vector<2x32xf32>
    %cst_417 = arith.constant 1.000000e+00 : f32
    %cst_418 = arith.constant -1.000000e+00 : f32
    %951 = vector.broadcast %cst_417 : f32 to vector<2x32xf32>
    %952 = vector.broadcast %cst_418 : f32 to vector<2x32xf32>
    %953 = arith.select %950, %951, %952 : vector<2x32xi1>, vector<2x32xf32>
    %954 = math.absf %948 : vector<2x32xf32>
    %cst_419 = arith.constant 0.327591091 : f32
    %955 = vector.broadcast %cst_419 : f32 to vector<2x32xf32>
    %956 = arith.mulf %955, %954 : vector<2x32xf32>
    %cst_420 = arith.constant 1.000000e+00 : f32
    %957 = vector.broadcast %cst_420 : f32 to vector<2x32xf32>
    %958 = arith.addf %957, %956 : vector<2x32xf32>
    %cst_421 = arith.constant 1.000000e+00 : f32
    %959 = vector.broadcast %cst_421 : f32 to vector<2x32xf32>
    %960 = arith.divf %959, %958 : vector<2x32xf32>
    %cst_422 = arith.constant 1.06140542 : f32
    %961 = vector.broadcast %cst_422 : f32 to vector<2x32xf32>
    %962 = arith.mulf %961, %960 : vector<2x32xf32>
    %cst_423 = arith.constant -1.45315206 : f32
    %963 = vector.broadcast %cst_423 : f32 to vector<2x32xf32>
    %964 = arith.addf %962, %963 : vector<2x32xf32>
    %965 = arith.mulf %964, %960 : vector<2x32xf32>
    %cst_424 = arith.constant 1.42141378 : f32
    %966 = vector.broadcast %cst_424 : f32 to vector<2x32xf32>
    %967 = arith.addf %965, %966 : vector<2x32xf32>
    %968 = arith.mulf %967, %960 : vector<2x32xf32>
    %cst_425 = arith.constant -0.284496725 : f32
    %969 = vector.broadcast %cst_425 : f32 to vector<2x32xf32>
    %970 = arith.addf %968, %969 : vector<2x32xf32>
    %971 = arith.mulf %970, %960 : vector<2x32xf32>
    %cst_426 = arith.constant 0.254829586 : f32
    %972 = vector.broadcast %cst_426 : f32 to vector<2x32xf32>
    %973 = arith.addf %971, %972 : vector<2x32xf32>
    %974 = arith.mulf %973, %960 : vector<2x32xf32>
    %cst_427 = arith.constant 0.000000e+00 : f32
    %975 = vector.broadcast %cst_427 : f32 to vector<2x32xf32>
    %976 = arith.subf %975, %954 : vector<2x32xf32>
    %977 = arith.mulf %976, %954 : vector<2x32xf32>
    %978 = math.exp %977 : vector<2x32xf32>
    %979 = arith.mulf %974, %978 : vector<2x32xf32>
    %cst_428 = arith.constant 1.000000e+00 : f32
    %980 = vector.broadcast %cst_428 : f32 to vector<2x32xf32>
    %981 = arith.subf %980, %979 : vector<2x32xf32>
    %982 = arith.mulf %953, %981 : vector<2x32xf32>
    %cst_429 = arith.constant 1.000000e+00 : f32
    %983 = vector.broadcast %cst_429 : f32 to vector<2x32xf32>
    %984 = arith.addf %983, %982 : vector<2x32xf32>
    %985 = arith.mulf %946, %984 : vector<2x32xf32>
    %c6_430 = arith.constant 6 : index
    %c0_431 = arith.constant 0 : index
    %c0_432 = arith.constant 0 : index
    %986 = vector.load %arg5[%c6_430, %c0_431, %c0_432] : memref<8x1x32xf32, #tpu.memory_space<vmem>>, vector<1x1x32xf32>
    %987 = vector.shape_cast %986 : vector<1x1x32xf32> to vector<1x32xf32>
    %c6_433 = arith.constant 6 : index
    %c0_434 = arith.constant 0 : index
    %c0_435 = arith.constant 0 : index
    %988 = vector.load %arg6[%c6_433, %c0_434, %c0_435] : memref<8x1x32xf32, #tpu.memory_space<vmem>>, vector<1x1x32xf32>
    %989 = vector.shape_cast %988 : vector<1x1x32xf32> to vector<1x32xf32>
    %cst_436 = arith.constant dense<0.000000e+00> : vector<2xf32>
    %990 = vector.multi_reduction <add>, %985, %cst_436 [1] : vector<2x32xf32> to vector<2xf32>
    %991 = vector.shape_cast %990 : vector<2xf32> to vector<2x1xf32>
    %cst_437 = arith.constant 3.200000e+01 : f32
    %992 = vector.broadcast %cst_437 : f32 to vector<2x1xf32>
    %993 = arith.divf %991, %992 : vector<2x1xf32>
    %994 = vector.broadcast %993 : vector<2x1xf32> to vector<2x32xf32>
    %995 = arith.subf %985, %994 : vector<2x32xf32>
    %996 = vector.broadcast %993 : vector<2x1xf32> to vector<2x32xf32>
    %997 = arith.subf %985, %996 : vector<2x32xf32>
    %998 = arith.mulf %995, %997 : vector<2x32xf32>
    %cst_438 = arith.constant dense<0.000000e+00> : vector<2xf32>
    %999 = vector.multi_reduction <add>, %998, %cst_438 [1] : vector<2x32xf32> to vector<2xf32>
    %1000 = vector.shape_cast %999 : vector<2xf32> to vector<2x1xf32>
    %cst_439 = arith.constant 3.200000e+01 : f32
    %1001 = vector.broadcast %cst_439 : f32 to vector<2x1xf32>
    %1002 = arith.divf %1000, %1001 : vector<2x1xf32>
    %1003 = vector.broadcast %993 : vector<2x1xf32> to vector<2x32xf32>
    %1004 = arith.subf %985, %1003 : vector<2x32xf32>
    %cst_440 = arith.constant 9.99999974E-6 : f32
    %1005 = vector.broadcast %cst_440 : f32 to vector<2x1xf32>
    %1006 = arith.addf %1002, %1005 : vector<2x1xf32>
    %1007 = math.rsqrt %1006 : vector<2x1xf32>
    %1008 = vector.broadcast %1007 : vector<2x1xf32> to vector<2x32xf32>
    %1009 = arith.mulf %1004, %1008 : vector<2x32xf32>
    %1010 = vector.broadcast %987 : vector<1x32xf32> to vector<2x32xf32>
    %1011 = arith.mulf %1009, %1010 : vector<2x32xf32>
    %1012 = vector.broadcast %989 : vector<1x32xf32> to vector<2x32xf32>
    %1013 = arith.addf %1011, %1012 : vector<2x32xf32>
    %1014 = arith.truncf %1013 : vector<2x32xf32> to vector<2x32xbf16>
    %c6_441 = arith.constant 6 : index
    %c0_442 = arith.constant 0 : index
    %c0_443 = arith.constant 0 : index
    %1015 = vector.load %arg7[%c6_441, %c0_442, %c0_443] : memref<8x32x32xbf16, #tpu.memory_space<vmem>>, vector<1x32x32xbf16>
    %1016 = vector.shape_cast %1015 : vector<1x32x32xbf16> to vector<32x32xbf16>
    %cst_444 = arith.constant dense<0.000000e+00> : vector<2x32xf32>
    %1017 = tpu.matmul %1014, %1016, %cst_444 {dimension_numbers = #tpu.dot_dimension_numbers<[1], [0], [0], [1], [0, 0, 1, 1], [], []>} : vector<2x32xbf16>, vector<32x32xbf16>, vector<2x32xf32> -> vector<2x32xf32>
    %c6_445 = arith.constant 6 : index
    %c0_446 = arith.constant 0 : index
    %c0_447 = arith.constant 0 : index
    %1018 = vector.load %arg8[%c6_445, %c0_446, %c0_447] : memref<8x1x32xf32, #tpu.memory_space<vmem>>, vector<1x1x32xf32>
    %1019 = vector.shape_cast %1018 : vector<1x1x32xf32> to vector<1x32xf32>
    %1020 = vector.broadcast %1019 : vector<1x32xf32> to vector<2x32xf32>
    %1021 = arith.addf %1017, %1020 : vector<2x32xf32>
    %cst_448 = arith.constant 5.000000e-01 : f32
    %1022 = vector.broadcast %cst_448 : f32 to vector<2x32xf32>
    %1023 = arith.mulf %1022, %1021 : vector<2x32xf32>
    %cst_449 = arith.constant 0.707106769 : f32
    %1024 = vector.broadcast %cst_449 : f32 to vector<2x32xf32>
    %1025 = arith.mulf %1021, %1024 : vector<2x32xf32>
    %cst_450 = arith.constant 0.000000e+00 : f32
    %1026 = vector.broadcast %cst_450 : f32 to vector<2x32xf32>
    %1027 = arith.cmpf oge, %1025, %1026 : vector<2x32xf32>
    %cst_451 = arith.constant 1.000000e+00 : f32
    %cst_452 = arith.constant -1.000000e+00 : f32
    %1028 = vector.broadcast %cst_451 : f32 to vector<2x32xf32>
    %1029 = vector.broadcast %cst_452 : f32 to vector<2x32xf32>
    %1030 = arith.select %1027, %1028, %1029 : vector<2x32xi1>, vector<2x32xf32>
    %1031 = math.absf %1025 : vector<2x32xf32>
    %cst_453 = arith.constant 0.327591091 : f32
    %1032 = vector.broadcast %cst_453 : f32 to vector<2x32xf32>
    %1033 = arith.mulf %1032, %1031 : vector<2x32xf32>
    %cst_454 = arith.constant 1.000000e+00 : f32
    %1034 = vector.broadcast %cst_454 : f32 to vector<2x32xf32>
    %1035 = arith.addf %1034, %1033 : vector<2x32xf32>
    %cst_455 = arith.constant 1.000000e+00 : f32
    %1036 = vector.broadcast %cst_455 : f32 to vector<2x32xf32>
    %1037 = arith.divf %1036, %1035 : vector<2x32xf32>
    %cst_456 = arith.constant 1.06140542 : f32
    %1038 = vector.broadcast %cst_456 : f32 to vector<2x32xf32>
    %1039 = arith.mulf %1038, %1037 : vector<2x32xf32>
    %cst_457 = arith.constant -1.45315206 : f32
    %1040 = vector.broadcast %cst_457 : f32 to vector<2x32xf32>
    %1041 = arith.addf %1039, %1040 : vector<2x32xf32>
    %1042 = arith.mulf %1041, %1037 : vector<2x32xf32>
    %cst_458 = arith.constant 1.42141378 : f32
    %1043 = vector.broadcast %cst_458 : f32 to vector<2x32xf32>
    %1044 = arith.addf %1042, %1043 : vector<2x32xf32>
    %1045 = arith.mulf %1044, %1037 : vector<2x32xf32>
    %cst_459 = arith.constant -0.284496725 : f32
    %1046 = vector.broadcast %cst_459 : f32 to vector<2x32xf32>
    %1047 = arith.addf %1045, %1046 : vector<2x32xf32>
    %1048 = arith.mulf %1047, %1037 : vector<2x32xf32>
    %cst_460 = arith.constant 0.254829586 : f32
    %1049 = vector.broadcast %cst_460 : f32 to vector<2x32xf32>
    %1050 = arith.addf %1048, %1049 : vector<2x32xf32>
    %1051 = arith.mulf %1050, %1037 : vector<2x32xf32>
    %cst_461 = arith.constant 0.000000e+00 : f32
    %1052 = vector.broadcast %cst_461 : f32 to vector<2x32xf32>
    %1053 = arith.subf %1052, %1031 : vector<2x32xf32>
    %1054 = arith.mulf %1053, %1031 : vector<2x32xf32>
    %1055 = math.exp %1054 : vector<2x32xf32>
    %1056 = arith.mulf %1051, %1055 : vector<2x32xf32>
    %cst_462 = arith.constant 1.000000e+00 : f32
    %1057 = vector.broadcast %cst_462 : f32 to vector<2x32xf32>
    %1058 = arith.subf %1057, %1056 : vector<2x32xf32>
    %1059 = arith.mulf %1030, %1058 : vector<2x32xf32>
    %cst_463 = arith.constant 1.000000e+00 : f32
    %1060 = vector.broadcast %cst_463 : f32 to vector<2x32xf32>
    %1061 = arith.addf %1060, %1059 : vector<2x32xf32>
    %1062 = arith.mulf %1023, %1061 : vector<2x32xf32>
    %c6_464 = arith.constant 6 : index
    %c0_465 = arith.constant 0 : index
    %c0_466 = arith.constant 0 : index
    %1063 = vector.load %arg9[%c6_464, %c0_465, %c0_466] : memref<8x1x32xf32, #tpu.memory_space<vmem>>, vector<1x1x32xf32>
    %1064 = vector.shape_cast %1063 : vector<1x1x32xf32> to vector<1x32xf32>
    %c6_467 = arith.constant 6 : index
    %c0_468 = arith.constant 0 : index
    %c0_469 = arith.constant 0 : index
    %1065 = vector.load %arg10[%c6_467, %c0_468, %c0_469] : memref<8x1x32xf32, #tpu.memory_space<vmem>>, vector<1x1x32xf32>
    %1066 = vector.shape_cast %1065 : vector<1x1x32xf32> to vector<1x32xf32>
    %cst_470 = arith.constant dense<0.000000e+00> : vector<2xf32>
    %1067 = vector.multi_reduction <add>, %1062, %cst_470 [1] : vector<2x32xf32> to vector<2xf32>
    %1068 = vector.shape_cast %1067 : vector<2xf32> to vector<2x1xf32>
    %cst_471 = arith.constant 3.200000e+01 : f32
    %1069 = vector.broadcast %cst_471 : f32 to vector<2x1xf32>
    %1070 = arith.divf %1068, %1069 : vector<2x1xf32>
    %1071 = vector.broadcast %1070 : vector<2x1xf32> to vector<2x32xf32>
    %1072 = arith.subf %1062, %1071 : vector<2x32xf32>
    %1073 = vector.broadcast %1070 : vector<2x1xf32> to vector<2x32xf32>
    %1074 = arith.subf %1062, %1073 : vector<2x32xf32>
    %1075 = arith.mulf %1072, %1074 : vector<2x32xf32>
    %cst_472 = arith.constant dense<0.000000e+00> : vector<2xf32>
    %1076 = vector.multi_reduction <add>, %1075, %cst_472 [1] : vector<2x32xf32> to vector<2xf32>
    %1077 = vector.shape_cast %1076 : vector<2xf32> to vector<2x1xf32>
    %cst_473 = arith.constant 3.200000e+01 : f32
    %1078 = vector.broadcast %cst_473 : f32 to vector<2x1xf32>
    %1079 = arith.divf %1077, %1078 : vector<2x1xf32>
    %1080 = vector.broadcast %1070 : vector<2x1xf32> to vector<2x32xf32>
    %1081 = arith.subf %1062, %1080 : vector<2x32xf32>
    %cst_474 = arith.constant 9.99999974E-6 : f32
    %1082 = vector.broadcast %cst_474 : f32 to vector<2x1xf32>
    %1083 = arith.addf %1079, %1082 : vector<2x1xf32>
    %1084 = math.rsqrt %1083 : vector<2x1xf32>
    %1085 = vector.broadcast %1084 : vector<2x1xf32> to vector<2x32xf32>
    %1086 = arith.mulf %1081, %1085 : vector<2x32xf32>
    %1087 = vector.broadcast %1064 : vector<1x32xf32> to vector<2x32xf32>
    %1088 = arith.mulf %1086, %1087 : vector<2x32xf32>
    %1089 = vector.broadcast %1066 : vector<1x32xf32> to vector<2x32xf32>
    %1090 = arith.addf %1088, %1089 : vector<2x32xf32>
    %1091 = arith.addf %1090, %936 : vector<2x32xf32>
    %1092 = arith.truncf %1091 : vector<2x32xf32> to vector<2x32xbf16>
    %c7 = arith.constant 7 : index
    %c0_475 = arith.constant 0 : index
    %c0_476 = arith.constant 0 : index
    %1093 = vector.load %arg3[%c7, %c0_475, %c0_476] : memref<8x32x32xbf16, #tpu.memory_space<vmem>>, vector<1x32x32xbf16>
    %1094 = vector.shape_cast %1093 : vector<1x32x32xbf16> to vector<32x32xbf16>
    %cst_477 = arith.constant dense<0.000000e+00> : vector<2x32xf32>
    %1095 = tpu.matmul %1092, %1094, %cst_477 {dimension_numbers = #tpu.dot_dimension_numbers<[1], [0], [0], [1], [0, 0, 1, 1], [], []>} : vector<2x32xbf16>, vector<32x32xbf16>, vector<2x32xf32> -> vector<2x32xf32>
    %c7_478 = arith.constant 7 : index
    %c0_479 = arith.constant 0 : index
    %c0_480 = arith.constant 0 : index
    %1096 = vector.load %arg4[%c7_478, %c0_479, %c0_480] : memref<8x1x32xf32, #tpu.memory_space<vmem>>, vector<1x1x32xf32>
    %1097 = vector.shape_cast %1096 : vector<1x1x32xf32> to vector<1x32xf32>
    %1098 = vector.broadcast %1097 : vector<1x32xf32> to vector<2x32xf32>
    %1099 = arith.addf %1095, %1098 : vector<2x32xf32>
    %cst_481 = arith.constant 5.000000e-01 : f32
    %1100 = vector.broadcast %cst_481 : f32 to vector<2x32xf32>
    %1101 = arith.mulf %1100, %1099 : vector<2x32xf32>
    %cst_482 = arith.constant 0.707106769 : f32
    %1102 = vector.broadcast %cst_482 : f32 to vector<2x32xf32>
    %1103 = arith.mulf %1099, %1102 : vector<2x32xf32>
    %cst_483 = arith.constant 0.000000e+00 : f32
    %1104 = vector.broadcast %cst_483 : f32 to vector<2x32xf32>
    %1105 = arith.cmpf oge, %1103, %1104 : vector<2x32xf32>
    %cst_484 = arith.constant 1.000000e+00 : f32
    %cst_485 = arith.constant -1.000000e+00 : f32
    %1106 = vector.broadcast %cst_484 : f32 to vector<2x32xf32>
    %1107 = vector.broadcast %cst_485 : f32 to vector<2x32xf32>
    %1108 = arith.select %1105, %1106, %1107 : vector<2x32xi1>, vector<2x32xf32>
    %1109 = math.absf %1103 : vector<2x32xf32>
    %cst_486 = arith.constant 0.327591091 : f32
    %1110 = vector.broadcast %cst_486 : f32 to vector<2x32xf32>
    %1111 = arith.mulf %1110, %1109 : vector<2x32xf32>
    %cst_487 = arith.constant 1.000000e+00 : f32
    %1112 = vector.broadcast %cst_487 : f32 to vector<2x32xf32>
    %1113 = arith.addf %1112, %1111 : vector<2x32xf32>
    %cst_488 = arith.constant 1.000000e+00 : f32
    %1114 = vector.broadcast %cst_488 : f32 to vector<2x32xf32>
    %1115 = arith.divf %1114, %1113 : vector<2x32xf32>
    %cst_489 = arith.constant 1.06140542 : f32
    %1116 = vector.broadcast %cst_489 : f32 to vector<2x32xf32>
    %1117 = arith.mulf %1116, %1115 : vector<2x32xf32>
    %cst_490 = arith.constant -1.45315206 : f32
    %1118 = vector.broadcast %cst_490 : f32 to vector<2x32xf32>
    %1119 = arith.addf %1117, %1118 : vector<2x32xf32>
    %1120 = arith.mulf %1119, %1115 : vector<2x32xf32>
    %cst_491 = arith.constant 1.42141378 : f32
    %1121 = vector.broadcast %cst_491 : f32 to vector<2x32xf32>
    %1122 = arith.addf %1120, %1121 : vector<2x32xf32>
    %1123 = arith.mulf %1122, %1115 : vector<2x32xf32>
    %cst_492 = arith.constant -0.284496725 : f32
    %1124 = vector.broadcast %cst_492 : f32 to vector<2x32xf32>
    %1125 = arith.addf %1123, %1124 : vector<2x32xf32>
    %1126 = arith.mulf %1125, %1115 : vector<2x32xf32>
    %cst_493 = arith.constant 0.254829586 : f32
    %1127 = vector.broadcast %cst_493 : f32 to vector<2x32xf32>
    %1128 = arith.addf %1126, %1127 : vector<2x32xf32>
    %1129 = arith.mulf %1128, %1115 : vector<2x32xf32>
    %cst_494 = arith.constant 0.000000e+00 : f32
    %1130 = vector.broadcast %cst_494 : f32 to vector<2x32xf32>
    %1131 = arith.subf %1130, %1109 : vector<2x32xf32>
    %1132 = arith.mulf %1131, %1109 : vector<2x32xf32>
    %1133 = math.exp %1132 : vector<2x32xf32>
    %1134 = arith.mulf %1129, %1133 : vector<2x32xf32>
    %cst_495 = arith.constant 1.000000e+00 : f32
    %1135 = vector.broadcast %cst_495 : f32 to vector<2x32xf32>
    %1136 = arith.subf %1135, %1134 : vector<2x32xf32>
    %1137 = arith.mulf %1108, %1136 : vector<2x32xf32>
    %cst_496 = arith.constant 1.000000e+00 : f32
    %1138 = vector.broadcast %cst_496 : f32 to vector<2x32xf32>
    %1139 = arith.addf %1138, %1137 : vector<2x32xf32>
    %1140 = arith.mulf %1101, %1139 : vector<2x32xf32>
    %c7_497 = arith.constant 7 : index
    %c0_498 = arith.constant 0 : index
    %c0_499 = arith.constant 0 : index
    %1141 = vector.load %arg5[%c7_497, %c0_498, %c0_499] : memref<8x1x32xf32, #tpu.memory_space<vmem>>, vector<1x1x32xf32>
    %1142 = vector.shape_cast %1141 : vector<1x1x32xf32> to vector<1x32xf32>
    %c7_500 = arith.constant 7 : index
    %c0_501 = arith.constant 0 : index
    %c0_502 = arith.constant 0 : index
    %1143 = vector.load %arg6[%c7_500, %c0_501, %c0_502] : memref<8x1x32xf32, #tpu.memory_space<vmem>>, vector<1x1x32xf32>
    %1144 = vector.shape_cast %1143 : vector<1x1x32xf32> to vector<1x32xf32>
    %cst_503 = arith.constant dense<0.000000e+00> : vector<2xf32>
    %1145 = vector.multi_reduction <add>, %1140, %cst_503 [1] : vector<2x32xf32> to vector<2xf32>
    %1146 = vector.shape_cast %1145 : vector<2xf32> to vector<2x1xf32>
    %cst_504 = arith.constant 3.200000e+01 : f32
    %1147 = vector.broadcast %cst_504 : f32 to vector<2x1xf32>
    %1148 = arith.divf %1146, %1147 : vector<2x1xf32>
    %1149 = vector.broadcast %1148 : vector<2x1xf32> to vector<2x32xf32>
    %1150 = arith.subf %1140, %1149 : vector<2x32xf32>
    %1151 = vector.broadcast %1148 : vector<2x1xf32> to vector<2x32xf32>
    %1152 = arith.subf %1140, %1151 : vector<2x32xf32>
    %1153 = arith.mulf %1150, %1152 : vector<2x32xf32>
    %cst_505 = arith.constant dense<0.000000e+00> : vector<2xf32>
    %1154 = vector.multi_reduction <add>, %1153, %cst_505 [1] : vector<2x32xf32> to vector<2xf32>
    %1155 = vector.shape_cast %1154 : vector<2xf32> to vector<2x1xf32>
    %cst_506 = arith.constant 3.200000e+01 : f32
    %1156 = vector.broadcast %cst_506 : f32 to vector<2x1xf32>
    %1157 = arith.divf %1155, %1156 : vector<2x1xf32>
    %1158 = vector.broadcast %1148 : vector<2x1xf32> to vector<2x32xf32>
    %1159 = arith.subf %1140, %1158 : vector<2x32xf32>
    %cst_507 = arith.constant 9.99999974E-6 : f32
    %1160 = vector.broadcast %cst_507 : f32 to vector<2x1xf32>
    %1161 = arith.addf %1157, %1160 : vector<2x1xf32>
    %1162 = math.rsqrt %1161 : vector<2x1xf32>
    %1163 = vector.broadcast %1162 : vector<2x1xf32> to vector<2x32xf32>
    %1164 = arith.mulf %1159, %1163 : vector<2x32xf32>
    %1165 = vector.broadcast %1142 : vector<1x32xf32> to vector<2x32xf32>
    %1166 = arith.mulf %1164, %1165 : vector<2x32xf32>
    %1167 = vector.broadcast %1144 : vector<1x32xf32> to vector<2x32xf32>
    %1168 = arith.addf %1166, %1167 : vector<2x32xf32>
    %1169 = arith.truncf %1168 : vector<2x32xf32> to vector<2x32xbf16>
    %c7_508 = arith.constant 7 : index
    %c0_509 = arith.constant 0 : index
    %c0_510 = arith.constant 0 : index
    %1170 = vector.load %arg7[%c7_508, %c0_509, %c0_510] : memref<8x32x32xbf16, #tpu.memory_space<vmem>>, vector<1x32x32xbf16>
    %1171 = vector.shape_cast %1170 : vector<1x32x32xbf16> to vector<32x32xbf16>
    %cst_511 = arith.constant dense<0.000000e+00> : vector<2x32xf32>
    %1172 = tpu.matmul %1169, %1171, %cst_511 {dimension_numbers = #tpu.dot_dimension_numbers<[1], [0], [0], [1], [0, 0, 1, 1], [], []>} : vector<2x32xbf16>, vector<32x32xbf16>, vector<2x32xf32> -> vector<2x32xf32>
    %c7_512 = arith.constant 7 : index
    %c0_513 = arith.constant 0 : index
    %c0_514 = arith.constant 0 : index
    %1173 = vector.load %arg8[%c7_512, %c0_513, %c0_514] : memref<8x1x32xf32, #tpu.memory_space<vmem>>, vector<1x1x32xf32>
    %1174 = vector.shape_cast %1173 : vector<1x1x32xf32> to vector<1x32xf32>
    %1175 = vector.broadcast %1174 : vector<1x32xf32> to vector<2x32xf32>
    %1176 = arith.addf %1172, %1175 : vector<2x32xf32>
    %cst_515 = arith.constant 5.000000e-01 : f32
    %1177 = vector.broadcast %cst_515 : f32 to vector<2x32xf32>
    %1178 = arith.mulf %1177, %1176 : vector<2x32xf32>
    %cst_516 = arith.constant 0.707106769 : f32
    %1179 = vector.broadcast %cst_516 : f32 to vector<2x32xf32>
    %1180 = arith.mulf %1176, %1179 : vector<2x32xf32>
    %cst_517 = arith.constant 0.000000e+00 : f32
    %1181 = vector.broadcast %cst_517 : f32 to vector<2x32xf32>
    %1182 = arith.cmpf oge, %1180, %1181 : vector<2x32xf32>
    %cst_518 = arith.constant 1.000000e+00 : f32
    %cst_519 = arith.constant -1.000000e+00 : f32
    %1183 = vector.broadcast %cst_518 : f32 to vector<2x32xf32>
    %1184 = vector.broadcast %cst_519 : f32 to vector<2x32xf32>
    %1185 = arith.select %1182, %1183, %1184 : vector<2x32xi1>, vector<2x32xf32>
    %1186 = math.absf %1180 : vector<2x32xf32>
    %cst_520 = arith.constant 0.327591091 : f32
    %1187 = vector.broadcast %cst_520 : f32 to vector<2x32xf32>
    %1188 = arith.mulf %1187, %1186 : vector<2x32xf32>
    %cst_521 = arith.constant 1.000000e+00 : f32
    %1189 = vector.broadcast %cst_521 : f32 to vector<2x32xf32>
    %1190 = arith.addf %1189, %1188 : vector<2x32xf32>
    %cst_522 = arith.constant 1.000000e+00 : f32
    %1191 = vector.broadcast %cst_522 : f32 to vector<2x32xf32>
    %1192 = arith.divf %1191, %1190 : vector<2x32xf32>
    %cst_523 = arith.constant 1.06140542 : f32
    %1193 = vector.broadcast %cst_523 : f32 to vector<2x32xf32>
    %1194 = arith.mulf %1193, %1192 : vector<2x32xf32>
    %cst_524 = arith.constant -1.45315206 : f32
    %1195 = vector.broadcast %cst_524 : f32 to vector<2x32xf32>
    %1196 = arith.addf %1194, %1195 : vector<2x32xf32>
    %1197 = arith.mulf %1196, %1192 : vector<2x32xf32>
    %cst_525 = arith.constant 1.42141378 : f32
    %1198 = vector.broadcast %cst_525 : f32 to vector<2x32xf32>
    %1199 = arith.addf %1197, %1198 : vector<2x32xf32>
    %1200 = arith.mulf %1199, %1192 : vector<2x32xf32>
    %cst_526 = arith.constant -0.284496725 : f32
    %1201 = vector.broadcast %cst_526 : f32 to vector<2x32xf32>
    %1202 = arith.addf %1200, %1201 : vector<2x32xf32>
    %1203 = arith.mulf %1202, %1192 : vector<2x32xf32>
    %cst_527 = arith.constant 0.254829586 : f32
    %1204 = vector.broadcast %cst_527 : f32 to vector<2x32xf32>
    %1205 = arith.addf %1203, %1204 : vector<2x32xf32>
    %1206 = arith.mulf %1205, %1192 : vector<2x32xf32>
    %cst_528 = arith.constant 0.000000e+00 : f32
    %1207 = vector.broadcast %cst_528 : f32 to vector<2x32xf32>
    %1208 = arith.subf %1207, %1186 : vector<2x32xf32>
    %1209 = arith.mulf %1208, %1186 : vector<2x32xf32>
    %1210 = math.exp %1209 : vector<2x32xf32>
    %1211 = arith.mulf %1206, %1210 : vector<2x32xf32>
    %cst_529 = arith.constant 1.000000e+00 : f32
    %1212 = vector.broadcast %cst_529 : f32 to vector<2x32xf32>
    %1213 = arith.subf %1212, %1211 : vector<2x32xf32>
    %1214 = arith.mulf %1185, %1213 : vector<2x32xf32>
    %cst_530 = arith.constant 1.000000e+00 : f32
    %1215 = vector.broadcast %cst_530 : f32 to vector<2x32xf32>
    %1216 = arith.addf %1215, %1214 : vector<2x32xf32>
    %1217 = arith.mulf %1178, %1216 : vector<2x32xf32>
    %c7_531 = arith.constant 7 : index
    %c0_532 = arith.constant 0 : index
    %c0_533 = arith.constant 0 : index
    %1218 = vector.load %arg9[%c7_531, %c0_532, %c0_533] : memref<8x1x32xf32, #tpu.memory_space<vmem>>, vector<1x1x32xf32>
    %1219 = vector.shape_cast %1218 : vector<1x1x32xf32> to vector<1x32xf32>
    %c7_534 = arith.constant 7 : index
    %c0_535 = arith.constant 0 : index
    %c0_536 = arith.constant 0 : index
    %1220 = vector.load %arg10[%c7_534, %c0_535, %c0_536] : memref<8x1x32xf32, #tpu.memory_space<vmem>>, vector<1x1x32xf32>
    %1221 = vector.shape_cast %1220 : vector<1x1x32xf32> to vector<1x32xf32>
    %cst_537 = arith.constant dense<0.000000e+00> : vector<2xf32>
    %1222 = vector.multi_reduction <add>, %1217, %cst_537 [1] : vector<2x32xf32> to vector<2xf32>
    %1223 = vector.shape_cast %1222 : vector<2xf32> to vector<2x1xf32>
    %cst_538 = arith.constant 3.200000e+01 : f32
    %1224 = vector.broadcast %cst_538 : f32 to vector<2x1xf32>
    %1225 = arith.divf %1223, %1224 : vector<2x1xf32>
    %1226 = vector.broadcast %1225 : vector<2x1xf32> to vector<2x32xf32>
    %1227 = arith.subf %1217, %1226 : vector<2x32xf32>
    %1228 = vector.broadcast %1225 : vector<2x1xf32> to vector<2x32xf32>
    %1229 = arith.subf %1217, %1228 : vector<2x32xf32>
    %1230 = arith.mulf %1227, %1229 : vector<2x32xf32>
    %cst_539 = arith.constant dense<0.000000e+00> : vector<2xf32>
    %1231 = vector.multi_reduction <add>, %1230, %cst_539 [1] : vector<2x32xf32> to vector<2xf32>
    %1232 = vector.shape_cast %1231 : vector<2xf32> to vector<2x1xf32>
    %cst_540 = arith.constant 3.200000e+01 : f32
    %1233 = vector.broadcast %cst_540 : f32 to vector<2x1xf32>
    %1234 = arith.divf %1232, %1233 : vector<2x1xf32>
    %1235 = vector.broadcast %1225 : vector<2x1xf32> to vector<2x32xf32>
    %1236 = arith.subf %1217, %1235 : vector<2x32xf32>
    %cst_541 = arith.constant 9.99999974E-6 : f32
    %1237 = vector.broadcast %cst_541 : f32 to vector<2x1xf32>
    %1238 = arith.addf %1234, %1237 : vector<2x1xf32>
    %1239 = math.rsqrt %1238 : vector<2x1xf32>
    %1240 = vector.broadcast %1239 : vector<2x1xf32> to vector<2x32xf32>
    %1241 = arith.mulf %1236, %1240 : vector<2x32xf32>
    %1242 = vector.broadcast %1219 : vector<1x32xf32> to vector<2x32xf32>
    %1243 = arith.mulf %1241, %1242 : vector<2x32xf32>
    %1244 = vector.broadcast %1221 : vector<1x32xf32> to vector<2x32xf32>
    %1245 = arith.addf %1243, %1244 : vector<2x32xf32>
    %1246 = arith.addf %1245, %1091 : vector<2x32xf32>
    %1247 = arith.truncf %1246 : vector<2x32xf32> to vector<2x32xbf16>
    %c0_542 = arith.constant 0 : index
    %c0_543 = arith.constant 0 : index
    %1248 = vector.load %arg11[%c0_542, %c0_543] : memref<32x32xbf16, #tpu.memory_space<vmem>>, vector<32x32xbf16>
    %cst_544 = arith.constant dense<0.000000e+00> : vector<2x32xf32>
    %1249 = tpu.matmul %1247, %1248, %cst_544 {dimension_numbers = #tpu.dot_dimension_numbers<[1], [0], [0], [1], [0, 0, 1, 1], [], []>} : vector<2x32xbf16>, vector<32x32xbf16>, vector<2x32xf32> -> vector<2x32xf32>
    %c0_545 = arith.constant 0 : index
    %c0_546 = arith.constant 0 : index
    %1250 = vector.load %arg12[%c0_545, %c0_546] : memref<1x32xf32, #tpu.memory_space<vmem>>, vector<1x32xf32>
    %1251 = vector.broadcast %1250 : vector<1x32xf32> to vector<2x32xf32>
    %1252 = arith.addf %1249, %1251 : vector<2x32xf32>
    %1253 = arith.truncf %1252 : vector<2x32xf32> to vector<2x32xbf16>
    %c0_547 = arith.constant 0 : index
    %c0_548 = arith.constant 0 : index
    %1254 = vector.load %arg13[%c0_547, %c0_548] : memref<32x32xbf16, #tpu.memory_space<vmem>>, vector<32x32xbf16>
    %cst_549 = arith.constant dense<0.000000e+00> : vector<2x32xf32>
    %1255 = tpu.matmul %1253, %1254, %cst_549 {dimension_numbers = #tpu.dot_dimension_numbers<[1], [0], [0], [1], [0, 0, 1, 1], [], []>} : vector<2x32xbf16>, vector<32x32xbf16>, vector<2x32xf32> -> vector<2x32xf32>
    %c0_550 = arith.constant 0 : index
    %c0_551 = arith.constant 0 : index
    %1256 = vector.load %arg14[%c0_550, %c0_551] : memref<1x32xf32, #tpu.memory_space<vmem>>, vector<1x32xf32>
    %1257 = vector.broadcast %1256 : vector<1x32xf32> to vector<2x32xf32>
    %1258 = arith.addf %1255, %1257 : vector<2x32xf32>
    %cst_552 = arith.constant 5.000000e-01 : f32
    %1259 = vector.broadcast %cst_552 : f32 to vector<2x32xf32>
    %1260 = arith.mulf %1259, %1258 : vector<2x32xf32>
    %cst_553 = arith.constant 0.707106769 : f32
    %1261 = vector.broadcast %cst_553 : f32 to vector<2x32xf32>
    %1262 = arith.mulf %1258, %1261 : vector<2x32xf32>
    %cst_554 = arith.constant 0.000000e+00 : f32
    %1263 = vector.broadcast %cst_554 : f32 to vector<2x32xf32>
    %1264 = arith.cmpf oge, %1262, %1263 : vector<2x32xf32>
    %cst_555 = arith.constant 1.000000e+00 : f32
    %cst_556 = arith.constant -1.000000e+00 : f32
    %1265 = vector.broadcast %cst_555 : f32 to vector<2x32xf32>
    %1266 = vector.broadcast %cst_556 : f32 to vector<2x32xf32>
    %1267 = arith.select %1264, %1265, %1266 : vector<2x32xi1>, vector<2x32xf32>
    %1268 = math.absf %1262 : vector<2x32xf32>
    %cst_557 = arith.constant 0.327591091 : f32
    %1269 = vector.broadcast %cst_557 : f32 to vector<2x32xf32>
    %1270 = arith.mulf %1269, %1268 : vector<2x32xf32>
    %cst_558 = arith.constant 1.000000e+00 : f32
    %1271 = vector.broadcast %cst_558 : f32 to vector<2x32xf32>
    %1272 = arith.addf %1271, %1270 : vector<2x32xf32>
    %cst_559 = arith.constant 1.000000e+00 : f32
    %1273 = vector.broadcast %cst_559 : f32 to vector<2x32xf32>
    %1274 = arith.divf %1273, %1272 : vector<2x32xf32>
    %cst_560 = arith.constant 1.06140542 : f32
    %1275 = vector.broadcast %cst_560 : f32 to vector<2x32xf32>
    %1276 = arith.mulf %1275, %1274 : vector<2x32xf32>
    %cst_561 = arith.constant -1.45315206 : f32
    %1277 = vector.broadcast %cst_561 : f32 to vector<2x32xf32>
    %1278 = arith.addf %1276, %1277 : vector<2x32xf32>
    %1279 = arith.mulf %1278, %1274 : vector<2x32xf32>
    %cst_562 = arith.constant 1.42141378 : f32
    %1280 = vector.broadcast %cst_562 : f32 to vector<2x32xf32>
    %1281 = arith.addf %1279, %1280 : vector<2x32xf32>
    %1282 = arith.mulf %1281, %1274 : vector<2x32xf32>
    %cst_563 = arith.constant -0.284496725 : f32
    %1283 = vector.broadcast %cst_563 : f32 to vector<2x32xf32>
    %1284 = arith.addf %1282, %1283 : vector<2x32xf32>
    %1285 = arith.mulf %1284, %1274 : vector<2x32xf32>
    %cst_564 = arith.constant 0.254829586 : f32
    %1286 = vector.broadcast %cst_564 : f32 to vector<2x32xf32>
    %1287 = arith.addf %1285, %1286 : vector<2x32xf32>
    %1288 = arith.mulf %1287, %1274 : vector<2x32xf32>
    %cst_565 = arith.constant 0.000000e+00 : f32
    %1289 = vector.broadcast %cst_565 : f32 to vector<2x32xf32>
    %1290 = arith.subf %1289, %1268 : vector<2x32xf32>
    %1291 = arith.mulf %1290, %1268 : vector<2x32xf32>
    %1292 = math.exp %1291 : vector<2x32xf32>
    %1293 = arith.mulf %1288, %1292 : vector<2x32xf32>
    %cst_566 = arith.constant 1.000000e+00 : f32
    %1294 = vector.broadcast %cst_566 : f32 to vector<2x32xf32>
    %1295 = arith.subf %1294, %1293 : vector<2x32xf32>
    %1296 = arith.mulf %1267, %1295 : vector<2x32xf32>
    %cst_567 = arith.constant 1.000000e+00 : f32
    %1297 = vector.broadcast %cst_567 : f32 to vector<2x32xf32>
    %1298 = arith.addf %1297, %1296 : vector<2x32xf32>
    %1299 = arith.mulf %1260, %1298 : vector<2x32xf32>
    %1300 = arith.truncf %1299 : vector<2x32xf32> to vector<2x32xbf16>
    %c0_568 = arith.constant 0 : index
    %c0_569 = arith.constant 0 : index
    %1301 = vector.load %arg15[%c0_568, %c0_569] : memref<32x8xbf16, #tpu.memory_space<vmem>>, vector<32x8xbf16>
    %cst_570 = arith.constant dense<0.000000e+00> : vector<2x8xf32>
    %1302 = tpu.matmul %1300, %1301, %cst_570 {dimension_numbers = #tpu.dot_dimension_numbers<[1], [0], [0], [1], [0, 0, 1, 1], [], []>} : vector<2x32xbf16>, vector<32x8xbf16>, vector<2x8xf32> -> vector<2x8xf32>
    %c0_571 = arith.constant 0 : index
    %c0_572 = arith.constant 0 : index
    %1303 = vector.load %arg16[%c0_571, %c0_572] : memref<1x8xf32, #tpu.memory_space<vmem>>, vector<1x8xf32>
    %1304 = vector.broadcast %1303 : vector<1x8xf32> to vector<2x8xf32>
    %1305 = arith.addf %1302, %1304 : vector<2x8xf32>
    %cst_573 = arith.constant 2.000000e-01 : f32
    %1306 = vector.broadcast %cst_573 : f32 to vector<2x8xf32>
    %1307 = arith.mulf %1305, %1306 : vector<2x8xf32>
    %1308 = math.tanh %1307 : vector<2x8xf32>
    %cst_574 = arith.constant 5.000000e+00 : f32
    %1309 = vector.broadcast %cst_574 : f32 to vector<2x8xf32>
    %1310 = arith.mulf %1309, %1308 : vector<2x8xf32>
    %1311 = math.exp %1310 : vector<2x8xf32>
    %c0_575 = arith.constant 0 : index
    %c0_576 = arith.constant 0 : index
    %1312 = vector.load %arg17[%c0_575, %c0_576] : memref<2x8xf32, #tpu.memory_space<vmem>>, vector<2x8xf32>
    tpu.vector_store %arg17[%c0_575, %c0_576], %1311 {strides = array<i32>} : memref<2x8xf32, #tpu.memory_space<vmem>>, vector<2x8xf32>,
    return
  }
}

</mosaic_0001>

<bundles_post_ra>
// kernel: forward.2
= control target key start
LH: loop header
LB: loop body
LE: loop exit
PB: predicated region body
PF: predicated region fallthrough
CT: control target
= control target key end

     0   :  { %s2362_s0 = inlined_call_operand.vmem [shape: f32[2,8,32], index: 0, kind: input, shape index: {}]   ;;  %s2363_s1 = inlined_call_operand.vmem [shape: bf16[2,32,96], index: 1, kind: input, shape index: {}]   ;;  %s2364_s2 = inlined_call_operand.vmem [shape: f32[2,1,96], index: 2, kind: input, shape index: {}]   ;;  %s2365_s3 = inlined_call_operand.hbm [shape: bf16[2,32,32], index: 3, kind: input, shape index: {}]   ;;  %s2366_s4 = inlined_call_operand.vmem [shape: f32[2,1,32], index: 4, kind: input, shape index: {}]   ;;  %s2367_s5 = inlined_call_operand.vmem [shape: f32[2,1,32], index: 5, kind: input, shape index: {}]   ;;  %s2368_s6 = inlined_call_operand.vmem [shape: f32[2,1,32], index: 6, kind: input, shape index: {}]   ;;  %s2369_s7 = inlined_call_operand.hbm [shape: bf16[2,32,128], index: 7, kind: input, shape index: {}]   ;;  %s2370_s8 = inlined_call_operand.vmem [shape: f32[2,1,128], index: 8, kind: input, shape index: {}]   ;;  %s2371_s9 = inlined_call_operand.vmem [shape: bf16[2,128,32], index: 9, kind: input, shape index: {}]   ;;  %s2372_s10 = inlined_call_operand.vmem [shape: f32[2,1,32], index: 10, kind: input, shape index: {}]   ;;  %s2373_s11 = inlined_call_operand.vmem [shape: f32[2,1,32], index: 11, kind: input, shape index: {}]   ;;  %s2374_s12 = inlined_call_operand.hbm [shape: f32[2,1,32], index: 12, kind: input, shape index: {}]   ;;  %s2375_s13 = inlined_call_operand.vmem [shape: f32[2,1,32], index: 13, kind: output, shape index: {}]  }
   0x1   :  { %2383 = sst [smem:[#allocation19_spill]] %s2362_s0 }
   0x2   :  { %2384 = sst [smem:[#allocation20_spill]] %s2363_s1 }
   0x3   :  { %2385 = sst [smem:[#allocation21_spill]] %s2364_s2 }
   0x4   :  { %2386 = sst [smem:[#allocation22_spill]] %s2365_s3 }
   0x5   :  { %2387 = sst [smem:[#allocation23_spill]] %s2366_s4 }
   0x6   :  { %2388 = sst [smem:[#allocation24_spill]] %s2367_s5 }
   0x7   :  { %2389 = sst [smem:[#allocation25_spill]] %s2368_s6 }
   0x8   :  { %2390 = sst [smem:[#allocation26_spill]] %s2369_s7 }
   0x9   :  { %2391 = sst [smem:[#allocation27_spill]] %s2370_s8 }
   0xa   :  { %2392 = sst [smem:[#allocation28_spill]] %s2371_s9 }
   0xb   :  { %2393 = sst [smem:[#allocation29_spill]] %s2372_s10 }
   0xc   :  { %2394 = sst [smem:[#allocation30_spill]] %s2373_s11 }
   0xd   :  { %2395 = sst [smem:[#allocation31_spill]] %s2374_s12 }
   0xe   :  { %2396 = sst [smem:[#allocation32_spill]] %s2375_s13 }
   0xf   :  { %18 = vsyncpa [#allocation5], 0 }
  0x10   :  { %20 = vsyncpa [#allocation5 + $0x1], 0 }
  0x11   :  { %21 = vsyncpa [#allocation7], 0 }
  0x12   :  { %23 = vsyncpa [#allocation7 + $0x1], 0  ;;  %s2044_s25 = smov 0   ;;  %s2046_s26 = smov 0  }
  0x13   :  { %s2048_s27 = smov 0   ;;  %s2050_s28 = smov 0  }
  0x14   :  { %s2052_s29 = smov 0   ;;  %s2054_s30 = smov 0  }
  0x15   :  { %s2056_s14 = smov 0   ;;  %s2058_s15 = smov 0  }
  0x16 LB: > { %2397 = sst [smem:[#allocation11_spill]] %s1929_s26  ;;  %s2377_s16 = sadd.s32 4294967295, %s1953_s15   ;;  %s1953_s15 = sphi %s2058_s15, %s29_s15   ;;  %s1949_s14 = sphi %s2056_s14, %s2439_s14   ;;  %s1945_s30 = sphi %s2054_s30, %s2438_s30   ;;  %s1941_s29 = sphi %s2052_s29, %s2437_s29   ;;  %s1937_s28 = sphi %s2050_s28, %s2436_s28   ;;  %s1933_s27 = sphi %s2048_s27, %s2435_s27   ;;  %s1929_s26 = sphi %s2046_s26, %s2434_s26   ;;  %s1925_s25 = sphi %s2044_s25, %s2433_s25  }
  0x17   : > { %2398 = sst [smem:[#allocation12_spill]] %s1933_s27  ;;  %s38_s17 = sadd.s32 1, %s1945_s30 }
  0x18   : > { %2399 = sst [smem:[#allocation13_spill]] %s1945_s30  ;;  %p39_p0 = scmp.ge.s32.totalorder %s38_s17, 2 }
  0x19   : > { %2400 = sst [smem:[#allocation14_spill]] %s1949_s14  ;;  %s41_s18 = sadd.s32 1, %s1949_s14 }
  0x1a   : > { %2401 = sst [smem:[#allocation15_spill]] %s1953_s15  ;;  %s126_s19 = sadd.s32 1, %s1933_s27 }
  0x1b   : > { %p133_p1 = scmp.ne.s32.totalorder %s1933_s27, %s1929_s26  ;;  %s2441_s17 = smov (%p39_p0, %s38_s17), 0 }
  0x1c   : > { %2402 = sst [smem:[#allocation16_spill]] %s2441_s17  ;;  %s2443_s18 = smov (!%p39_p0, %s41_s18), %s1949_s14 }
  0x1d   : > { %s123_s20 = ssub.s32 %s1945_s30, %s2441_s17  ;;  %p134_p2 = scmp.eq.s32.totalorder %s1953_s15, 0 }
  0x1e   : > { %p43_p3 = scmp.ge.s32.totalorder %s2443_s18, 2  ;;  %p124_p4 = scmp.eq.s32.totalorder %s123_s20, 0 }
  0x1f   : > { %p135_p5 = por %p134_p2, %p133_p1  ;;  %p139_p6 = scmp.ne.s32.totalorder %s1929_s26, %s1925_s25 }
  0x20   : > { %s2445_s18 = smov (%p43_p3, %s2443_s18), 0  ;;  %p140_p7 = scmp.eq.s32.totalorder %s2377_s16, 0 }
  0x21   : > { %2403 = sst [smem:[#allocation17_spill]] %s2445_s18  ;;  %p1673_p8 = scmp.lt.s32.totalorder %s1953_s15, 4 }
  0x22   : > { %s2098_s21 = scalar_select %p124_p4, %s1933_s27, %s126_s19  }
  0x23   : > { %s2104_s22 = sand.u32 1, %s1933_s27   ;;  %p2106_p9 = por %p140_p7, %p139_p6 }
  0x24   : > { %2404 = sst [smem:[#allocation18_spill]] %s2098_s21  ;;  %s1554_s24 = sshll.u32 %s2104_s22, 4 }
  0x25   : > { %s1639_s20 = sshll.u32 %s1945_s30, 4  ;;  %p2112_p10 = pnand %p1673_p8, %p135_p5 }
  0x26   : > { %s484_s19 = sand.u32 1, %s1953_s15   ;;  %s2407_s7 = sld [smem:[#allocation26_spill]] }
  0x27   : > { %s488_s14 = scalar_lea.vmem [#allocation6], %s1554_s24  ;;  %p1560_p11 = scmp.ge.s32.totalorder %s1953_s15, 1 }
  0x28   : > { %s496_s21 = sshll.u32 %s488_s14, 4  ;;  %s485_s11 = scalar_lea.sflag [#allocation7], %s484_s19  ;;  %s497_s21 = int_to_ptr.vmem [resolvable:$true] %s496_s21 }
  0x29   : > { %s1955_s9 = smov 64   ;;  %s1956_s10 = smov 4  }
  0x2a   : > { %p547_p12 = scmp.lt.s32.totalorder %s1953_s15, 5  ;;  %s2409_s3 = sld [smem:[#allocation22_spill]] }
  0x2b   : > { %s445_s19 = scalar_lea.sflag [#allocation5], %s2104_s22  ;;  %s2410_s12 = sld [smem:[#allocation31_spill]] }
  0x2c   : > { %s493_s16 = scalar_lea.hbm %s2407_s7, %s1639_s20  ;;  %p2124_p13 = pnand %p1560_p11, %p547_p12 }
  0x2d   : > { %s494_s27 = sshll.u32 %s493_s16, 4  ;;  %s448_s7 = scalar_lea.vmem [#allocation4], %s1554_s24  ;;  %s495_s27 = int_to_ptr.hbm [resolvable:$true] %s494_s27 }
  0x2e   : > { %1669 = dma.hbm_to_vmem [thread:$0]  (!%p2112_p10), %s495_s27, 256, %s497_s21, %s485_s11, %s1955_s9, %s1955_s9, %s1956_s10  }
  0x2f   : > { %s456_s8 = sshll.u32 %s448_s7, 4  ;;  %s535_s4 = scalar_lea.vmem [#allocation8], %s2104_s22  ;;  %s457_s8 = int_to_ptr.vmem [resolvable:$true] %s456_s8 }
  0x30   : > { %s453_s18 = scalar_lea.hbm %s2409_s3, %s1639_s20  ;;  %s542_s2 = sshll.u32 %s535_s4, 4  ;;  %s543_s2 = int_to_ptr.vmem [resolvable:$true] %s542_s2 }
  0x31   : > { %s454_s6 = sshll.u32 %s453_s18, 4  ;;  %s538_s21 = scalar_lea.hbm %s2410_s12, %s1945_s30  ;;  %s455_s6 = int_to_ptr.hbm [resolvable:$true] %s454_s6 }
  0x32   : > { %1666 = dma.hbm_to_vmem [thread:$0]  (!%p2112_p10), %s455_s6, 256, %s457_s8, %s445_s19, %s1955_s9, %s1955_s9, %s1956_s10  }
  0x33   : > { %s540_s1 = sshll.u32 %s538_s21, 4  ;;  %551 = sbr.rel (%p2124_p13) target bundleno = 2447 (0x98f), region = 72  ;;  %s541_s1 = int_to_ptr.hbm [resolvable:$true] %s540_s1 }
  0x34   : > { %1672 = dma.hbm_to_vmem [thread:$0]  (!%p2112_p10), %s541_s1, 16, %s543_s2, %s485_s11  }
  0x35   : > { %s2144_s7 = sand.u32 (!%p2124_p13), 1, %s1929_s26  }
  0x36   : > { %s1561_s6 = sshll.u32 (!%p2124_p13), %s2144_s7, 4  ;;  %s554_s8 = scalar_lea.sflag (!%p2124_p13), [#allocation5], %s2144_s7 }
  0x37   : > { %s2148_s5 = scalar_lea.vmem (!%p2124_p13), [#allocation4], %s1561_s6 }
  0x38   : > { %1916 = dma.done.wait (%p2106_p9), %s554_s8, 256  }
  0x39   : > { %1918 = vsyncadd (%p2106_p9), %s554_s8, 4294967040  ;;  %s2411_s1 = sadd.s32 4294967295, %s1953_s15   ;;  %s2156_s9 = scalar_lea.vmem [#allocation6], %s1561_s6 }
  0x3a   : > { %s563_s2 = sand.u32 1, %s2411_s1  }
  0x3b   : > { %s564_s4 = scalar_lea.sflag [#allocation7], %s563_s2 }
  0x3c   : > { %1920 = dma.done.wait (%p2106_p9), %s564_s4, 272  }
  0x3d   : > { %1922 = vsyncadd (%p2106_p9), %s564_s4, 4294967024  ;;  %p662_p0 = scmp.lt.s32.totalorder %s1941_s29, 1  ;;  %p666_p1 = scmp.lt.s32.totalorder %s1937_s28, 1 }
  0x3e   : > { %s2413_s0 = sld [smem:[#allocation19_spill]]  ;;  %s576_s26 = scalar_lea.vmem [#allocation8], %s2144_s7 }
  0x3f   : > { %s2447_s29 = smov (!%p662_p0, %s1941_s29), 1  ;;  %s2414_s19 = sld [smem:[#allocation20_spill]] }
  0x40   : > { %s2168_s10 = scalar_select %p666_p1, %s1937_s28, 1 }
  0x41   : > { %s1563_s11 = sshll.u32 %s2447_s29, 3  ;;  %s2415_s8 = sld [smem:[#allocation21_spill]] }
  0x42   : > { %s1641_s14 = sshll.u32 %s2168_s10, 4  ;;  %s2416_s3 = sld [smem:[#allocation23_spill]] }
  0x43   : > { %s2419_s16 = sld [smem:[#allocation27_spill]]  ;;  %s1642_s18 = sshll.u32 %s2168_s10, 6 }
  0x44   : > { %s665_s17 = scalar_lea.vmem %s2413_s0, %s1563_s11  ;;  %s2418_s11 = sld [smem:[#allocation25_spill]] }
  0x45   : > { %s670_s27 = scalar_lea.vmem %s2414_s19, %s1641_s14  ;;  %s2420_s6 = sld [smem:[#allocation29_spill]] }
  0x46   : > { %s2422_s23 = sld [smem:[#allocation30_spill]]  ;;  %p1568_p2 = scmp.ne.s32.totalorder %s1937_s28, 0 }
  0x47   : > { %s673_s1 = scalar_lea.vmem %s2415_s8, %s2168_s10 }
  0x48   : > { %s676_s12 = scalar_lea.vmem %s2416_s3, %s2168_s10  ;;  %s2421_s3 = sld [smem:[#allocation28_spill]] }
  0x49   : > { %s685_s14 = scalar_lea.vmem %s2419_s16, %s2168_s10 }
  0x4a   : > { %s682_s25 = scalar_lea.vmem %s2418_s11, %s2168_s10  ;;  %704 = sbr.rel (%p1568_p2) target bundleno = 81 (0x51), region = 88 }
  0x4b   : > { %s693_s8 = scalar_lea.vmem %s2420_s6, %s2168_s10 }
  0x4c   : > { %s696_s24 = scalar_lea.vmem %s2422_s23, %s2168_s10 }
  0x4e   : > { %s2210_s4 = scalar_lea.vmem %s2421_s3, %s1642_s18 }
  0x4f   : > { %v705_v0 = vld [vmem:[%s665_s17] sm:$0xff]  ;;  %vm706_vm0 = vcmask 261120  }
  0x50   : > { %707 = vst.msk [vmem:[#allocation2] sm:$0xff] %vm706_vm0, %v705_v0 }
  0x51 PF: > { %v1644_v1 = vld [vmem:[%s670_s27 + $0x8] sm:$0xff]  ;;  %v1643_v2 = vld [vmem:[%s670_s27] sm:$0xff]  ;;  %vm730_vm1 = vcmask 261120   ;;  %s1957_s0 = smov 88   ;;  %s1958_s13 = smov 96   ;;  %vm753_vm2 = vcmask 64512  }
  0x52   : > { %740 = vmatpush.bf16.msra.mxu0 %v1644_v1  ;;  %v1757_v5 = vld [vmem:[%s673_s1] ss:$0 sm:$0xff]  ;;  %s1959_s15 = smov 120   ;;  %s1960_s17 = smov 72   ;;  %vm804_vm7 = vcmask 1043456  }
  0x53   : > { %s1961_s27 = smov 104   ;;  %s1962_s1 = smov 80  }
  0x54   : > { %s1963_s20 = smov 64   ;;  %s1964_s11 = smov 112  }
  0x55   : > { %s1965_s16 = smov 40   ;;  %s1966_s18 = smov 48  }
  0x56   : > { %741 = vmatpush.bf16.msra.mxu0 %v1643_v2  ;;  %s1967_s19 = smov 56   ;;  %s1968_s21 = smov 8  }
  0x57   : > { %v2218_v3 = vld [vmem:[#allocation2] sm:$0xff]  ;;  %s1969_s6 = smov 16   ;;  %s1970_s2 = smov 24  }
  0x58   : > { %v709_v4 = vpack.c.bf16 %v2218_v3, %v2218_v3  ;;  %p1636_p3 = scmp.ne.s32.totalorder %s1937_s28, 1 }
  0x5a   : > { %1577 = vmatmul.msk.bf16.vlgmr.msra.gmra.mxu0 %vm730_vm1, %v709_v4 }
  0xd7   : > { %v743_v6 = vpop.f32.mrf.mxu0 }
  0xd8   : > { %v744_v7 = vadd.f32 %v1757_v5, %v743_v6 }
  0xda   : > { %v747_v8 = vpack.c.bf16 %v744_v7, %v744_v7 }
  0xdc   : > { %v749_v9 = vunpack.c.l.b16 %v747_v8 }
  0xde   : > { %v2223_v10 = vpack.c.b16 %v749_v9, %v749_v9 }
  0xdf   : > { %v745_v11 = vpop.f32.mrf.mxu0 }
  0xe0   : > { %824 = vrot.lane.b32.xlu2 %v2223_v10, %s1957_s0  ;;  %751 = vrot.lane.b32.xlu0 %v2223_v10, %s1958_s13 }
  0xe8   : > { %822 = vrot.lane.b32.xlu2 %v2223_v10, %s1959_s15 }
  0xf0   : > { %976 = vrot.lane.b32.xlu2 %v2223_v10, %s1960_s17 }
  0xf8   : > { %974 = vrot.lane.b32.xlu2 %v2223_v10, %s1961_s27 }
 0x100   : > { %900 = vrot.lane.b32.xlu2 %v2223_v10, %s1962_s1 }
 0x13a   : > { %v825_v12 = vpop.permute.xlu2 %824 }
 0x13b   : > { %v830_v48 = vsel %vm753_vm2, %v825_v12, 0 }
 0x142   : > { %v2231_v13 = vpop.permute.xlu2 %822 }
 0x14a   : > { %v977_v14 = vpop.permute.xlu2 %976 }
 0x14b   : > { %v982_v15 = vsel %vm753_vm2, %v977_v14, 0 }
 0x14c   : > { %991 = vmatpush.bf16.xpose.msra.mxu3 %v982_v15 }
 0x152   : > { %v975_v16 = vpop.permute.xlu2 %974  ;;  %v752_v17 = vpop.permute.xlu0 %751 }
 0x153   : > { %1584 = vmatmul.msk.bf16.vlgmr.msra.gmra.mxu3 %vm753_vm2, %v975_v16  ;;  %v758_v18 = vsel %vm753_vm2, %v752_v17, 0 }
 0x154   : > { %767 = vmatpush.bf16.xpose.msra.mxu1 %v758_v18 }
 0x15a   : > { %v901_v19 = vpop.permute.xlu2 %900 }
 0x15b   : > { %1578 = vmatmul.msk.bf16.vlgmr.msra.gmra.mxu1 %vm753_vm2, %v747_v8  ;;  %v906_v20 = vsel %vm753_vm2, %v901_v19, 0 }
 0x15c   : > { %915 = vmatpush.bf16.xpose.msrb.mxu0 %v906_v20 }
 0x1d6   : > { %v993_v21 = vpop.f32.mrf.mxu3 }
 0x1d7   : > { %v997_v32 = vmul.f32 0.35355338, %v993_v21 }
 0x1d8   : > { %v769_v22 = vpop.f32.mrf.mxu1 }
 0x1d9   : > { %v773_v23 = vmul.f32 0.35355338, %v769_v22  ;;  %v998_v33 = vsel %vm753_vm2, %v997_v32, -inf }
 0x1db   : > { %v774_v24 = vsel %vm753_vm2, %v773_v23, -inf }
 0x1dc   : > { %775 = vmax.xlane.f32.xlu0 %v774_v24 }
 0x1de   : > { %v995_v25 = vpop.f32.mrf.mxu3 }
 0x1e0   : > { %v771_v26 = vpop.f32.mrf.mxu1 }
 0x24f   : > { %v776_v27 = vpop.xlane.xlu0 %775 }
 0x250   : > { %v777_v28 = vsub.f32 %v773_v23, %v776_v27 }
 0x252   : > { %v778_v29 = vmul.f32 1.442695, %v777_v28 }
 0x254   : > { %1765 = vpow2.f32 %v778_v29 }
 0x25a   : > { %v1766_v30 = vpop.eup %1765 }
 0x25b   : > { %v780_v31 = vsel %vm753_vm2, %v1766_v30, 0.0 }
 0x25c   : > { %781 = vadd.xlane.f32.xlu1 %v780_v31 }
 0x275   : > { %799 = vrot.lane.b32.xlu1 %v2223_v10, %s1963_s20 }
 0x27d   : > { %898 = vrot.lane.b32.xlu1 %v2223_v10, %s1964_s11 }
 0x2a7   : > { %999 = vmax.xlane.f32.xlu1 %v998_v33 }
 0x2c0   : > { %1023 = vrot.lane.b32.xlu1 %v2223_v10, %s1965_s16 }
 0x2cf   : > { %v782_v34 = vpop.xlane.xlu1 %781 }
 0x2d0   : > { %1767 = vrcp.f32 %v782_v34  ;;  %v794_v39 = vand.u32 2147483648, %v782_v34  ;;  %vm788_vm4 = vweird.f32 %v782_v34  ;;  %v792_v41 = vand.u32 2147483647, %v782_v34 }
 0x2d2   : > { %v795_v43 = vor.u32 1.1754944e-38, %v794_v39  ;;  %vm793_vm6 = vcmp.eq.f32.partialorder %v792_v41, 8.507059e+37 }
 0x2d6   : > { %v1768_v35 = vpop.eup %1767 }
 0x2d7   : > { %v784_v36 = vmul.f32 %v1768_v35, %v782_v34  ;;  %vm789_vm3 = vweird.f32 %v1768_v35 }
 0x2d8   : > { %vm790_vm5 = vmor %vm788_vm4, %vm789_vm3 }
 0x2d9   : > { %v785_v37 = vsub.f32 1.0, %v784_v36 }
 0x2db   : > { %v786_v38 = vmul.f32 %v1768_v35, %v785_v37 }
 0x2dd   : > { %v787_v40 = vadd.f32 %v1768_v35, %v786_v38 }
 0x2df   : > { %v791_v42 = vsel %vm790_vm5, %v1768_v35, %v787_v40 }
 0x2e0   : > { %v796_v44 = vsel %vm793_vm6, %v795_v43, %v791_v42  ;;  %vm896_vm6 = vcmask 130112  }
 0x2e1   : > { %v797_v45 = vmul.f32 %v1766_v30, %v796_v44 }
 0x2e3   : > { %v798_v49 = vpack.c.bf16 %v797_v45, %v797_v45 }
 0x2e7   : > { %v800_v46 = vpop.permute.xlu1 %799 }
 0x2e8   : > { %v806_v47 = vsel %vm804_vm7, %v800_v46, 0 }
 0x2e9   : > { %815 = vmatpush.bf16.msra.mxu2 %v806_v47 }
 0x2ec   : > { %1579 = vmatmul.msk.bf16.vlgmr.msra.gmra.mxu2 %vm753_vm2, %v798_v49 }
 0x2ed   : > { %839 = vmatpush.bf16.xpose.msrb.mxu2 %v830_v48 }
 0x2ef   : > { %v899_v50 = vpop.permute.xlu1 %898 }
 0x2f0   : > { %1582 = vmatmul.msk.bf16.vlgmr.msrb.gmra.mxu0 %vm753_vm2, %v899_v50 }
 0x2fc   : > { %1580 = vmatmul.msk.bf16.vlgmr.msrb.gmra.mxu2 %vm753_vm2, %v2231_v13 }
 0x31a   : > { %v1000_v51 = vpop.xlane.xlu1 %999 }
 0x31b   : > { %v1001_v52 = vsub.f32 %v997_v32, %v1000_v51 }
 0x31d   : > { %v1002_v53 = vmul.f32 1.442695, %v1001_v52 }
 0x31f   : > { %1769 = vpow2.f32 %v1002_v53 }
 0x325   : > { %v2252_v58 = vpop.eup %1769 }
 0x326   : > { %v1004_v61 = vsel %vm753_vm2, %v2252_v58, 0.0 }
 0x332   : > { %v1024_v43 = vpop.permute.xlu1 %1023 }
 0x333   : > { %v1029_v48 = vsel %vm804_vm7, %v1024_v43, 0  ;;  %v1656_v43 = vld [vmem:[%s2210_s4 + $0x38] sm:$0xff] }
 0x334   : > { %1274 = vmatpush.bf16.msrb.mxu3 %v1656_v43 }
 0x36d   : > { %v917_v54 = vpop.f32.mrf.mxu0 }
 0x36e   : > { %v921_v55 = vmul.f32 0.35355338, %v917_v54 }
 0x36f   : > { %v817_v56 = vpop.f32.mrf.mxu2 }
 0x370   : > { %821 = vst.msk [vmem:[#allocation3] sm:$0xff] %vm753_vm2, %v817_v56  ;;  %v922_v57 = vsel %vm753_vm2, %v921_v55, -inf }
 0x371   : > { %923 = vmax.xlane.f32.xlu0 %v922_v57 }
 0x375   : > { %v919_v59 = vpop.f32.mrf.mxu0 }
 0x377   : > { %v819_v60 = vpop.f32.mrf.mxu2 }
 0x379   : > { %1005 = vadd.xlane.f32.xlu0 %v1004_v61 }
 0x37f   : > { %v841_v62 = vpop.f32.mrf.mxu2 }
 0x380   : > { %v845_v63 = vmul.f32 0.35355338, %v841_v62 }
 0x382   : > { %v846_v0 = vsel %vm753_vm2, %v845_v63, -inf }
 0x383   : > { %847 = vmax.xlane.f32.xlu2 %v846_v0 }
 0x387   : > { %v843_v1 = vpop.f32.mrf.mxu2 }
 0x388   : > { %v1646_v1 = vld [vmem:[%s2148_s5 + $0x8] sm:$0xff] }
 0x389   : > { %1081 = vmatpush.bf16.msra.mxu0 %v1646_v1 }
 0x3e4   : > { %v924_v2 = vpop.xlane.xlu0 %923 }
 0x3e5   : > { %v925_v4 = vsub.f32 %v921_v55, %v924_v2 }
 0x3e7   : > { %v926_v5 = vmul.f32 1.442695, %v925_v4 }
 0x3e9   : > { %1771 = vpow2.f32 %v926_v5 }
 0x3ec   : > { %v1006_v19 = vpop.xlane.xlu0 %1005 }
 0x3ed   : > { %v1018_v51 = vand.u32 2147483648, %v1006_v19  ;;  %vm1012_vm3 = vweird.f32 %v1006_v19  ;;  %v1016_v52 = vand.u32 2147483647, %v1006_v19 }
 0x3ef   : > { %v1772_v6 = vpop.eup %1771  ;;  %v1019_v54 = vor.u32 1.1754944e-38, %v1018_v51  ;;  %vm1017_vm5 = vcmp.eq.f32.partialorder %v1016_v52, 8.507059e+37  ;;  %v1653_v51 = vld [vmem:[%s2210_s4 + $0x20] sm:$0xff] }
 0x3f0   : > { %v928_v7 = vsel %vm753_vm2, %v1772_v6, 0.0 }
 0x3f1   : > { %929 = vadd.xlane.f32.xlu2 %v928_v7 }
 0x3f6   : > { %v848_v8 = vpop.xlane.xlu2 %847 }
 0x3f7   : > { %v849_v9 = vsub.f32 %v845_v63, %v848_v8  ;;  %v1758_v8 = vld [vmem:[%s676_s12] ss:$0 sm:$0xff] }
 0x3f9   : > { %v850_v11 = vmul.f32 1.442695, %v849_v9 }
 0x3fb   : > { %1773 = vpow2.f32 %v850_v11 }
 0x401   : > { %v1774_v12 = vpop.eup %1773 }
 0x402   : > { %v852_v13 = vsel %vm753_vm2, %v1774_v12, 0.0 }
 0x403   : > { %853 = vadd.xlane.f32.xlu0 %v852_v13 }
 0x409   : > { %947 = vrot.lane.b32.xlu2 %v2223_v10, %s1966_s18 }
 0x417   : > { %871 = vrot.lane.b32.xlu0 %v2223_v10, %s1967_s19 }
 0x464   : > { %v930_v14 = vpop.xlane.xlu2 %929 }
 0x465   : > { %1775 = vrcp.f32 %v930_v14  ;;  %v942_v21 = vand.u32 2147483648, %v930_v14  ;;  %v940_v23 = vand.u32 2147483647, %v930_v14  ;;  %vm936_vm9 = vweird.f32 %v930_v14 }
 0x467   : > { %v943_v25 = vor.u32 1.1754944e-38, %v942_v21  ;;  %vm941_vm11 = vcmp.eq.f32.partialorder %v940_v23, 8.507059e+37 }
 0x46b   : > { %v1776_v15 = vpop.eup %1775 }
 0x46c   : > { %v932_v16 = vmul.f32 %v1776_v15, %v930_v14  ;;  %v948_v17 = vpop.permute.xlu2 %947  ;;  %vm937_vm8 = vweird.f32 %v1776_v15 }
 0x46d   : > { %v953_v18 = vsel %vm804_vm7, %v948_v17, 0  ;;  %vm938_vm10 = vmor %vm936_vm9, %vm937_vm8 }
 0x46e   : > { %v933_v20 = vsub.f32 1.0, %v932_v16  ;;  %962 = vmatpush.bf16.msrb.mxu1 %v953_v18 }
 0x470   : > { %v934_v22 = vmul.f32 %v1776_v15, %v933_v20 }
 0x472   : > { %v935_v24 = vadd.f32 %v1776_v15, %v934_v22 }
 0x474   : > { %v939_v10 = vsel %vm938_vm10, %v1776_v15, %v935_v24  ;;  %v1971_v15 = vmov 32.0  }
 0x475   : > { %v944_v26 = vsel %vm941_vm11, %v943_v25, %v939_v10  ;;  %v1648_v10 = vld [vmem:[%s2156_s9 + $0x8] sm:$0xff] }
 0x476   : > { %v854_v27 = vpop.xlane.xlu0 %853  ;;  %v945_v28 = vmul.f32 %v1772_v6, %v944_v26  ;;  %1158 = vmatpush.bf16.msra.mxu1 %v1648_v10  ;;  %v1647_v26 = vld [vmem:[%s2156_s9] sm:$0xff]  ;;  %s2424_s9 = sld [smem:[#allocation24_spill]] }
 0x477   : > { %1777 = vrcp.f32 %v854_v27  ;;  %v866_v34 = vand.u32 2147483648, %v854_v27  ;;  %v864_v37 = vand.u32 2147483647, %v854_v27  ;;  %vm860_vm13 = vweird.f32 %v854_v27 }
 0x478   : > { %v946_v29 = vpack.c.bf16 %v945_v28, %v945_v28  ;;  %1779 = vrcp.f32 %v1006_v19 }
 0x479   : > { %v867_v39 = vor.u32 1.1754944e-38, %v866_v34  ;;  %vm865_vm15 = vcmp.eq.f32.partialorder %v864_v37, 8.507059e+37  ;;  %1781 = vrcp.f32 %v1971_v15 }
 0x47a   : > { %1583 = vmatmul.msk.bf16.vlgmr.msrb.gmra.mxu1 %vm753_vm2, %v946_v29 }
 0x47b   : > { %1159 = vmatpush.bf16.msra.mxu1 %v1647_v26 }
 0x47c   : > { %s2425_s23 = scalar_lea.vmem %s2424_s9, %s2168_s10  ;;  %s2430_s10 = sld [smem:[#allocation32_spill]] (!%p1636_p3) }
 0x47d   : > { %v1778_v30 = vpop.eup %1777 }
 0x47e   : > { %v856_v31 = vmul.f32 %v1778_v30, %v854_v27  ;;  %v1780_v32 = vpop.eup %1779  ;;  %vm861_vm12 = vweird.f32 %v1778_v30 }
 0x47f   : > { %v1008_v35 = vmul.f32 %v1780_v32, %v1006_v19  ;;  %vm862_vm14 = vmor %vm860_vm13, %vm861_vm12  ;;  %vm1013_vm0 = vweird.f32 %v1780_v32  ;;  %v1782_v16 = vpop.eup %1781 }
 0x480   : > { %v857_v33 = vsub.f32 1.0, %v856_v31  ;;  %vm1014_vm4 = vmor %vm1012_vm3, %vm1013_vm0  ;;  %v1095_v17 = vmul.f32 32.0, %v1782_v16  ;;  %vm1099_vm8 = vweird.f32 %v1782_v16 }
 0x481   : > { %v1009_v40 = vsub.f32 1.0, %v1008_v35 }
 0x482   : > { %v858_v36 = vmul.f32 %v1778_v30, %v857_v33  ;;  %v1096_v18 = vsub.f32 1.0, %v1095_v17 }
 0x483   : > { %v1010_v46 = vmul.f32 %v1780_v32, %v1009_v40 }
 0x484   : > { %v859_v38 = vadd.f32 %v1778_v30, %v858_v36  ;;  %v1097_v19 = vmul.f32 %v1782_v16, %v1096_v18  ;;  %v1759_v36 = vld [vmem:[%s2425_s23] ss:$0 sm:$0xff] }
 0x485   : > { %v1011_v50 = vadd.f32 %v1780_v32, %v1010_v46 }
 0x486   : > { %v863_v41 = vsel %vm862_vm14, %v1778_v30, %v859_v38  ;;  %v1098_v20 = vadd.f32 %v1782_v16, %v1097_v19  ;;  %v1760_v38 = vld [vmem:[%s682_s25] ss:$0 sm:$0xff] }
 0x487   : > { %v868_v42 = vsel %vm865_vm15, %v867_v39, %v863_v41  ;;  %v1015_v53 = vsel %vm1014_vm4, %v1780_v32, %v1011_v50 }
 0x488   : > { %v869_v44 = vmul.f32 %v1774_v12, %v868_v42  ;;  %v1020_v55 = vsel %vm1017_vm5, %v1019_v54, %v1015_v53  ;;  %v2278_v21 = vsel %vm1099_vm8, %v1782_v16, %v1098_v20 }
 0x489   : > { %v872_v45 = vpop.permute.xlu0 %871  ;;  %v1021_v56 = vmul.f32 %v2252_v58, %v1020_v55  ;;  %v1645_v58 = vld [vmem:[%s2148_s5] sm:$0xff]  ;;  %v1652_v55 = vld [vmem:[%s2210_s4 + $0x18] sm:$0xff] }
 0x48a   : > { %v877_v47 = vsel %vm804_vm7, %v872_v45, 0  ;;  %v870_v49 = vpack.c.bf16 %v869_v44, %v869_v44  ;;  %1082 = vmatpush.bf16.msra.mxu0 %v1645_v58  ;;  %vm1048_vm7 = vcmask 261312   ;;  %v1761_v44 = vld [vmem:[%s685_s14] ss:$0 sm:$0xff]  ;;  %v1655_v45 = vld [vmem:[%s2210_s4 + $0x30] sm:$0xff] }
 0x48b   : > { %886 = vmatpush.bf16.msra.mxu2 %v877_v47  ;;  %v1022_v57 = vpack.c.bf16 %v1021_v56, %v1021_v56  ;;  %1275 = vmatpush.bf16.msrb.mxu3 %v1655_v45  ;;  %v1651_v56 = vld [vmem:[%s2210_s4 + $0x10] sm:$0xff] }
 0x48e   : > { %1581 = vmatmul.msk.bf16.vlgmr.msra.gmra.mxu2 %vm753_vm2, %v870_v49 }
 0x48f   : > { %1038 = vmatpush.bf16.msrb.mxu2 %v1029_v48  ;;  %v1654_v48 = vld [vmem:[%s2210_s4 + $0x28] sm:$0xff] }
 0x490   : > { %1276 = vmatpush.bf16.msrb.mxu3 %v1654_v48  ;;  %v1763_v48 = vld [vmem:[%s696_s24] ss:$0 sm:$0xff]  ;;  %s2431_s24 = scalar_lea.vmem (!%p1636_p3), %s2430_s10, %s2447_s29 }
 0x494   : > { %1277 = vmatpush.bf16.msrb.mxu3 %v1653_v51 }
 0x498   : > { %1278 = vmatpush.bf16.msrb.mxu3 %v1652_v55 }
 0x49c   : > { %1279 = vmatpush.bf16.msrb.mxu3 %v1651_v56 }
 0x49e   : > { %1585 = vmatmul.msk.bf16.vlgmr.msrb.gmra.mxu2 %vm753_vm2, %v1022_v57  ;;  %vm972_vm2 = vcmask 195712  }
 0x4f7   : > { %v964_v59 = vpop.f32.mrf.mxu1 }
 0x4ff   : > { %v966_v60 = vpop.f32.mrf.mxu1 }
 0x500   : > { %v1650_v60 = vld [vmem:[%s2210_s4 + $0x8] sm:$0xff] }
 0x501   : > { %1280 = vmatpush.bf16.msrb.mxu3 %v1650_v60 }
 0x511   : > { %v888_v61 = vpop.f32.mrf.mxu2 }
 0x512   : > { %893 = vrot.lane.b32.xlu0 %v888_v61, %s1968_s21 }
 0x519   : > { %v890_v62 = vpop.f32.mrf.mxu2 }
 0x51a   : > { %969 = vrot.lane.b32.xlu0 %v964_v59, %s1969_s6  ;;  %v1649_v62 = vld [vmem:[%s2210_s4] sm:$0xff] }
 0x51b   : > { %1281 = vmatpush.bf16.msrb.mxu3 %v1649_v62 }
 0x521   : > { %v1040_v63 = vpop.f32.mrf.mxu2 }
 0x522   : > { %1045 = vrot.lane.b32.xlu1 %v1040_v63, %s1970_s2 }
 0x529   : > { %v1042_v0 = vpop.f32.mrf.mxu2 }
 0x584   : > { %v894_v2 = vpop.permute.xlu0 %893 }
 0x585   : > { %897 = vst.msk [vmem:[#allocation3] sm:$0xff] %vm896_vm6, %v894_v2 }
 0x58c   : > { %v970_v4 = vpop.permute.xlu0 %969 }
 0x58d   : > { %973 = vst.msk [vmem:[#allocation3] sm:$0xff] %vm972_vm2, %v970_v4 }
 0x594   : > { %v1046_v5 = vpop.permute.xlu1 %1045 }
 0x595   : > { %1049 = vst.msk [vmem:[#allocation3] sm:$0xff] %vm1048_vm7, %v1046_v5 }
 0x59c   : > { %v1050_v6 = vld [vmem:[#allocation3] sm:$0xff] }
 0x59d   : > { %v1051_v7 = vpack.c.bf16 %v1050_v6, %v1050_v6 }
 0x59f   : > { %1594 = vmatmul.msk.bf16.vlgmr.msra.gmra.mxu0 %vm730_vm1, %v1051_v7 }
 0x61c   : > { %v1084_v9 = vpop.f32.mrf.mxu0 }
 0x61d   : > { %v1085_v11 = vadd.f32 %v1758_v8, %v1084_v9 }
 0x61f   : > { %v1088_v12 = vadd.f32 %v1085_v11, %v2218_v3 }
 0x621   : > { %v1091_v13 = vsel %vm730_vm1, %v1088_v12, 0.0 }
 0x622   : > { %1092 = vadd.xlane.f32.xlu0 %v1091_v13 }
 0x624   : > { %v1086_v14 = vpop.f32.mrf.mxu0 }
 0x695   : > { %v1093_v22 = vpop.xlane.xlu0 %1092 }
 0x696   : > { %v1101_v23 = vmul.f32 %v2278_v21, %v1093_v22 }
 0x698   : > { %v1102_v3 = vsub.f32 %v1088_v12, %v1101_v23  ;;  %v1972_v23 = vmov -1.0  }
 0x69a   : > { %v1103_v24 = vmul.f32 %v1102_v3, %v1102_v3 }
 0x69c   : > { %v1104_v25 = vsel %vm730_vm1, %v1103_v24, 0.0 }
 0x69d   : > { %1105 = vadd.xlane.f32.xlu2 %v1104_v25 }
 0x710   : > { %v1106_v27 = vpop.xlane.xlu2 %1105 }
 0x711   : > { %v1107_v28 = vmul.f32 %v1106_v27, %v2278_v21 }
 0x713   : > { %v1108_v29 = vadd.f32 1e-05, %v1107_v28  ;;  %v1762_v28 = vld [vmem:[%s693_s8] ss:$0 sm:$0xff] }
 0x715   : > { %1783 = vrsqrt.f32 %v1108_v29  ;;  %vm1115_vm10 = vweird.f32 %v1108_v29 }
 0x71b   : > { %v1784_v30 = vpop.eup %1783 }
 0x71c   : > { %v1110_v31 = vmul.f32 %v1784_v30, %v1108_v29  ;;  %vm1116_vm9 = vweird.f32 %v1784_v30 }
 0x71d   : > { %vm1117_vm11 = vmor %vm1115_vm10, %vm1116_vm9 }
 0x71e   : > { %v1111_v32 = vmul.f32 %v1784_v30, %v1110_v31 }
 0x720   : > { %v1112_v33 = vmul.f32 0.5, %v1111_v32 }
 0x722   : > { %v1113_v34 = vsub.f32 1.5, %v1112_v33 }
 0x724   : > { %v1114_v35 = vmul.f32 %v1784_v30, %v1113_v34 }
 0x726   : > { %v1118_v37 = vsel %vm1117_vm11, %v1784_v30, %v1114_v35 }
 0x727   : > { %v1119_v39 = vmul.f32 %v1118_v37, %v1102_v3 }
 0x729   : > { %v1123_v40 = vmul.f32 %v1759_v36, %v1119_v39 }
 0x72b   : > { %v2295_v41 = vadd.f32 %v1760_v38, %v1123_v40 }
 0x72d   : > { %v1128_v42 = vpack.c.bf16 %v2295_v41, %v2295_v41 }
 0x72f   : > { %1603 = vmatmul.msk.bf16.vlgmr.msra.gmra.mxu1 %vm730_vm1, %v1128_v42 }
 0x7ac   : > { %v1161_v46 = vpop.f32.mrf.mxu1 }
 0x7ad   : > { %v1162_v47 = vadd.f32 %v1761_v44, %v1161_v46 }
 0x7af   : > { %v1166_v49 = vmul.f32 0.70710677, %v1162_v47  ;;  %v1165_v25 = vmul.f32 0.5, %v1162_v47 }
 0x7b1   : > { %v1169_v50 = vand.u32 2147483647, %v1166_v49  ;;  %vm1167_vm0 = vcmp.ge.f32.partialorder %v1166_v49, 0.0 }
 0x7b2   : > { %v1168_v3 = vsel %vm1167_vm0, 1.0, %v1972_v23 }
 0x7b3   : > { %v1170_v52 = vmul.f32 0.3275911, %v1169_v50  ;;  %v1196_v6 = vsub.f32 0.0, %v1169_v50 }
 0x7b4   : > { %v1163_v53 = vpop.f32.mrf.mxu1 }
 0x7b5   : > { %v1171_v54 = vadd.f32 1.0, %v1170_v52  ;;  %v1197_v9 = vmul.f32 %v1196_v6, %v1169_v50  ;;  %v1764_v50 = vld [vmem:[%s576_s26] ss:$0 sm:$0xff] }
 0x7b7   : > { %1785 = vrcp.f32 %v1171_v54  ;;  %v1183_v63 = vand.u32 2147483648, %v1171_v54  ;;  %v1181_v1 = vand.u32 2147483647, %v1171_v54  ;;  %vm1177_vm13 = vweird.f32 %v1171_v54 }
 0x7b8   : > { %v1198_v13 = vmul.f32 1.442695, %v1197_v9 }
 0x7b9   : > { %v1184_v2 = vor.u32 1.1754944e-38, %v1183_v63  ;;  %vm1182_vm15 = vcmp.eq.f32.partialorder %v1181_v1, 8.507059e+37 }
 0x7ba   : > { %1787 = vpow2.f32 %v1198_v13 }
 0x7bd   : > { %v1786_v57 = vpop.eup %1785 }
 0x7be   : > { %v1173_v59 = vmul.f32 %v1786_v57, %v1171_v54  ;;  %vm1178_vm12 = vweird.f32 %v1786_v57 }
 0x7bf   : > { %vm1179_vm14 = vmor %vm1177_vm13, %vm1178_vm12 }
 0x7c0   : > { %v1174_v61 = vsub.f32 1.0, %v1173_v59  ;;  %v1788_v19 = vpop.eup %1787 }
 0x7c2   : > { %v1175_v0 = vmul.f32 %v1786_v57, %v1174_v61 }
 0x7c4   : > { %v1176_v58 = vadd.f32 %v1786_v57, %v1175_v0 }
 0x7c6   : > { %v1180_v4 = vsel %vm1179_vm14, %v1786_v57, %v1176_v58 }
 0x7c7   : > { %v1185_v5 = vsel %vm1182_vm15, %v1184_v2, %v1180_v4 }
 0x7c8   : > { %v1187_v7 = vmul.f32 1.0614054, %v1185_v5 }
 0x7ca   : > { %v1188_v8 = vadd.f32 -1.4531521, %v1187_v7 }
 0x7cc   : > { %v1189_v11 = vmul.f32 %v1188_v8, %v1185_v5 }
 0x7ce   : > { %v1190_v12 = vadd.f32 1.4214138, %v1189_v11 }
 0x7d0   : > { %v1191_v14 = vmul.f32 %v1190_v12, %v1185_v5 }
 0x7d2   : > { %v1192_v15 = vadd.f32 -0.28449672, %v1191_v14 }
 0x7d4   : > { %v1193_v16 = vmul.f32 %v1192_v15, %v1185_v5 }
 0x7d6   : > { %v1194_v17 = vadd.f32 0.2548296, %v1193_v16 }
 0x7d8   : > { %v1195_v18 = vmul.f32 %v1194_v17, %v1185_v5 }
 0x7da   : > { %v1200_v20 = vmul.f32 %v1788_v19, %v1195_v18 }
 0x7dc   : > { %v1201_v22 = vsub.f32 1.0, %v1200_v20 }
 0x7de   : > { %v1202_v24 = vmul.f32 %v1201_v22, %v1168_v3 }
 0x7e0   : > { %v1203_v10 = vadd.f32 1.0, %v1202_v24 }
 0x7e2   : > { %v1204_v26 = vmul.f32 %v1203_v10, %v1165_v25 }
 0x7e4   : > { %v1205_v27 = vpack.c.bf16 %v1204_v26, %v1204_v26 }
 0x7e6   : > { %1282 = vmatmul.bf16.vlgmr.msrb.gmra.mxu3 %v1205_v27 }
 0x869   : > { %v1283_v29 = vpop.f32.mrf.mxu3 }
 0x86a   : > { %v1284_v30 = vadd.f32 %v1762_v28, %v1283_v29 }
 0x86c   : > { %v1287_v31 = vadd.f32 %v1284_v30, %v2295_v41 }
 0x86e   : > { %v1290_v32 = vsel %vm730_vm1, %v1287_v31, 0.0 }
 0x86f   : > { %1291 = vadd.xlane.f32.xlu1 %v1290_v32 }
 0x871   : > { %v1285_v33 = vpop.f32.mrf.mxu3 }
 0x8e2   : > { %v1292_v34 = vpop.xlane.xlu1 %1291 }
 0x8e3   : > { %v1293_v35 = vmul.f32 %v1292_v34, %v2278_v21 }
 0x8e5   : > { %v1294_v36 = vsub.f32 %v1287_v31, %v1293_v35 }
 0x8e7   : > { %v1295_v37 = vmul.f32 %v1294_v36, %v1294_v36 }
 0x8e9   : > { %v1296_v38 = vsel %vm730_vm1, %v1295_v37, 0.0 }
 0x8ea   : > { %1297 = vadd.xlane.f32.xlu0 %v1296_v38 }
 0x95d   : > { %v1298_v39 = vpop.xlane.xlu0 %1297 }
 0x95e   : > { %v1299_v40 = vmul.f32 %v1298_v39, %v2278_v21 }
 0x960   : > { %v1300_v42 = vadd.f32 1e-05, %v1299_v40 }
 0x962   : > { %1789 = vrsqrt.f32 %v1300_v42  ;;  %vm1307_vm4 = vweird.f32 %v1300_v42 }
 0x968   : > { %v1790_v41 = vpop.eup %1789 }
 0x969   : > { %v1302_v43 = vmul.f32 %v1790_v41, %v1300_v42  ;;  %vm1308_vm3 = vweird.f32 %v1790_v41 }
 0x96a   : > { %vm1309_vm5 = vmor %vm1307_vm4, %vm1308_vm3 }
 0x96b   : > { %v1303_v44 = vmul.f32 %v1790_v41, %v1302_v43 }
 0x96d   : > { %v1304_v45 = vmul.f32 0.5, %v1303_v44 }
 0x96f   : > { %v1305_v46 = vsub.f32 1.5, %v1304_v45 }
 0x971   : > { %v1306_v47 = vmul.f32 %v1790_v41, %v1305_v46 }
 0x973   : > { %v1310_v49 = vsel %vm1309_vm5, %v1790_v41, %v1306_v47 }
 0x974   : > { %v1311_v21 = vmul.f32 %v1310_v49, %v1294_v36 }
 0x976   : > { %v1315_v51 = vmul.f32 %v1763_v48, %v1311_v21  ;;  %1324 = sbr.rel (%p1636_p3) target bundleno = 2447 (0x98f), region = 92 }
 0x978   : > { %v1319_v52 = vadd.f32 %v1764_v50, %v1315_v51 }
 0x97a   : > { %1320 = vst.msk [vmem:[#allocation2] sm:$0xff] %vm730_vm1, %v1319_v52 }
 0x97b   : > { %v1325_v53 = vsel %vm730_vm1, %v1319_v52, 0.0  ;;  %v1973_v55 = vmov 8.0   ;;  %vm1340_vm2 = vcmask 253952  }
 0x97c   : > { %v1326_v54 = vrot.slane %v1325_v53, 4  ;;  %1791 = vrcp.f32 %v1973_v55 }
 0x97e   : > { %v1327_v56 = vadd.f32 %v1326_v54, %v1325_v53 }
 0x980   : > { %v1328_v57 = vrot.slane %v1327_v56, 2 }
 0x982   : > { %v1792_v59 = vpop.eup %1791  ;;  %v1329_v60 = vadd.f32 %v1328_v57, %v1327_v56 }
 0x983   : > { %v1333_v61 = vmul.f32 8.0, %v1792_v59  ;;  %vm1337_vm6 = vweird.f32 %v1792_v59 }
 0x984   : > { %v1330_v62 = vrot.slane %v1329_v60, 1 }
 0x985   : > { %v1334_v63 = vsub.f32 1.0, %v1333_v61 }
 0x986   : > { %v1331_v1 = vadd.f32 %v1330_v62, %v1329_v60 }
 0x987   : > { %v1335_v0 = vmul.f32 %v1792_v59, %v1334_v63 }
 0x989   : > { %v1336_v58 = vadd.f32 %v1792_v59, %v1335_v0 }
 0x98b   : > { %v1338_v2 = vsel %vm1337_vm6, %v1792_v59, %v1336_v58 }
 0x98c   : > { %v1339_v4 = vmul.f32 %v1338_v2, %v1331_v1 }
 0x98e   : > { %1341 = vst.msk [vmem:[%s2431_s24] sm:$0x1] %vm1340_vm2, %v1339_v4 }
 0x98f PF: > { %s2432_s26 = sld [smem:[#allocation15_spill]] }
 0x990   : > { %s2433_s25 = sld [smem:[#allocation11_spill]] }
 0x991   : > { %s2435_s27 = sld [smem:[#allocation18_spill]] }
 0x992   : > { %s2436_s28 = sld [smem:[#allocation13_spill]] }
 0x993   : > { %s2437_s29 = sld [smem:[#allocation14_spill]] }
 0x994   : > { %s2438_s30 = sld [smem:[#allocation16_spill]] }
 0x995   : > { %s29_s15 = sadd.s32 1, %s2432_s26   ;;  %s2434_s26 = sld [smem:[#allocation12_spill]] }
 0x996   : > { %p26_p4 = scmp.ge.s32.totalorder %s29_s15, 6   ;;  %s2439_s14 = sld [smem:[#allocation17_spill]] }
 0x998   :  { %28 = sbr.rel (!%p26_p4) target bundleno = 22 (0x16), region = 174 }
 0x99d   :  { %1359 = vsyncpa [#allocation5], 1 }
 0x99e   :  { %1361 = vsyncpa [#allocation5 + $0x1], 1 }
 0x99f   :  { %1362 = vsyncpa [#allocation7], 1 }
 0x9a0   :  { %1364 = vsyncpa [#allocation7 + $0x1], 1 }

// kernel: forward.3
= control target key start
LH: loop header
LB: loop body
LE: loop exit
PB: predicated region body
PF: predicated region fallthrough
CT: control target
= control target key end

     0   :  { %s3334_s0 = inlined_call_operand.vmem [shape: f32[2,32], index: 0, kind: input, shape index: {}]   ;;  %s3335_s1 = inlined_call_operand.vmem [shape: bf16[32,32], index: 1, kind: input, shape index: {}]   ;;  %s3336_s2 = inlined_call_operand.hbm [shape: f32[1,32], index: 2, kind: input, shape index: {}]   ;;  %s3337_s3 = inlined_call_operand.vmem [shape: bf16[8,32,32], index: 3, kind: input, shape index: {}]   ;;  %s3338_s4 = inlined_call_operand.vmem [shape: f32[8,1,32], index: 4, kind: input, shape index: {}]   ;;  %s3339_s5 = inlined_call_operand.vmem [shape: f32[8,1,32], index: 5, kind: input, shape index: {}]   ;;  %s3340_s6 = inlined_call_operand.vmem [shape: f32[8,1,32], index: 6, kind: input, shape index: {}]   ;;  %s3341_s7 = inlined_call_operand.vmem [shape: bf16[8,32,32], index: 7, kind: input, shape index: {}]   ;;  %s3342_s8 = inlined_call_operand.hbm [shape: f32[8,1,32], index: 8, kind: input, shape index: {}]   ;;  %s3343_s9 = inlined_call_operand.hbm [shape: f32[8,1,32], index: 9, kind: input, shape index: {}]   ;;  %s3344_s10 = inlined_call_operand.hbm [shape: f32[8,1,32], index: 10, kind: input, shape index: {}]   ;;  %s3345_s11 = inlined_call_operand.vmem [shape: bf16[32,32], index: 11, kind: input, shape index: {}]   ;;  %s3346_s12 = inlined_call_operand.hbm [shape: f32[1,32], index: 12, kind: input, shape index: {}]   ;;  %s3347_s13 = inlined_call_operand.vmem [shape: bf16[32,32], index: 13, kind: input, shape index: {}]   ;;  %s3348_s14 = inlined_call_operand.hbm [shape: f32[1,32], index: 14, kind: input, shape index: {}]   ;;  %s3349_s15 = inlined_call_operand.vmem [shape: bf16[32,8], index: 15, kind: input, shape index: {}]   ;;  %s3350_s16 = inlined_call_operand.hbm [shape: f32[1,8], index: 16, kind: input, shape index: {}]   ;;  %s3351_s17 = inlined_call_operand.hbm [shape: f32[2,8], index: 17, kind: output, shape index: {}]  }
   0x1   :  { %3353 = sst [smem:[#allocation20_spill]] %s3334_s0 }
   0x2   :  { %3354 = sst [smem:[#allocation21_spill]] %s3335_s1 }
   0x3   :  { %22 = vsyncpa [#allocation3], 0 }
   0x4   :  { %23 = vsyncpa [#allocation6], 0 }
   0x5   :  { %24 = vsyncpa [#allocation9], 0 }
   0x6   :  { %25 = vsyncpa [#allocation12], 0  ;;  %s56_s26 = sshll.u32 %s3342_s8, 4  ;;  %s57_s26 = int_to_ptr.hbm [resolvable:$true] %s56_s26 }
   0x7   :  { %26 = vsyncpa [#allocation4], 0  ;;  %s2861_s27 = smov [#allocation5]   ;;  %s82_s30 = sshll.u32 %s3344_s10, 4  ;;  %s83_s30 = int_to_ptr.hbm [resolvable:$true] %s82_s30 }
   0x8   :  { %s58_s28 = sshll.u32 %s2861_s27, 4  ;;  %s2862_s18 = smov 16   ;;  %s59_s28 = int_to_ptr.vmem [resolvable:$true] %s58_s28 }
   0x9   :  { %s2863_s19 = smov 1   ;;  %s2864_s1 = smov [#allocation8]  }
   0xa   :  { %64 = dma.hbm_to_vmem [thread:$0]  %s57_s26, 128, %s59_s28, [#allocation6], %s2862_s18, %s2862_s18, %s2863_s19  }
   0xb   :  { %s84_s20 = sshll.u32 %s2864_s1, 4  ;;  %s111_s22 = sshll.u32 %s3348_s14, 4  ;;  %s85_s20 = int_to_ptr.vmem [resolvable:$true] %s84_s20  ;;  %s112_s22 = int_to_ptr.hbm [resolvable:$true] %s111_s22 }
   0xc   :  { %90 = dma.hbm_to_vmem [thread:$0]  %s83_s30, 128, %s85_s20, [#allocation9], %s2862_s18, %s2862_s18, %s2863_s19  }
   0xd   :  { %s36_s24 = sshll.u32 %s3336_s2, 4  ;;  %s2865_s25 = smov [#allocation11]   ;;  %s37_s24 = int_to_ptr.hbm [resolvable:$true] %s36_s24 }
   0xe   :  { %s113_s27 = sshll.u32 %s2865_s25, 4  ;;  %s2866_s26 = smov [#allocation2]   ;;  %s114_s27 = int_to_ptr.vmem [resolvable:$true] %s113_s27 }
   0xf   :  { %116 = dma.hbm_to_vmem [thread:$0]  %s112_s22, 16, %s114_s27, [#allocation12]  }
  0x10   :  { %s38_s28 = sshll.u32 %s2866_s26, 4  ;;  %s69_s14 = sshll.u32 %s3343_s9, 4  ;;  %s39_s28 = int_to_ptr.vmem [resolvable:$true] %s38_s28  ;;  %s70_s14 = int_to_ptr.hbm [resolvable:$true] %s69_s14 }
  0x11   :  { %41 = dma.hbm_to_vmem [thread:$0]  %s37_s24, 16, %s39_s28, [#allocation3]  }
  0x12   :  { %s98_s20 = sshll.u32 %s3346_s12, 4  ;;  %s2867_s21 = smov [#allocation7]   ;;  %s99_s20 = int_to_ptr.hbm [resolvable:$true] %s98_s20 }
  0x13   :  { %s71_s2 = sshll.u32 %s2867_s21, 4  ;;  %s2868_s8 = smov [#allocation10]   ;;  %s72_s2 = int_to_ptr.vmem [resolvable:$true] %s71_s2 }
  0x14   :  { %77 = dma.hbm_to_vmem [thread:$0]  %s70_s14, 128, %s72_s2, [#allocation6], %s2862_s18, %s2862_s18, %s2863_s19  }
  0x15   :  { %s100_s22 = sshll.u32 %s2868_s8, 4  ;;  %s124_s9 = sshll.u32 %s3350_s16, 4  ;;  %s101_s22 = int_to_ptr.vmem [resolvable:$true] %s100_s22  ;;  %s125_s9 = int_to_ptr.hbm [resolvable:$true] %s124_s9 }
  0x16   :  { %103 = dma.hbm_to_vmem [thread:$0]  %s99_s20, 16, %s101_s22, [#allocation9]  }
  0x17   :  { %s2869_s24 = smov [#allocation13]  }
  0x18   :  { %s126_s25 = sshll.u32 %s2869_s24, 4  ;;  %s127_s25 = int_to_ptr.vmem [resolvable:$true] %s126_s25 }
  0x19   :  { %129 = dma.hbm_to_vmem [thread:$0]  %s125_s9, 16, %s127_s25, [#allocation12]  }
  0x1a   :  { %2851 = dma.done.wait [#allocation3], 16  }
  0x1b   :  { %2852 = vsyncadd [#allocation3], 4294967280 }
  0x1c   :  { %2853 = dma.done.wait [#allocation6], 256  }
  0x1d   :  { %2854 = vsyncadd [#allocation6], 4294967040 }
  0x1e   :  { %2855 = dma.done.wait [#allocation9], 144  }
  0x1f   :  { %2856 = vsyncadd [#allocation9], 4294967152 }
  0x20   :  { %2857 = dma.done.wait [#allocation12], 32  }
  0x21   :  { %2858 = vsyncadd [#allocation12], 4294967264  ;;  %s3355_s19 = sld [smem:[#allocation21_spill]]  ;;  %vm181_vm0 = vcmask 261120   ;;  %v2452_v3 = vld [vmem:[%s3337_s3 + $0x8] sm:$0xff]  ;;  %v2451_v5 = vld [vmem:[%s3337_s3] sm:$0xff] }
  0x22   :  { %s3356_s29 = sld [smem:[#allocation20_spill]]  ;;  %228 = vmatpush.bf16.msra.mxu1 %v2452_v3  ;;  %v2501_v6 = vld [vmem:[#allocation2] ss:$0 sm:$0xff]  ;;  %v2870_v44 = vmov -1.0   ;;  %vm277_vm6 = vcmask 254976   ;;  %v2871_v51 = vmov 32.0  }
  0x23   :  { %v2502_v11 = vld [vmem:[%s3338_s4] ss:$0 sm:$0xff]  ;;  %v2454_v63 = vld [vmem:[%s3341_s7 + $0x8] sm:$0xff]  ;;  %s2179_s23 = sshll.u32 %s3351_s17, 4  ;;  %s2180_s23 = int_to_ptr.hbm [resolvable:$true] %s2179_s23 }
  0x24   :  { %345 = vmatpush.bf16.msra.mxu2 %v2454_v63 }
  0x26   :  { %229 = vmatpush.bf16.msra.mxu1 %v2451_v5 }
  0x27   :  { %v2450_v0 = vld [vmem:[%s3355_s19 + $0x8] sm:$0xff]  ;;  %v2449_v1 = vld [vmem:[%s3355_s19] sm:$0xff] }
  0x28   :  { %v159_v2 = vld [vmem:[%s3356_s29] sm:$0x3]  ;;  %191 = vmatpush.bf16.msra.mxu0 %v2450_v0 }
  0x29   :  { %v160_v4 = vpack.c.bf16 %v159_v2, %v159_v2  ;;  %v2453_v0 = vld [vmem:[%s3341_s7] sm:$0xff] }
  0x2a   :  { %346 = vmatpush.bf16.msra.mxu2 %v2453_v0  ;;  %v2456_v0 = vld [vmem:[%s3337_s3 + $0x18] sm:$0xff] }
  0x2b   :  { %457 = vmatpush.bf16.msra.mxu3 %v2456_v0 }
  0x2c   :  { %192 = vmatpush.bf16.msra.mxu0 %v2449_v1 }
  0x2f   :  { %2200 = vmatmul.msk.bf16.vlgmr.msra.gmra.mxu0 %vm181_vm0, %v160_v4 }
  0xac   :  { %v194_v7 = vpop.f32.mrf.mxu0 }
  0xad   :  { %v3009_v8 = vadd.f32 %v2501_v6, %v194_v7 }
  0xaf   :  { %v198_v9 = vpack.c.bf16 %v3009_v8, %v3009_v8 }
  0xb1   :  { %2209 = vmatmul.msk.bf16.vlgmr.msra.gmra.mxu1 %vm181_vm0, %v198_v9 }
  0xb4   :  { %v196_v10 = vpop.f32.mrf.mxu0 }
 0x12e   :  { %v231_v12 = vpop.f32.mrf.mxu1 }
 0x12f   :  { %v232_v13 = vadd.f32 %v2502_v11, %v231_v12  ;;  %v2503_v11 = vld [vmem:[%s3339_s5] ss:$0 sm:$0xff] }
 0x131   :  { %v236_v14 = vmul.f32 0.70710677, %v232_v13  ;;  %v235_v47 = vmul.f32 0.5, %v232_v13 }
 0x133   :  { %v239_v15 = vand.u32 2147483647, %v236_v14  ;;  %vm237_vm5 = vcmp.ge.f32.partialorder %v236_v14, 0.0  ;;  %v2504_v14 = vld [vmem:[%s3340_s6] ss:$0 sm:$0xff] }
 0x134   :  { %v238_v45 = vsel %vm237_vm5, 1.0, %v2870_v44 }
 0x135   :  { %v240_v16 = vmul.f32 0.3275911, %v239_v15  ;;  %v266_v28 = vsub.f32 0.0, %v239_v15 }
 0x136   :  { %v233_v17 = vpop.f32.mrf.mxu1 }
 0x137   :  { %v241_v18 = vadd.f32 1.0, %v240_v16  ;;  %v267_v32 = vmul.f32 %v266_v28, %v239_v15 }
 0x139   :  { %2553 = vrcp.f32 %v241_v18  ;;  %v253_v22 = vand.u32 2147483648, %v241_v18  ;;  %v251_v24 = vand.u32 2147483647, %v241_v18  ;;  %vm247_vm2 = vweird.f32 %v241_v18 }
 0x13a   :  { %v268_v35 = vmul.f32 1.442695, %v267_v32 }
 0x13b   :  { %v254_v26 = vor.u32 1.1754944e-38, %v253_v22  ;;  %vm252_vm4 = vcmp.eq.f32.partialorder %v251_v24, 8.507059e+37 }
 0x13c   :  { %2555 = vpow2.f32 %v268_v35 }
 0x13d   :  { %2557 = vrcp.f32 %v2871_v51 }
 0x13f   :  { %v2554_v19 = vpop.eup %2553 }
 0x140   :  { %v243_v20 = vmul.f32 %v2554_v19, %v241_v18  ;;  %vm248_vm1 = vweird.f32 %v2554_v19  ;;  %v2505_v18 = vld [vmem:[#allocation5] ss:$0 sm:$0xff] }
 0x141   :  { %vm249_vm3 = vmor %vm247_vm2, %vm248_vm1 }
 0x142   :  { %v244_v21 = vsub.f32 1.0, %v243_v20  ;;  %v2556_v41 = vpop.eup %2555 }
 0x143   :  { %v2558_v52 = vpop.eup %2557 }
 0x144   :  { %v245_v23 = vmul.f32 %v2554_v19, %v244_v21  ;;  %v282_v53 = vmul.f32 32.0, %v2558_v52  ;;  %vm286_vm7 = vweird.f32 %v2558_v52 }
 0x146   :  { %v246_v25 = vadd.f32 %v2554_v19, %v245_v23  ;;  %v283_v54 = vsub.f32 1.0, %v282_v53 }
 0x148   :  { %v250_v27 = vsel %vm249_vm3, %v2554_v19, %v246_v25  ;;  %v284_v55 = vmul.f32 %v2558_v52, %v283_v54 }
 0x149   :  { %v255_v29 = vsel %vm252_vm4, %v254_v26, %v250_v27 }
 0x14a   :  { %v257_v30 = vmul.f32 1.0614054, %v255_v29  ;;  %v285_v56 = vadd.f32 %v2558_v52, %v284_v55 }
 0x14c   :  { %v258_v31 = vadd.f32 -1.4531521, %v257_v30  ;;  %v3019_v57 = vsel %vm286_vm7, %v2558_v52, %v285_v56 }
 0x14e   :  { %v259_v33 = vmul.f32 %v258_v31, %v255_v29 }
 0x150   :  { %v260_v34 = vadd.f32 1.4214138, %v259_v33 }
 0x152   :  { %v261_v36 = vmul.f32 %v260_v34, %v255_v29 }
 0x154   :  { %v262_v37 = vadd.f32 -0.28449672, %v261_v36 }
 0x156   :  { %v263_v38 = vmul.f32 %v262_v37, %v255_v29 }
 0x158   :  { %v264_v39 = vadd.f32 0.2548296, %v263_v38 }
 0x15a   :  { %v265_v40 = vmul.f32 %v264_v39, %v255_v29 }
 0x15c   :  { %v270_v42 = vmul.f32 %v2556_v41, %v265_v40 }
 0x15e   :  { %v271_v43 = vsub.f32 1.0, %v270_v42 }
 0x160   :  { %v272_v46 = vmul.f32 %v271_v43, %v238_v45 }
 0x162   :  { %v273_v48 = vadd.f32 1.0, %v272_v46 }
 0x164   :  { %v274_v49 = vmul.f32 %v273_v48, %v235_v47 }
 0x166   :  { %v278_v50 = vsel %vm277_vm6, %v274_v49, 0.0 }
 0x167   :  { %279 = vadd.xlane.f32.xlu0 %v278_v50 }
 0x1da   :  { %v280_v58 = vpop.xlane.xlu0 %279 }
 0x1db   :  { %v288_v59 = vmul.f32 %v3019_v57, %v280_v58 }
 0x1dd   :  { %v289_v60 = vsub.f32 %v274_v49, %v288_v59 }
 0x1df   :  { %v290_v61 = vmul.f32 %v289_v60, %v289_v60 }
 0x1e1   :  { %v291_v62 = vsel %vm277_vm6, %v290_v61, 0.0 }
 0x1e2   :  { %292 = vadd.xlane.f32.xlu0 %v291_v62 }
 0x255   :  { %v293_v1 = vpop.xlane.xlu0 %292 }
 0x256   :  { %v294_v2 = vmul.f32 %v293_v1, %v3019_v57  ;;  %v2455_v1 = vld [vmem:[%s3337_s3 + $0x10] sm:$0xff] }
 0x257   :  { %458 = vmatpush.bf16.msra.mxu3 %v2455_v1  ;;  %v2458_v1 = vld [vmem:[%s3341_s7 + $0x18] sm:$0xff] }
 0x258   :  { %v295_v3 = vadd.f32 1e-05, %v294_v2  ;;  %570 = vmatpush.bf16.msrb.mxu0 %v2458_v1 }
 0x25a   :  { %2559 = vrsqrt.f32 %v295_v3  ;;  %vm302_vm9 = vweird.f32 %v295_v3 }
 0x260   :  { %v2560_v4 = vpop.eup %2559 }
 0x261   :  { %v297_v5 = vmul.f32 %v2560_v4, %v295_v3  ;;  %vm303_vm8 = vweird.f32 %v2560_v4 }
 0x262   :  { %vm304_vm10 = vmor %vm302_vm9, %vm303_vm8 }
 0x263   :  { %v298_v6 = vmul.f32 %v2560_v4, %v297_v5 }
 0x265   :  { %v299_v7 = vmul.f32 0.5, %v298_v6 }
 0x267   :  { %v300_v9 = vsub.f32 1.5, %v299_v7 }
 0x269   :  { %v301_v10 = vmul.f32 %v2560_v4, %v300_v9 }
 0x26b   :  { %v305_v12 = vsel %vm304_vm10, %v2560_v4, %v301_v10 }
 0x26c   :  { %v306_v13 = vmul.f32 %v305_v12, %v289_v60  ;;  %v2506_v12 = vld [vmem:[#allocation7] ss:$0 sm:$0xff] }
 0x26e   :  { %v310_v15 = vmul.f32 %v2503_v11, %v306_v13 }
 0x270   :  { %v314_v16 = vadd.f32 %v2504_v14, %v310_v15  ;;  %v2507_v15 = vld [vmem:[#allocation8] ss:$0 sm:$0xff] }
 0x272   :  { %v315_v17 = vpack.c.bf16 %v314_v16, %v314_v16 }
 0x274   :  { %2218 = vmatmul.msk.bf16.vlgmr.msra.gmra.mxu2 %vm181_vm0, %v315_v17 }
 0x2f7   :  { %v348_v19 = vpop.f32.mrf.mxu2 }
 0x2f8   :  { %v349_v20 = vadd.f32 %v2505_v18, %v348_v19 }
 0x2fa   :  { %v353_v21 = vmul.f32 0.70710677, %v349_v20  ;;  %v352_v54 = vmul.f32 0.5, %v349_v20  ;;  %v2508_v20 = vld [vmem:[%s3338_s4 + $0x1] ss:$0 sm:$0xff] }
 0x2fc   :  { %v356_v22 = vand.u32 2147483647, %v353_v21  ;;  %vm354_vm15 = vcmp.ge.f32.partialorder %v353_v21, 0.0 }
 0x2fd   :  { %v355_v52 = vsel %vm354_vm15, 1.0, %v2870_v44 }
 0x2fe   :  { %v357_v23 = vmul.f32 0.3275911, %v356_v22  ;;  %v383_v35 = vsub.f32 0.0, %v356_v22 }
 0x2ff   :  { %v350_v24 = vpop.f32.mrf.mxu2 }
 0x300   :  { %v358_v25 = vadd.f32 1.0, %v357_v23  ;;  %v384_v39 = vmul.f32 %v383_v35, %v356_v22 }
 0x302   :  { %2561 = vrcp.f32 %v358_v25  ;;  %v370_v29 = vand.u32 2147483648, %v358_v25  ;;  %v368_v31 = vand.u32 2147483647, %v358_v25  ;;  %vm364_vm12 = vweird.f32 %v358_v25 }
 0x303   :  { %v385_v42 = vmul.f32 1.442695, %v384_v39 }
 0x304   :  { %v371_v33 = vor.u32 1.1754944e-38, %v370_v29  ;;  %vm369_vm14 = vcmp.eq.f32.partialorder %v368_v31, 8.507059e+37 }
 0x305   :  { %2563 = vpow2.f32 %v385_v42 }
 0x308   :  { %v2562_v26 = vpop.eup %2561 }
 0x309   :  { %v360_v27 = vmul.f32 %v2562_v26, %v358_v25  ;;  %vm365_vm11 = vweird.f32 %v2562_v26 }
 0x30a   :  { %vm366_vm13 = vmor %vm364_vm12, %vm365_vm11 }
 0x30b   :  { %v361_v28 = vsub.f32 1.0, %v360_v27  ;;  %v2564_v49 = vpop.eup %2563 }
 0x30d   :  { %v362_v30 = vmul.f32 %v2562_v26, %v361_v28 }
 0x30f   :  { %v363_v32 = vadd.f32 %v2562_v26, %v362_v30 }
 0x311   :  { %v367_v34 = vsel %vm366_vm13, %v2562_v26, %v363_v32 }
 0x312   :  { %v372_v36 = vsel %vm369_vm14, %v371_v33, %v367_v34 }
 0x313   :  { %v374_v37 = vmul.f32 1.0614054, %v372_v36 }
 0x315   :  { %v375_v38 = vadd.f32 -1.4531521, %v374_v37 }
 0x317   :  { %v376_v40 = vmul.f32 %v375_v38, %v372_v36 }
 0x319   :  { %v377_v41 = vadd.f32 1.4214138, %v376_v40 }
 0x31b   :  { %v378_v43 = vmul.f32 %v377_v41, %v372_v36 }
 0x31d   :  { %v379_v45 = vadd.f32 -0.28449672, %v378_v43 }
 0x31f   :  { %v380_v46 = vmul.f32 %v379_v45, %v372_v36 }
 0x321   :  { %v381_v47 = vadd.f32 0.2548296, %v380_v46 }
 0x323   :  { %v382_v48 = vmul.f32 %v381_v47, %v372_v36 }
 0x325   :  { %v387_v50 = vmul.f32 %v2564_v49, %v382_v48 }
 0x327   :  { %v388_v51 = vsub.f32 1.0, %v387_v50 }
 0x329   :  { %v389_v53 = vmul.f32 %v388_v51, %v355_v52 }
 0x32b   :  { %v390_v55 = vadd.f32 1.0, %v389_v53 }
 0x32d   :  { %v391_v56 = vmul.f32 %v390_v55, %v352_v54 }
 0x32f   :  { %v394_v58 = vsel %vm277_vm6, %v391_v56, 0.0 }
 0x330   :  { %395 = vadd.xlane.f32.xlu1 %v394_v58 }
 0x3a3   :  { %v396_v59 = vpop.xlane.xlu1 %395 }
 0x3a4   :  { %v397_v60 = vmul.f32 %v396_v59, %v3019_v57 }
 0x3a6   :  { %v398_v61 = vsub.f32 %v391_v56, %v397_v60 }
 0x3a8   :  { %v399_v62 = vmul.f32 %v398_v61, %v398_v61 }
 0x3aa   :  { %v400_v63 = vsel %vm277_vm6, %v399_v62, 0.0 }
 0x3ab   :  { %401 = vadd.xlane.f32.xlu1 %v400_v63 }
 0x41e   :  { %v402_v2 = vpop.xlane.xlu1 %401 }
 0x41f   :  { %v403_v3 = vmul.f32 %v402_v2, %v3019_v57  ;;  %v2457_v2 = vld [vmem:[%s3341_s7 + $0x10] sm:$0xff] }
 0x420   :  { %571 = vmatpush.bf16.msrb.mxu0 %v2457_v2  ;;  %v2460_v2 = vld [vmem:[%s3337_s3 + $0x28] sm:$0xff] }
 0x421   :  { %v404_v4 = vadd.f32 1e-05, %v403_v3  ;;  %684 = vmatpush.bf16.msrb.mxu1 %v2460_v2 }
 0x423   :  { %2565 = vrsqrt.f32 %v404_v4  ;;  %vm411_vm2 = vweird.f32 %v404_v4 }
 0x429   :  { %v2566_v5 = vpop.eup %2565 }
 0x42a   :  { %v406_v6 = vmul.f32 %v2566_v5, %v404_v4  ;;  %vm412_vm1 = vweird.f32 %v2566_v5 }
 0x42b   :  { %vm413_vm3 = vmor %vm411_vm2, %vm412_vm1 }
 0x42c   :  { %v407_v7 = vmul.f32 %v2566_v5, %v406_v6 }
 0x42e   :  { %v408_v9 = vmul.f32 0.5, %v407_v7 }
 0x430   :  { %v409_v10 = vsub.f32 1.5, %v408_v9 }
 0x432   :  { %v410_v11 = vmul.f32 %v2566_v5, %v409_v10 }
 0x434   :  { %v414_v13 = vsel %vm413_vm3, %v2566_v5, %v410_v11 }
 0x435   :  { %v415_v14 = vmul.f32 %v414_v13, %v398_v61  ;;  %v2509_v13 = vld [vmem:[%s3339_s5 + $0x1] ss:$0 sm:$0xff] }
 0x437   :  { %v419_v16 = vmul.f32 %v2506_v12, %v415_v14 }
 0x439   :  { %v423_v17 = vadd.f32 %v2507_v15, %v419_v16  ;;  %v2510_v16 = vld [vmem:[%s3340_s6 + $0x1] ss:$0 sm:$0xff] }
 0x43b   :  { %v3049_v18 = vadd.f32 %v423_v17, %v3009_v8 }
 0x43d   :  { %v425_v19 = vpack.c.bf16 %v3049_v18, %v3049_v18 }
 0x43f   :  { %2232 = vmatmul.msk.bf16.vlgmr.msra.gmra.mxu3 %vm181_vm0, %v425_v19 }
 0x4c2   :  { %v460_v21 = vpop.f32.mrf.mxu3 }
 0x4c3   :  { %v461_v22 = vadd.f32 %v2508_v20, %v460_v21  ;;  %v2511_v21 = vld [vmem:[#allocation5 + $0x1] ss:$0 sm:$0xff] }
 0x4c5   :  { %v465_v23 = vmul.f32 0.70710677, %v461_v22  ;;  %v464_v55 = vmul.f32 0.5, %v461_v22 }
 0x4c7   :  { %v468_v24 = vand.u32 2147483647, %v465_v23  ;;  %vm466_vm9 = vcmp.ge.f32.partialorder %v465_v23, 0.0 }
 0x4c8   :  { %v467_v53 = vsel %vm466_vm9, 1.0, %v2870_v44 }
 0x4c9   :  { %v469_v25 = vmul.f32 0.3275911, %v468_v24  ;;  %v495_v36 = vsub.f32 0.0, %v468_v24 }
 0x4ca   :  { %v462_v26 = vpop.f32.mrf.mxu3 }
 0x4cb   :  { %v470_v27 = vadd.f32 1.0, %v469_v25  ;;  %v496_v40 = vmul.f32 %v495_v36, %v468_v24 }
 0x4cd   :  { %2567 = vrcp.f32 %v470_v27  ;;  %v482_v30 = vand.u32 2147483648, %v470_v27  ;;  %v480_v32 = vand.u32 2147483647, %v470_v27  ;;  %vm476_vm5 = vweird.f32 %v470_v27 }
 0x4ce   :  { %v497_v43 = vmul.f32 1.442695, %v496_v40 }
 0x4cf   :  { %v483_v34 = vor.u32 1.1754944e-38, %v482_v30  ;;  %vm481_vm8 = vcmp.eq.f32.partialorder %v480_v32, 8.507059e+37 }
 0x4d0   :  { %2569 = vpow2.f32 %v497_v43 }
 0x4d3   :  { %v2568_v28 = vpop.eup %2567 }
 0x4d4   :  { %v472_v8 = vmul.f32 %v2568_v28, %v470_v27  ;;  %vm477_vm4 = vweird.f32 %v2568_v28 }
 0x4d5   :  { %vm478_vm7 = vmor %vm476_vm5, %vm477_vm4 }
 0x4d6   :  { %v473_v29 = vsub.f32 1.0, %v472_v8  ;;  %v2570_v50 = vpop.eup %2569 }
 0x4d8   :  { %v474_v31 = vmul.f32 %v2568_v28, %v473_v29 }
 0x4da   :  { %v475_v33 = vadd.f32 %v2568_v28, %v474_v31 }
 0x4dc   :  { %v479_v35 = vsel %vm478_vm7, %v2568_v28, %v475_v33 }
 0x4dd   :  { %v484_v37 = vsel %vm481_vm8, %v483_v34, %v479_v35 }
 0x4de   :  { %v486_v38 = vmul.f32 1.0614054, %v484_v37 }
 0x4e0   :  { %v487_v39 = vadd.f32 -1.4531521, %v486_v38 }
 0x4e2   :  { %v488_v41 = vmul.f32 %v487_v39, %v484_v37 }
 0x4e4   :  { %v489_v42 = vadd.f32 1.4214138, %v488_v41 }
 0x4e6   :  { %v490_v45 = vmul.f32 %v489_v42, %v484_v37 }
 0x4e8   :  { %v491_v46 = vadd.f32 -0.28449672, %v490_v45 }
 0x4ea   :  { %v492_v47 = vmul.f32 %v491_v46, %v484_v37 }
 0x4ec   :  { %v493_v48 = vadd.f32 0.2548296, %v492_v47 }
 0x4ee   :  { %v494_v49 = vmul.f32 %v493_v48, %v484_v37 }
 0x4f0   :  { %v499_v51 = vmul.f32 %v2570_v50, %v494_v49 }
 0x4f2   :  { %v500_v52 = vsub.f32 1.0, %v499_v51 }
 0x4f4   :  { %v501_v54 = vmul.f32 %v500_v52, %v467_v53 }
 0x4f6   :  { %v502_v56 = vadd.f32 1.0, %v501_v54 }
 0x4f8   :  { %v503_v58 = vmul.f32 %v502_v56, %v464_v55 }
 0x4fa   :  { %v508_v59 = vsel %vm277_vm6, %v503_v58, 0.0 }
 0x4fb   :  { %509 = vadd.xlane.f32.xlu2 %v508_v59 }
 0x56e   :  { %v510_v60 = vpop.xlane.xlu2 %509 }
 0x56f   :  { %v511_v61 = vmul.f32 %v510_v60, %v3019_v57 }
 0x571   :  { %v512_v62 = vsub.f32 %v503_v58, %v511_v61 }
 0x573   :  { %v513_v63 = vmul.f32 %v512_v62, %v512_v62 }
 0x575   :  { %v514_v0 = vsel %vm277_vm6, %v513_v63, 0.0 }
 0x576   :  { %515 = vadd.xlane.f32.xlu2 %v514_v0 }
 0x5e9   :  { %v516_v3 = vpop.xlane.xlu2 %515 }
 0x5ea   :  { %v517_v4 = vmul.f32 %v516_v3, %v3019_v57  ;;  %v2459_v3 = vld [vmem:[%s3337_s3 + $0x20] sm:$0xff] }
 0x5eb   :  { %685 = vmatpush.bf16.msrb.mxu1 %v2459_v3  ;;  %v2462_v3 = vld [vmem:[%s3341_s7 + $0x28] sm:$0xff] }
 0x5ec   :  { %v518_v5 = vadd.f32 1e-05, %v517_v4  ;;  %797 = vmatpush.bf16.msrb.mxu2 %v2462_v3 }
 0x5ee   :  { %2571 = vrsqrt.f32 %v518_v5  ;;  %vm525_vm11 = vweird.f32 %v518_v5 }
 0x5f4   :  { %v2572_v6 = vpop.eup %2571 }
 0x5f5   :  { %v520_v7 = vmul.f32 %v2572_v6, %v518_v5  ;;  %vm526_vm10 = vweird.f32 %v2572_v6 }
 0x5f6   :  { %vm527_vm12 = vmor %vm525_vm11, %vm526_vm10 }
 0x5f7   :  { %v521_v9 = vmul.f32 %v2572_v6, %v520_v7 }
 0x5f9   :  { %v522_v10 = vmul.f32 0.5, %v521_v9 }
 0x5fb   :  { %v523_v11 = vsub.f32 1.5, %v522_v10 }
 0x5fd   :  { %v524_v12 = vmul.f32 %v2572_v6, %v523_v11 }
 0x5ff   :  { %v528_v14 = vsel %vm527_vm12, %v2572_v6, %v524_v12 }
 0x600   :  { %v529_v15 = vmul.f32 %v528_v14, %v512_v62  ;;  %v2512_v14 = vld [vmem:[#allocation7 + $0x1] ss:$0 sm:$0xff] }
 0x602   :  { %v533_v17 = vmul.f32 %v2509_v13, %v529_v15 }
 0x604   :  { %v537_v19 = vadd.f32 %v2510_v16, %v533_v17  ;;  %v2513_v17 = vld [vmem:[#allocation8 + $0x1] ss:$0 sm:$0xff] }
 0x606   :  { %v538_v20 = vpack.c.bf16 %v537_v19, %v537_v19 }
 0x608   :  { %2247 = vmatmul.msk.bf16.vlgmr.msrb.gmra.mxu0 %vm181_vm0, %v538_v20 }
 0x685   :  { %v573_v22 = vpop.f32.mrf.mxu0 }
 0x686   :  { %v574_v23 = vadd.f32 %v2511_v21, %v573_v22 }
 0x688   :  { %v578_v24 = vmul.f32 0.70710677, %v574_v23  ;;  %v577_v56 = vmul.f32 0.5, %v574_v23  ;;  %v2514_v23 = vld [vmem:[%s3338_s4 + $0x2] ss:$0 sm:$0xff] }
 0x68a   :  { %v581_v25 = vand.u32 2147483647, %v578_v24  ;;  %vm579_vm2 = vcmp.ge.f32.partialorder %v578_v24, 0.0 }
 0x68b   :  { %v580_v54 = vsel %vm579_vm2, 1.0, %v2870_v44 }
 0x68c   :  { %v582_v26 = vmul.f32 0.3275911, %v581_v25  ;;  %v608_v37 = vsub.f32 0.0, %v581_v25 }
 0x68d   :  { %v575_v27 = vpop.f32.mrf.mxu0 }
 0x68e   :  { %v583_v28 = vadd.f32 1.0, %v582_v26  ;;  %v609_v41 = vmul.f32 %v608_v37, %v581_v25 }
 0x690   :  { %2573 = vrcp.f32 %v583_v28  ;;  %v595_v31 = vand.u32 2147483648, %v583_v28  ;;  %v593_v33 = vand.u32 2147483647, %v583_v28  ;;  %vm589_vm14 = vweird.f32 %v583_v28 }
 0x691   :  { %v610_v45 = vmul.f32 1.442695, %v609_v41 }
 0x692   :  { %v596_v35 = vor.u32 1.1754944e-38, %v595_v31  ;;  %vm594_vm1 = vcmp.eq.f32.partialorder %v593_v33, 8.507059e+37 }
 0x693   :  { %2575 = vpow2.f32 %v610_v45 }
 0x696   :  { %v2574_v8 = vpop.eup %2573 }
 0x697   :  { %v585_v29 = vmul.f32 %v2574_v8, %v583_v28  ;;  %vm590_vm13 = vweird.f32 %v2574_v8 }
 0x698   :  { %vm591_vm15 = vmor %vm589_vm14, %vm590_vm13 }
 0x699   :  { %v586_v30 = vsub.f32 1.0, %v585_v29  ;;  %v2576_v51 = vpop.eup %2575 }
 0x69b   :  { %v587_v32 = vmul.f32 %v2574_v8, %v586_v30 }
 0x69d   :  { %v588_v34 = vadd.f32 %v2574_v8, %v587_v32 }
 0x69f   :  { %v592_v36 = vsel %vm591_vm15, %v2574_v8, %v588_v34 }
 0x6a0   :  { %v597_v38 = vsel %vm594_vm1, %v596_v35, %v592_v36 }
 0x6a1   :  { %v599_v39 = vmul.f32 1.0614054, %v597_v38 }
 0x6a3   :  { %v600_v40 = vadd.f32 -1.4531521, %v599_v39 }
 0x6a5   :  { %v601_v42 = vmul.f32 %v600_v40, %v597_v38 }
 0x6a7   :  { %v602_v43 = vadd.f32 1.4214138, %v601_v42 }
 0x6a9   :  { %v603_v46 = vmul.f32 %v602_v43, %v597_v38 }
 0x6ab   :  { %v604_v47 = vadd.f32 -0.28449672, %v603_v46 }
 0x6ad   :  { %v605_v48 = vmul.f32 %v604_v47, %v597_v38 }
 0x6af   :  { %v606_v49 = vadd.f32 0.2548296, %v605_v48 }
 0x6b1   :  { %v607_v50 = vmul.f32 %v606_v49, %v597_v38 }
 0x6b3   :  { %v612_v52 = vmul.f32 %v2576_v51, %v607_v50 }
 0x6b5   :  { %v613_v53 = vsub.f32 1.0, %v612_v52 }
 0x6b7   :  { %v614_v55 = vmul.f32 %v613_v53, %v580_v54 }
 0x6b9   :  { %v615_v58 = vadd.f32 1.0, %v614_v55 }
 0x6bb   :  { %v616_v59 = vmul.f32 %v615_v58, %v577_v56 }
 0x6bd   :  { %v621_v60 = vsel %vm277_vm6, %v616_v59, 0.0 }
 0x6be   :  { %622 = vadd.xlane.f32.xlu0 %v621_v60 }
 0x731   :  { %v623_v61 = vpop.xlane.xlu0 %622 }
 0x732   :  { %v624_v62 = vmul.f32 %v623_v61, %v3019_v57 }
 0x734   :  { %v625_v63 = vsub.f32 %v616_v59, %v624_v62 }
 0x736   :  { %v626_v0 = vmul.f32 %v625_v63, %v625_v63 }
 0x738   :  { %v627_v1 = vsel %vm277_vm6, %v626_v0, 0.0 }
 0x739   :  { %628 = vadd.xlane.f32.xlu1 %v627_v1 }
 0x7ac   :  { %v629_v4 = vpop.xlane.xlu1 %628 }
 0x7ad   :  { %v630_v5 = vmul.f32 %v629_v4, %v3019_v57  ;;  %v2461_v4 = vld [vmem:[%s3341_s7 + $0x20] sm:$0xff] }
 0x7ae   :  { %798 = vmatpush.bf16.msrb.mxu2 %v2461_v4  ;;  %v2464_v4 = vld [vmem:[%s3337_s3 + $0x38] sm:$0xff] }
 0x7af   :  { %v631_v6 = vadd.f32 1e-05, %v630_v5  ;;  %911 = vmatpush.bf16.msrb.mxu3 %v2464_v4 }
 0x7b1   :  { %2577 = vrsqrt.f32 %v631_v6  ;;  %vm638_vm4 = vweird.f32 %v631_v6 }
 0x7b7   :  { %v2578_v7 = vpop.eup %2577 }
 0x7b8   :  { %v633_v9 = vmul.f32 %v2578_v7, %v631_v6  ;;  %vm639_vm3 = vweird.f32 %v2578_v7 }
 0x7b9   :  { %vm640_vm5 = vmor %vm638_vm4, %vm639_vm3 }
 0x7ba   :  { %v634_v10 = vmul.f32 %v2578_v7, %v633_v9 }
 0x7bc   :  { %v635_v11 = vmul.f32 0.5, %v634_v10 }
 0x7be   :  { %v636_v12 = vsub.f32 1.5, %v635_v11 }
 0x7c0   :  { %v637_v13 = vmul.f32 %v2578_v7, %v636_v12 }
 0x7c2   :  { %v641_v15 = vsel %vm640_vm5, %v2578_v7, %v637_v13 }
 0x7c3   :  { %v642_v16 = vmul.f32 %v641_v15, %v625_v63  ;;  %v2515_v15 = vld [vmem:[%s3339_s5 + $0x2] ss:$0 sm:$0xff] }
 0x7c5   :  { %v646_v19 = vmul.f32 %v2512_v14, %v642_v16 }
 0x7c7   :  { %v650_v20 = vadd.f32 %v2513_v17, %v646_v19  ;;  %v2516_v19 = vld [vmem:[%s3340_s6 + $0x2] ss:$0 sm:$0xff] }
 0x7c9   :  { %v3087_v21 = vadd.f32 %v650_v20, %v3049_v18 }
 0x7cb   :  { %v652_v22 = vpack.c.bf16 %v3087_v21, %v3087_v21 }
 0x7cd   :  { %2261 = vmatmul.msk.bf16.vlgmr.msrb.gmra.mxu1 %vm181_vm0, %v652_v22 }
 0x84a   :  { %v687_v24 = vpop.f32.mrf.mxu1 }
 0x84b   :  { %v688_v25 = vadd.f32 %v2514_v23, %v687_v24  ;;  %v2517_v24 = vld [vmem:[#allocation5 + $0x2] ss:$0 sm:$0xff] }
 0x84d   :  { %v692_v26 = vmul.f32 0.70710677, %v688_v25  ;;  %v691_v58 = vmul.f32 0.5, %v688_v25 }
 0x84f   :  { %v695_v27 = vand.u32 2147483647, %v692_v26  ;;  %vm693_vm11 = vcmp.ge.f32.partialorder %v692_v26, 0.0 }
 0x850   :  { %v694_v55 = vsel %vm693_vm11, 1.0, %v2870_v44 }
 0x851   :  { %v696_v28 = vmul.f32 0.3275911, %v695_v27  ;;  %v722_v38 = vsub.f32 0.0, %v695_v27 }
 0x852   :  { %v689_v8 = vpop.f32.mrf.mxu1 }
 0x853   :  { %v697_v29 = vadd.f32 1.0, %v696_v28  ;;  %v723_v42 = vmul.f32 %v722_v38, %v695_v27 }
 0x855   :  { %2579 = vrcp.f32 %v697_v29  ;;  %v709_v32 = vand.u32 2147483648, %v697_v29  ;;  %v707_v34 = vand.u32 2147483647, %v697_v29  ;;  %vm703_vm8 = vweird.f32 %v697_v29 }
 0x856   :  { %v724_v46 = vmul.f32 1.442695, %v723_v42 }
 0x857   :  { %v710_v36 = vor.u32 1.1754944e-38, %v709_v32  ;;  %vm708_vm10 = vcmp.eq.f32.partialorder %v707_v34, 8.507059e+37 }
 0x858   :  { %2581 = vpow2.f32 %v724_v46 }
 0x85b   :  { %v2580_v30 = vpop.eup %2579 }
 0x85c   :  { %v699_v18 = vmul.f32 %v2580_v30, %v697_v29  ;;  %vm704_vm7 = vweird.f32 %v2580_v30 }
 0x85d   :  { %vm705_vm9 = vmor %vm703_vm8, %vm704_vm7 }
 0x85e   :  { %v700_v31 = vsub.f32 1.0, %v699_v18  ;;  %v2582_v52 = vpop.eup %2581 }
 0x860   :  { %v701_v33 = vmul.f32 %v2580_v30, %v700_v31 }
 0x862   :  { %v702_v35 = vadd.f32 %v2580_v30, %v701_v33 }
 0x864   :  { %v706_v37 = vsel %vm705_vm9, %v2580_v30, %v702_v35 }
 0x865   :  { %v711_v39 = vsel %vm708_vm10, %v710_v36, %v706_v37 }
 0x866   :  { %v713_v40 = vmul.f32 1.0614054, %v711_v39 }
 0x868   :  { %v714_v41 = vadd.f32 -1.4531521, %v713_v40 }
 0x86a   :  { %v715_v43 = vmul.f32 %v714_v41, %v711_v39 }
 0x86c   :  { %v716_v45 = vadd.f32 1.4214138, %v715_v43 }
 0x86e   :  { %v717_v47 = vmul.f32 %v716_v45, %v711_v39 }
 0x870   :  { %v718_v48 = vadd.f32 -0.28449672, %v717_v47 }
 0x872   :  { %v719_v49 = vmul.f32 %v718_v48, %v711_v39 }
 0x874   :  { %v720_v50 = vadd.f32 0.2548296, %v719_v49 }
 0x876   :  { %v721_v51 = vmul.f32 %v720_v50, %v711_v39 }
 0x878   :  { %v726_v53 = vmul.f32 %v2582_v52, %v721_v51 }
 0x87a   :  { %v727_v54 = vsub.f32 1.0, %v726_v53 }
 0x87c   :  { %v728_v56 = vmul.f32 %v727_v54, %v694_v55 }
 0x87e   :  { %v729_v59 = vadd.f32 1.0, %v728_v56 }
 0x880   :  { %v730_v60 = vmul.f32 %v729_v59, %v691_v58 }
 0x882   :  { %v735_v61 = vsel %vm277_vm6, %v730_v60, 0.0 }
 0x883   :  { %736 = vadd.xlane.f32.xlu2 %v735_v61 }
 0x8f6   :  { %v737_v62 = vpop.xlane.xlu2 %736 }
 0x8f7   :  { %v738_v63 = vmul.f32 %v737_v62, %v3019_v57 }
 0x8f9   :  { %v739_v0 = vsub.f32 %v730_v60, %v738_v63 }
 0x8fb   :  { %v740_v1 = vmul.f32 %v739_v0, %v739_v0 }
 0x8fd   :  { %v741_v2 = vsel %vm277_vm6, %v740_v1, 0.0 }
 0x8fe   :  { %742 = vadd.xlane.f32.xlu0 %v741_v2 }
 0x971   :  { %v743_v5 = vpop.xlane.xlu0 %742 }
 0x972   :  { %v744_v6 = vmul.f32 %v743_v5, %v3019_v57  ;;  %v2463_v5 = vld [vmem:[%s3337_s3 + $0x30] sm:$0xff] }
 0x973   :  { %912 = vmatpush.bf16.msrb.mxu3 %v2463_v5  ;;  %v2466_v5 = vld [vmem:[%s3341_s7 + $0x38] sm:$0xff] }
 0x974   :  { %v745_v7 = vadd.f32 1e-05, %v744_v6  ;;  %1024 = vmatpush.bf16.msra.mxu0 %v2466_v5 }
 0x976   :  { %2583 = vrsqrt.f32 %v745_v7  ;;  %vm752_vm13 = vweird.f32 %v745_v7 }
 0x97c   :  { %v2584_v9 = vpop.eup %2583 }
 0x97d   :  { %v747_v10 = vmul.f32 %v2584_v9, %v745_v7  ;;  %vm753_vm12 = vweird.f32 %v2584_v9 }
 0x97e   :  { %vm754_vm14 = vmor %vm752_vm13, %vm753_vm12 }
 0x97f   :  { %v748_v11 = vmul.f32 %v2584_v9, %v747_v10 }
 0x981   :  { %v749_v12 = vmul.f32 0.5, %v748_v11 }
 0x983   :  { %v750_v13 = vsub.f32 1.5, %v749_v12 }
 0x985   :  { %v751_v14 = vmul.f32 %v2584_v9, %v750_v13 }
 0x987   :  { %v755_v16 = vsel %vm754_vm14, %v2584_v9, %v751_v14 }
 0x988   :  { %v756_v17 = vmul.f32 %v755_v16, %v739_v0  ;;  %v2518_v16 = vld [vmem:[#allocation7 + $0x2] ss:$0 sm:$0xff] }
 0x98a   :  { %v760_v20 = vmul.f32 %v2515_v15, %v756_v17 }
 0x98c   :  { %v764_v22 = vadd.f32 %v2516_v19, %v760_v20  ;;  %v2519_v20 = vld [vmem:[#allocation8 + $0x2] ss:$0 sm:$0xff] }
 0x98e   :  { %v765_v23 = vpack.c.bf16 %v764_v22, %v764_v22 }
 0x990   :  { %2276 = vmatmul.msk.bf16.vlgmr.msrb.gmra.mxu2 %vm181_vm0, %v765_v23 }
 0xa13   :  { %v800_v25 = vpop.f32.mrf.mxu2 }
 0xa14   :  { %v801_v26 = vadd.f32 %v2517_v24, %v800_v25 }
 0xa16   :  { %v805_v27 = vmul.f32 0.70710677, %v801_v26  ;;  %v804_v59 = vmul.f32 0.5, %v801_v26  ;;  %v2520_v26 = vld [vmem:[%s3338_s4 + $0x3] ss:$0 sm:$0xff] }
 0xa18   :  { %v808_v28 = vand.u32 2147483647, %v805_v27  ;;  %vm806_vm4 = vcmp.ge.f32.partialorder %v805_v27, 0.0 }
 0xa19   :  { %v807_v56 = vsel %vm806_vm4, 1.0, %v2870_v44 }
 0xa1a   :  { %v809_v8 = vmul.f32 0.3275911, %v808_v28  ;;  %v835_v39 = vsub.f32 0.0, %v808_v28 }
 0xa1b   :  { %v802_v29 = vpop.f32.mrf.mxu2 }
 0xa1c   :  { %v810_v30 = vadd.f32 1.0, %v809_v8  ;;  %v836_v43 = vmul.f32 %v835_v39, %v808_v28 }
 0xa1e   :  { %2585 = vrcp.f32 %v810_v30  ;;  %v822_v33 = vand.u32 2147483648, %v810_v30  ;;  %v820_v35 = vand.u32 2147483647, %v810_v30  ;;  %vm816_vm1 = vweird.f32 %v810_v30 }
 0xa1f   :  { %v837_v47 = vmul.f32 1.442695, %v836_v43 }
 0xa20   :  { %v823_v37 = vor.u32 1.1754944e-38, %v822_v33  ;;  %vm821_vm3 = vcmp.eq.f32.partialorder %v820_v35, 8.507059e+37 }
 0xa21   :  { %2587 = vpow2.f32 %v837_v47 }
 0xa24   :  { %v2586_v18 = vpop.eup %2585 }
 0xa25   :  { %v812_v31 = vmul.f32 %v2586_v18, %v810_v30  ;;  %vm817_vm15 = vweird.f32 %v2586_v18 }
 0xa26   :  { %vm818_vm2 = vmor %vm816_vm1, %vm817_vm15 }
 0xa27   :  { %v813_v32 = vsub.f32 1.0, %v812_v31  ;;  %v2588_v53 = vpop.eup %2587 }
 0xa29   :  { %v814_v34 = vmul.f32 %v2586_v18, %v813_v32 }
 0xa2b   :  { %v815_v36 = vadd.f32 %v2586_v18, %v814_v34 }
 0xa2d   :  { %v819_v38 = vsel %vm818_vm2, %v2586_v18, %v815_v36 }
 0xa2e   :  { %v824_v40 = vsel %vm821_vm3, %v823_v37, %v819_v38 }
 0xa2f   :  { %v826_v41 = vmul.f32 1.0614054, %v824_v40 }
 0xa31   :  { %v827_v42 = vadd.f32 -1.4531521, %v826_v41 }
 0xa33   :  { %v828_v45 = vmul.f32 %v827_v42, %v824_v40 }
 0xa35   :  { %v829_v46 = vadd.f32 1.4214138, %v828_v45 }
 0xa37   :  { %v830_v48 = vmul.f32 %v829_v46, %v824_v40 }
 0xa39   :  { %v831_v49 = vadd.f32 -0.28449672, %v830_v48 }
 0xa3b   :  { %v832_v50 = vmul.f32 %v831_v49, %v824_v40 }
 0xa3d   :  { %v833_v51 = vadd.f32 0.2548296, %v832_v50 }
 0xa3f   :  { %v834_v52 = vmul.f32 %v833_v51, %v824_v40 }
 0xa41   :  { %v839_v54 = vmul.f32 %v2588_v53, %v834_v52 }
 0xa43   :  { %v840_v55 = vsub.f32 1.0, %v839_v54 }
 0xa45   :  { %v841_v58 = vmul.f32 %v840_v55, %v807_v56 }
 0xa47   :  { %v842_v60 = vadd.f32 1.0, %v841_v58 }
 0xa49   :  { %v843_v61 = vmul.f32 %v842_v60, %v804_v59 }
 0xa4b   :  { %v848_v62 = vsel %vm277_vm6, %v843_v61, 0.0 }
 0xa4c   :  { %849 = vadd.xlane.f32.xlu1 %v848_v62 }
 0xabf   :  { %v850_v63 = vpop.xlane.xlu1 %849 }
 0xac0   :  { %v851_v0 = vmul.f32 %v850_v63, %v3019_v57 }
 0xac2   :  { %v852_v1 = vsub.f32 %v843_v61, %v851_v0 }
 0xac4   :  { %v853_v2 = vmul.f32 %v852_v1, %v852_v1 }
 0xac6   :  { %v854_v3 = vsel %vm277_vm6, %v853_v2, 0.0 }
 0xac7   :  { %855 = vadd.xlane.f32.xlu2 %v854_v3 }
 0xb3a   :  { %v856_v6 = vpop.xlane.xlu2 %855 }
 0xb3b   :  { %v857_v7 = vmul.f32 %v856_v6, %v3019_v57  ;;  %v2465_v6 = vld [vmem:[%s3341_s7 + $0x30] sm:$0xff] }
 0xb3c   :  { %1025 = vmatpush.bf16.msra.mxu0 %v2465_v6  ;;  %v2468_v6 = vld [vmem:[%s3337_s3 + $0x48] sm:$0xff] }
 0xb3d   :  { %v858_v9 = vadd.f32 1e-05, %v857_v7  ;;  %1138 = vmatpush.bf16.msra.mxu1 %v2468_v6 }
 0xb3f   :  { %2589 = vrsqrt.f32 %v858_v9  ;;  %vm865_vm7 = vweird.f32 %v858_v9 }
 0xb45   :  { %v2590_v10 = vpop.eup %2589 }
 0xb46   :  { %v860_v11 = vmul.f32 %v2590_v10, %v858_v9  ;;  %vm866_vm5 = vweird.f32 %v2590_v10 }
 0xb47   :  { %vm867_vm8 = vmor %vm865_vm7, %vm866_vm5 }
 0xb48   :  { %v861_v12 = vmul.f32 %v2590_v10, %v860_v11 }
 0xb4a   :  { %v862_v13 = vmul.f32 0.5, %v861_v12 }
 0xb4c   :  { %v863_v14 = vsub.f32 1.5, %v862_v13 }
 0xb4e   :  { %v864_v15 = vmul.f32 %v2590_v10, %v863_v14 }
 0xb50   :  { %v868_v17 = vsel %vm867_vm8, %v2590_v10, %v864_v15 }
 0xb51   :  { %v869_v19 = vmul.f32 %v868_v17, %v852_v1  ;;  %v2521_v17 = vld [vmem:[%s3339_s5 + $0x3] ss:$0 sm:$0xff] }
 0xb53   :  { %v873_v22 = vmul.f32 %v2518_v16, %v869_v19 }
 0xb55   :  { %v877_v23 = vadd.f32 %v2519_v20, %v873_v22  ;;  %v2522_v22 = vld [vmem:[%s3340_s6 + $0x3] ss:$0 sm:$0xff] }
 0xb57   :  { %v3125_v24 = vadd.f32 %v877_v23, %v3087_v21 }
 0xb59   :  { %v879_v25 = vpack.c.bf16 %v3125_v24, %v3125_v24 }
 0xb5b   :  { %2290 = vmatmul.msk.bf16.vlgmr.msrb.gmra.mxu3 %vm181_vm0, %v879_v25 }
 0xbde   :  { %v914_v27 = vpop.f32.mrf.mxu3 }
 0xbdf   :  { %v915_v28 = vadd.f32 %v2520_v26, %v914_v27  ;;  %v2523_v27 = vld [vmem:[#allocation5 + $0x3] ss:$0 sm:$0xff] }
 0xbe1   :  { %v919_v8 = vmul.f32 0.70710677, %v915_v28  ;;  %v918_v60 = vmul.f32 0.5, %v915_v28 }
 0xbe3   :  { %v922_v29 = vand.u32 2147483647, %v919_v8  ;;  %vm920_vm13 = vcmp.ge.f32.partialorder %v919_v8, 0.0 }
 0xbe4   :  { %v921_v58 = vsel %vm920_vm13, 1.0, %v2870_v44 }
 0xbe5   :  { %v923_v30 = vmul.f32 0.3275911, %v922_v29  ;;  %v949_v40 = vsub.f32 0.0, %v922_v29 }
 0xbe6   :  { %v916_v18 = vpop.f32.mrf.mxu3 }
 0xbe7   :  { %v924_v31 = vadd.f32 1.0, %v923_v30  ;;  %v950_v45 = vmul.f32 %v949_v40, %v922_v29 }
 0xbe9   :  { %2591 = vrcp.f32 %v924_v31  ;;  %v936_v34 = vand.u32 2147483648, %v924_v31  ;;  %v934_v36 = vand.u32 2147483647, %v924_v31  ;;  %vm930_vm10 = vweird.f32 %v924_v31 }
 0xbea   :  { %v951_v48 = vmul.f32 1.442695, %v950_v45 }
 0xbeb   :  { %v937_v38 = vor.u32 1.1754944e-38, %v936_v34  ;;  %vm935_vm12 = vcmp.eq.f32.partialorder %v934_v36, 8.507059e+37 }
 0xbec   :  { %2593 = vpow2.f32 %v951_v48 }
 0xbef   :  { %v2592_v32 = vpop.eup %2591 }
 0xbf0   :  { %v926_v21 = vmul.f32 %v2592_v32, %v924_v31  ;;  %vm931_vm9 = vweird.f32 %v2592_v32 }
 0xbf1   :  { %vm932_vm11 = vmor %vm930_vm10, %vm931_vm9 }
 0xbf2   :  { %v927_v33 = vsub.f32 1.0, %v926_v21  ;;  %v2594_v54 = vpop.eup %2593 }
 0xbf4   :  { %v928_v35 = vmul.f32 %v2592_v32, %v927_v33 }
 0xbf6   :  { %v929_v37 = vadd.f32 %v2592_v32, %v928_v35 }
 0xbf8   :  { %v933_v39 = vsel %vm932_vm11, %v2592_v32, %v929_v37 }
 0xbf9   :  { %v938_v41 = vsel %vm935_vm12, %v937_v38, %v933_v39 }
 0xbfa   :  { %v940_v42 = vmul.f32 1.0614054, %v938_v41 }
 0xbfc   :  { %v941_v43 = vadd.f32 -1.4531521, %v940_v42 }
 0xbfe   :  { %v942_v46 = vmul.f32 %v941_v43, %v938_v41 }
 0xc00   :  { %v943_v47 = vadd.f32 1.4214138, %v942_v46 }
 0xc02   :  { %v944_v49 = vmul.f32 %v943_v47, %v938_v41 }
 0xc04   :  { %v945_v50 = vadd.f32 -0.28449672, %v944_v49 }
 0xc06   :  { %v946_v51 = vmul.f32 %v945_v50, %v938_v41 }
 0xc08   :  { %v947_v52 = vadd.f32 0.2548296, %v946_v51 }
 0xc0a   :  { %v948_v53 = vmul.f32 %v947_v52, %v938_v41 }
 0xc0c   :  { %v953_v55 = vmul.f32 %v2594_v54, %v948_v53 }
 0xc0e   :  { %v954_v56 = vsub.f32 1.0, %v953_v55 }
 0xc10   :  { %v955_v59 = vmul.f32 %v954_v56, %v921_v58 }
 0xc12   :  { %v956_v61 = vadd.f32 1.0, %v955_v59 }
 0xc14   :  { %v957_v62 = vmul.f32 %v956_v61, %v918_v60 }
 0xc16   :  { %v962_v63 = vsel %vm277_vm6, %v957_v62, 0.0 }
 0xc17   :  { %963 = vadd.xlane.f32.xlu0 %v962_v63 }
 0xc8a   :  { %v964_v0 = vpop.xlane.xlu0 %963 }
 0xc8b   :  { %v965_v1 = vmul.f32 %v964_v0, %v3019_v57 }
 0xc8d   :  { %v966_v2 = vsub.f32 %v957_v62, %v965_v1 }
 0xc8f   :  { %v967_v3 = vmul.f32 %v966_v2, %v966_v2 }
 0xc91   :  { %v968_v4 = vsel %vm277_vm6, %v967_v3, 0.0 }
 0xc92   :  { %969 = vadd.xlane.f32.xlu1 %v968_v4 }
 0xd05   :  { %v970_v7 = vpop.xlane.xlu1 %969 }
 0xd06   :  { %v971_v9 = vmul.f32 %v970_v7, %v3019_v57  ;;  %v2467_v7 = vld [vmem:[%s3337_s3 + $0x40] sm:$0xff] }
 0xd07   :  { %1139 = vmatpush.bf16.msra.mxu1 %v2467_v7  ;;  %v2470_v7 = vld [vmem:[%s3341_s7 + $0x48] sm:$0xff] }
 0xd08   :  { %v972_v10 = vadd.f32 1e-05, %v971_v9  ;;  %1251 = vmatpush.bf16.msra.mxu2 %v2470_v7 }
 0xd0a   :  { %2595 = vrsqrt.f32 %v972_v10  ;;  %vm979_vm15 = vweird.f32 %v972_v10 }
 0xd10   :  { %v2596_v11 = vpop.eup %2595 }
 0xd11   :  { %v974_v12 = vmul.f32 %v2596_v11, %v972_v10  ;;  %vm980_vm14 = vweird.f32 %v2596_v11 }
 0xd12   :  { %vm981_vm1 = vmor %vm979_vm15, %vm980_vm14 }
 0xd13   :  { %v975_v13 = vmul.f32 %v2596_v11, %v974_v12 }
 0xd15   :  { %v976_v14 = vmul.f32 0.5, %v975_v13 }
 0xd17   :  { %v977_v15 = vsub.f32 1.5, %v976_v14 }
 0xd19   :  { %v978_v16 = vmul.f32 %v2596_v11, %v977_v15 }
 0xd1b   :  { %v982_v19 = vsel %vm981_vm1, %v2596_v11, %v978_v16 }
 0xd1c   :  { %v983_v20 = vmul.f32 %v982_v19, %v966_v2  ;;  %v2524_v19 = vld [vmem:[#allocation7 + $0x3] ss:$0 sm:$0xff] }
 0xd1e   :  { %v987_v23 = vmul.f32 %v2521_v17, %v983_v20 }
 0xd20   :  { %v991_v25 = vadd.f32 %v2522_v22, %v987_v23  ;;  %v2525_v22 = vld [vmem:[#allocation8 + $0x3] ss:$0 sm:$0xff] }
 0xd22   :  { %v992_v26 = vpack.c.bf16 %v991_v25, %v991_v25 }
 0xd24   :  { %2305 = vmatmul.msk.bf16.vlgmr.msra.gmra.mxu0 %vm181_vm0, %v992_v26 }
 0xda1   :  { %v1027_v28 = vpop.f32.mrf.mxu0 }
 0xda2   :  { %v1028_v8 = vadd.f32 %v2523_v27, %v1027_v28 }
 0xda4   :  { %v1032_v29 = vmul.f32 0.70710677, %v1028_v8  ;;  %v1031_v61 = vmul.f32 0.5, %v1028_v8  ;;  %v2526_v8 = vld [vmem:[%s3338_s4 + $0x4] ss:$0 sm:$0xff] }
 0xda6   :  { %v1035_v30 = vand.u32 2147483647, %v1032_v29  ;;  %vm1033_vm7 = vcmp.ge.f32.partialorder %v1032_v29, 0.0 }
 0xda7   :  { %v1034_v59 = vsel %vm1033_vm7, 1.0, %v2870_v44 }
 0xda8   :  { %v1036_v18 = vmul.f32 0.3275911, %v1035_v30  ;;  %v1062_v41 = vsub.f32 0.0, %v1035_v30 }
 0xda9   :  { %v1029_v31 = vpop.f32.mrf.mxu0 }
 0xdaa   :  { %v1037_v32 = vadd.f32 1.0, %v1036_v18  ;;  %v1063_v46 = vmul.f32 %v1062_v41, %v1035_v30 }
 0xdac   :  { %2597 = vrcp.f32 %v1037_v32  ;;  %v1049_v35 = vand.u32 2147483648, %v1037_v32  ;;  %v1047_v37 = vand.u32 2147483647, %v1037_v32  ;;  %vm1043_vm3 = vweird.f32 %v1037_v32 }
 0xdad   :  { %v1064_v49 = vmul.f32 1.442695, %v1063_v46 }
 0xdae   :  { %v1050_v39 = vor.u32 1.1754944e-38, %v1049_v35  ;;  %vm1048_vm5 = vcmp.eq.f32.partialorder %v1047_v37, 8.507059e+37 }
 0xdaf   :  { %2599 = vpow2.f32 %v1064_v49 }
 0xdb2   :  { %v2598_v21 = vpop.eup %2597 }
 0xdb3   :  { %v1039_v33 = vmul.f32 %v2598_v21, %v1037_v32  ;;  %vm1044_vm2 = vweird.f32 %v2598_v21 }
 0xdb4   :  { %vm1045_vm4 = vmor %vm1043_vm3, %vm1044_vm2 }
 0xdb5   :  { %v1040_v34 = vsub.f32 1.0, %v1039_v33  ;;  %v2600_v55 = vpop.eup %2599 }
 0xdb7   :  { %v1041_v36 = vmul.f32 %v2598_v21, %v1040_v34 }
 0xdb9   :  { %v1042_v38 = vadd.f32 %v2598_v21, %v1041_v36 }
 0xdbb   :  { %v1046_v40 = vsel %vm1045_vm4, %v2598_v21, %v1042_v38 }
 0xdbc   :  { %v1051_v42 = vsel %vm1048_vm5, %v1050_v39, %v1046_v40 }
 0xdbd   :  { %v1053_v43 = vmul.f32 1.0614054, %v1051_v42 }
 0xdbf   :  { %v1054_v45 = vadd.f32 -1.4531521, %v1053_v43 }
 0xdc1   :  { %v1055_v47 = vmul.f32 %v1054_v45, %v1051_v42 }
 0xdc3   :  { %v1056_v48 = vadd.f32 1.4214138, %v1055_v47 }
 0xdc5   :  { %v1057_v50 = vmul.f32 %v1056_v48, %v1051_v42 }
 0xdc7   :  { %v1058_v51 = vadd.f32 -0.28449672, %v1057_v50 }
 0xdc9   :  { %v1059_v52 = vmul.f32 %v1058_v51, %v1051_v42 }
 0xdcb   :  { %v1060_v53 = vadd.f32 0.2548296, %v1059_v52 }
 0xdcd   :  { %v1061_v54 = vmul.f32 %v1060_v53, %v1051_v42 }
 0xdcf   :  { %v1066_v56 = vmul.f32 %v2600_v55, %v1061_v54 }
 0xdd1   :  { %v1067_v58 = vsub.f32 1.0, %v1066_v56 }
 0xdd3   :  { %v1068_v60 = vmul.f32 %v1067_v58, %v1034_v59 }
 0xdd5   :  { %v1069_v62 = vadd.f32 1.0, %v1068_v60 }
 0xdd7   :  { %v1070_v63 = vmul.f32 %v1069_v62, %v1031_v61 }
 0xdd9   :  { %v1075_v0 = vsel %vm277_vm6, %v1070_v63, 0.0 }
 0xdda   :  { %1076 = vadd.xlane.f32.xlu2 %v1075_v0 }
 0xe4d   :  { %v1077_v1 = vpop.xlane.xlu2 %1076 }
 0xe4e   :  { %v1078_v2 = vmul.f32 %v1077_v1, %v3019_v57 }
 0xe50   :  { %v1079_v3 = vsub.f32 %v1070_v63, %v1078_v2 }
 0xe52   :  { %v1080_v4 = vmul.f32 %v1079_v3, %v1079_v3 }
 0xe54   :  { %v1081_v5 = vsel %vm277_vm6, %v1080_v4, 0.0 }
 0xe55   :  { %1082 = vadd.xlane.f32.xlu0 %v1081_v5 }
 0xec8   :  { %v1083_v9 = vpop.xlane.xlu0 %1082 }
 0xec9   :  { %v1084_v10 = vmul.f32 %v1083_v9, %v3019_v57  ;;  %v2469_v9 = vld [vmem:[%s3341_s7 + $0x40] sm:$0xff] }
 0xeca   :  { %1252 = vmatpush.bf16.msra.mxu2 %v2469_v9  ;;  %v2472_v9 = vld [vmem:[%s3337_s3 + $0x58] sm:$0xff] }
 0xecb   :  { %v1085_v11 = vadd.f32 1e-05, %v1084_v10  ;;  %1365 = vmatpush.bf16.msra.mxu3 %v2472_v9 }
 0xecd   :  { %2601 = vrsqrt.f32 %v1085_v11  ;;  %vm1092_vm9 = vweird.f32 %v1085_v11 }
 0xed3   :  { %v2602_v12 = vpop.eup %2601 }
 0xed4   :  { %v1087_v13 = vmul.f32 %v2602_v12, %v1085_v11  ;;  %vm1093_vm8 = vweird.f32 %v2602_v12 }
 0xed5   :  { %vm1094_vm10 = vmor %vm1092_vm9, %vm1093_vm8 }
 0xed6   :  { %v1088_v14 = vmul.f32 %v2602_v12, %v1087_v13 }
 0xed8   :  { %v1089_v15 = vmul.f32 0.5, %v1088_v14 }
 0xeda   :  { %v1090_v16 = vsub.f32 1.5, %v1089_v15 }
 0xedc   :  { %v1091_v17 = vmul.f32 %v2602_v12, %v1090_v16 }
 0xede   :  { %v1095_v20 = vsel %vm1094_vm10, %v2602_v12, %v1091_v17 }
 0xedf   :  { %v1096_v23 = vmul.f32 %v1095_v20, %v1079_v3  ;;  %v2527_v20 = vld [vmem:[%s3339_s5 + $0x4] ss:$0 sm:$0xff] }
 0xee1   :  { %v1100_v25 = vmul.f32 %v2524_v19, %v1096_v23 }
 0xee3   :  { %v1104_v26 = vadd.f32 %v2525_v22, %v1100_v25  ;;  %v2528_v25 = vld [vmem:[%s3340_s6 + $0x4] ss:$0 sm:$0xff] }
 0xee5   :  { %v3163_v27 = vadd.f32 %v1104_v26, %v3125_v24 }
 0xee7   :  { %v1106_v28 = vpack.c.bf16 %v3163_v27, %v3163_v27 }
 0xee9   :  { %2319 = vmatmul.msk.bf16.vlgmr.msra.gmra.mxu1 %vm181_vm0, %v1106_v28 }
 0xf66   :  { %v1141_v29 = vpop.f32.mrf.mxu1 }
 0xf67   :  { %v1142_v30 = vadd.f32 %v2526_v8, %v1141_v29  ;;  %v2529_v29 = vld [vmem:[#allocation5 + $0x4] ss:$0 sm:$0xff] }
 0xf69   :  { %v1146_v18 = vmul.f32 0.70710677, %v1142_v30  ;;  %v1145_v62 = vmul.f32 0.5, %v1142_v30 }
 0xf6b   :  { %v1149_v31 = vand.u32 2147483647, %v1146_v18  ;;  %vm1147_vm15 = vcmp.ge.f32.partialorder %v1146_v18, 0.0 }
 0xf6c   :  { %v1148_v60 = vsel %vm1147_vm15, 1.0, %v2870_v44 }
 0xf6d   :  { %v1150_v32 = vmul.f32 0.3275911, %v1149_v31  ;;  %v1176_v42 = vsub.f32 0.0, %v1149_v31 }
 0xf6e   :  { %v1143_v21 = vpop.f32.mrf.mxu1 }
 0xf6f   :  { %v1151_v33 = vadd.f32 1.0, %v1150_v32  ;;  %v1177_v47 = vmul.f32 %v1176_v42, %v1149_v31 }
 0xf71   :  { %2603 = vrcp.f32 %v1151_v33  ;;  %v1163_v36 = vand.u32 2147483648, %v1151_v33  ;;  %v1161_v38 = vand.u32 2147483647, %v1151_v33  ;;  %vm1157_vm12 = vweird.f32 %v1151_v33 }
 0xf72   :  { %v1178_v50 = vmul.f32 1.442695, %v1177_v47 }
 0xf73   :  { %v1164_v40 = vor.u32 1.1754944e-38, %v1163_v36  ;;  %vm1162_vm14 = vcmp.eq.f32.partialorder %v1161_v38, 8.507059e+37 }
 0xf74   :  { %2605 = vpow2.f32 %v1178_v50 }
 0xf77   :  { %v2604_v34 = vpop.eup %2603 }
 0xf78   :  { %v1153_v24 = vmul.f32 %v2604_v34, %v1151_v33  ;;  %vm1158_vm11 = vweird.f32 %v2604_v34 }
 0xf79   :  { %vm1159_vm13 = vmor %vm1157_vm12, %vm1158_vm11 }
 0xf7a   :  { %v1154_v35 = vsub.f32 1.0, %v1153_v24  ;;  %v2606_v56 = vpop.eup %2605 }
 0xf7c   :  { %v1155_v37 = vmul.f32 %v2604_v34, %v1154_v35 }
 0xf7e   :  { %v1156_v39 = vadd.f32 %v2604_v34, %v1155_v37 }
 0xf80   :  { %v1160_v41 = vsel %vm1159_vm13, %v2604_v34, %v1156_v39 }
 0xf81   :  { %v1165_v43 = vsel %vm1162_vm14, %v1164_v40, %v1160_v41 }
 0xf82   :  { %v1167_v45 = vmul.f32 1.0614054, %v1165_v43 }
 0xf84   :  { %v1168_v46 = vadd.f32 -1.4531521, %v1167_v45 }
 0xf86   :  { %v1169_v48 = vmul.f32 %v1168_v46, %v1165_v43 }
 0xf88   :  { %v1170_v49 = vadd.f32 1.4214138, %v1169_v48 }
 0xf8a   :  { %v1171_v51 = vmul.f32 %v1170_v49, %v1165_v43 }
 0xf8c   :  { %v1172_v52 = vadd.f32 -0.28449672, %v1171_v51 }
 0xf8e   :  { %v1173_v53 = vmul.f32 %v1172_v52, %v1165_v43 }
 0xf90   :  { %v1174_v54 = vadd.f32 0.2548296, %v1173_v53 }
 0xf92   :  { %v1175_v55 = vmul.f32 %v1174_v54, %v1165_v43 }
 0xf94   :  { %v1180_v58 = vmul.f32 %v2606_v56, %v1175_v55 }
 0xf96   :  { %v1181_v59 = vsub.f32 1.0, %v1180_v58 }
 0xf98   :  { %v1182_v61 = vmul.f32 %v1181_v59, %v1148_v60 }
 0xf9a   :  { %v1183_v63 = vadd.f32 1.0, %v1182_v61 }
 0xf9c   :  { %v1184_v0 = vmul.f32 %v1183_v63, %v1145_v62 }
 0xf9e   :  { %v1189_v1 = vsel %vm277_vm6, %v1184_v0, 0.0 }
 0xf9f   :  { %1190 = vadd.xlane.f32.xlu1 %v1189_v1 }
0x1012   :  { %v1191_v2 = vpop.xlane.xlu1 %1190 }
0x1013   :  { %v1192_v3 = vmul.f32 %v1191_v2, %v3019_v57 }
0x1015   :  { %v1193_v4 = vsub.f32 %v1184_v0, %v1192_v3 }
0x1017   :  { %v1194_v5 = vmul.f32 %v1193_v4, %v1193_v4 }
0x1019   :  { %v1195_v6 = vsel %vm277_vm6, %v1194_v5, 0.0 }
0x101a   :  { %1196 = vadd.xlane.f32.xlu2 %v1195_v6 }
0x108d   :  { %v1197_v10 = vpop.xlane.xlu2 %1196 }
0x108e   :  { %v1198_v11 = vmul.f32 %v1197_v10, %v3019_v57  ;;  %v2471_v10 = vld [vmem:[%s3337_s3 + $0x50] sm:$0xff] }
0x108f   :  { %1366 = vmatpush.bf16.msra.mxu3 %v2471_v10  ;;  %v2474_v10 = vld [vmem:[%s3341_s7 + $0x58] sm:$0xff] }
0x1090   :  { %v1199_v12 = vadd.f32 1e-05, %v1198_v11  ;;  %1478 = vmatpush.bf16.msrb.mxu0 %v2474_v10 }
0x1092   :  { %2607 = vrsqrt.f32 %v1199_v12  ;;  %vm1206_vm2 = vweird.f32 %v1199_v12 }
0x1098   :  { %v2608_v13 = vpop.eup %2607 }
0x1099   :  { %v1201_v14 = vmul.f32 %v2608_v13, %v1199_v12  ;;  %vm1207_vm1 = vweird.f32 %v2608_v13 }
0x109a   :  { %vm1208_vm3 = vmor %vm1206_vm2, %vm1207_vm1 }
0x109b   :  { %v1202_v15 = vmul.f32 %v2608_v13, %v1201_v14 }
0x109d   :  { %v1203_v16 = vmul.f32 0.5, %v1202_v15 }
0x109f   :  { %v1204_v17 = vsub.f32 1.5, %v1203_v16 }
0x10a1   :  { %v1205_v19 = vmul.f32 %v2608_v13, %v1204_v17 }
0x10a3   :  { %v1209_v22 = vsel %vm1208_vm3, %v2608_v13, %v1205_v19 }
0x10a4   :  { %v1210_v23 = vmul.f32 %v1209_v22, %v1193_v4  ;;  %v2530_v22 = vld [vmem:[#allocation7 + $0x4] ss:$0 sm:$0xff] }
0x10a6   :  { %v1214_v26 = vmul.f32 %v2527_v20, %v1210_v23 }
0x10a8   :  { %v1218_v28 = vadd.f32 %v2528_v25, %v1214_v26  ;;  %v2531_v25 = vld [vmem:[#allocation8 + $0x4] ss:$0 sm:$0xff] }
0x10aa   :  { %v1219_v8 = vpack.c.bf16 %v1218_v28, %v1218_v28 }
0x10ac   :  { %2334 = vmatmul.msk.bf16.vlgmr.msra.gmra.mxu2 %vm181_vm0, %v1219_v8 }
0x112f   :  { %v1254_v30 = vpop.f32.mrf.mxu2 }
0x1130   :  { %v1255_v18 = vadd.f32 %v2529_v29, %v1254_v30 }
0x1132   :  { %v1259_v31 = vmul.f32 0.70710677, %v1255_v18  ;;  %v1258_v63 = vmul.f32 0.5, %v1255_v18  ;;  %v2532_v18 = vld [vmem:[%s3338_s4 + $0x5] ss:$0 sm:$0xff] }
0x1134   :  { %v1262_v32 = vand.u32 2147483647, %v1259_v31  ;;  %vm1260_vm9 = vcmp.ge.f32.partialorder %v1259_v31, 0.0 }
0x1135   :  { %v1261_v61 = vsel %vm1260_vm9, 1.0, %v2870_v44 }
0x1136   :  { %v1263_v21 = vmul.f32 0.3275911, %v1262_v32  ;;  %v1289_v43 = vsub.f32 0.0, %v1262_v32 }
0x1137   :  { %v1256_v33 = vpop.f32.mrf.mxu2 }
0x1138   :  { %v1264_v34 = vadd.f32 1.0, %v1263_v21  ;;  %v1290_v48 = vmul.f32 %v1289_v43, %v1262_v32 }
0x113a   :  { %2609 = vrcp.f32 %v1264_v34  ;;  %v1276_v37 = vand.u32 2147483648, %v1264_v34  ;;  %v1274_v39 = vand.u32 2147483647, %v1264_v34  ;;  %vm1270_vm5 = vweird.f32 %v1264_v34 }
0x113b   :  { %v1291_v51 = vmul.f32 1.442695, %v1290_v48 }
0x113c   :  { %v1277_v41 = vor.u32 1.1754944e-38, %v1276_v37  ;;  %vm1275_vm8 = vcmp.eq.f32.partialorder %v1274_v39, 8.507059e+37 }
0x113d   :  { %2611 = vpow2.f32 %v1291_v51 }
0x1140   :  { %v2610_v24 = vpop.eup %2609 }
0x1141   :  { %v1266_v35 = vmul.f32 %v2610_v24, %v1264_v34  ;;  %vm1271_vm4 = vweird.f32 %v2610_v24 }
0x1142   :  { %vm1272_vm7 = vmor %vm1270_vm5, %vm1271_vm4 }
0x1143   :  { %v1267_v36 = vsub.f32 1.0, %v1266_v35  ;;  %v2612_v58 = vpop.eup %2611 }
0x1145   :  { %v1268_v38 = vmul.f32 %v2610_v24, %v1267_v36 }
0x1147   :  { %v1269_v40 = vadd.f32 %v2610_v24, %v1268_v38 }
0x1149   :  { %v1273_v42 = vsel %vm1272_vm7, %v2610_v24, %v1269_v40 }
0x114a   :  { %v1278_v45 = vsel %vm1275_vm8, %v1277_v41, %v1273_v42 }
0x114b   :  { %v1280_v46 = vmul.f32 1.0614054, %v1278_v45 }
0x114d   :  { %v1281_v47 = vadd.f32 -1.4531521, %v1280_v46 }
0x114f   :  { %v1282_v49 = vmul.f32 %v1281_v47, %v1278_v45 }
0x1151   :  { %v1283_v50 = vadd.f32 1.4214138, %v1282_v49 }
0x1153   :  { %v1284_v52 = vmul.f32 %v1283_v50, %v1278_v45 }
0x1155   :  { %v1285_v53 = vadd.f32 -0.28449672, %v1284_v52 }
0x1157   :  { %v1286_v54 = vmul.f32 %v1285_v53, %v1278_v45 }
0x1159   :  { %v1287_v55 = vadd.f32 0.2548296, %v1286_v54 }
0x115b   :  { %v1288_v56 = vmul.f32 %v1287_v55, %v1278_v45 }
0x115d   :  { %v1293_v59 = vmul.f32 %v2612_v58, %v1288_v56 }
0x115f   :  { %v1294_v60 = vsub.f32 1.0, %v1293_v59 }
0x1161   :  { %v1295_v62 = vmul.f32 %v1294_v60, %v1261_v61 }
0x1163   :  { %v1296_v0 = vadd.f32 1.0, %v1295_v62 }
0x1165   :  { %v1297_v1 = vmul.f32 %v1296_v0, %v1258_v63 }
0x1167   :  { %v1302_v2 = vsel %vm277_vm6, %v1297_v1, 0.0 }
0x1168   :  { %1303 = vadd.xlane.f32.xlu0 %v1302_v2 }
0x11db   :  { %v1304_v3 = vpop.xlane.xlu0 %1303 }
0x11dc   :  { %v1305_v4 = vmul.f32 %v1304_v3, %v3019_v57 }
0x11de   :  { %v1306_v5 = vsub.f32 %v1297_v1, %v1305_v4 }
0x11e0   :  { %v1307_v6 = vmul.f32 %v1306_v5, %v1306_v5 }
0x11e2   :  { %v1308_v7 = vsel %vm277_vm6, %v1307_v6, 0.0 }
0x11e3   :  { %1309 = vadd.xlane.f32.xlu1 %v1308_v7 }
0x1256   :  { %v1310_v11 = vpop.xlane.xlu1 %1309 }
0x1257   :  { %v1311_v12 = vmul.f32 %v1310_v11, %v3019_v57  ;;  %v2473_v11 = vld [vmem:[%s3341_s7 + $0x50] sm:$0xff] }
0x1258   :  { %1479 = vmatpush.bf16.msrb.mxu0 %v2473_v11  ;;  %v2476_v11 = vld [vmem:[%s3337_s3 + $0x68] sm:$0xff] }
0x1259   :  { %v1312_v13 = vadd.f32 1e-05, %v1311_v12  ;;  %1592 = vmatpush.bf16.msrb.mxu1 %v2476_v11 }
0x125b   :  { %2613 = vrsqrt.f32 %v1312_v13  ;;  %vm1319_vm11 = vweird.f32 %v1312_v13 }
0x1261   :  { %v2614_v14 = vpop.eup %2613 }
0x1262   :  { %v1314_v15 = vmul.f32 %v2614_v14, %v1312_v13  ;;  %vm1320_vm10 = vweird.f32 %v2614_v14 }
0x1263   :  { %vm1321_vm12 = vmor %vm1319_vm11, %vm1320_vm10 }
0x1264   :  { %v1315_v16 = vmul.f32 %v2614_v14, %v1314_v15 }
0x1266   :  { %v1316_v17 = vmul.f32 0.5, %v1315_v16 }
0x1268   :  { %v1317_v19 = vsub.f32 1.5, %v1316_v17 }
0x126a   :  { %v1318_v20 = vmul.f32 %v2614_v14, %v1317_v19 }
0x126c   :  { %v1322_v23 = vsel %vm1321_vm12, %v2614_v14, %v1318_v20 }
0x126d   :  { %v1323_v26 = vmul.f32 %v1322_v23, %v1306_v5  ;;  %v2533_v23 = vld [vmem:[%s3339_s5 + $0x5] ss:$0 sm:$0xff] }
0x126f   :  { %v1327_v28 = vmul.f32 %v2530_v22, %v1323_v26 }
0x1271   :  { %v1331_v8 = vadd.f32 %v2531_v25, %v1327_v28  ;;  %v2534_v28 = vld [vmem:[%s3340_s6 + $0x5] ss:$0 sm:$0xff] }
0x1273   :  { %v3201_v29 = vadd.f32 %v1331_v8, %v3163_v27 }
0x1275   :  { %v1333_v30 = vpack.c.bf16 %v3201_v29, %v3201_v29 }
0x1277   :  { %2348 = vmatmul.msk.bf16.vlgmr.msra.gmra.mxu3 %vm181_vm0, %v1333_v30 }
0x12fa   :  { %v1368_v31 = vpop.f32.mrf.mxu3 }
0x12fb   :  { %v1369_v32 = vadd.f32 %v2532_v18, %v1368_v31  ;;  %v2535_v31 = vld [vmem:[#allocation5 + $0x5] ss:$0 sm:$0xff] }
0x12fd   :  { %v1373_v21 = vmul.f32 0.70710677, %v1369_v32  ;;  %v1372_v0 = vmul.f32 0.5, %v1369_v32 }
0x12ff   :  { %v1376_v33 = vand.u32 2147483647, %v1373_v21  ;;  %vm1374_vm2 = vcmp.ge.f32.partialorder %v1373_v21, 0.0 }
0x1300   :  { %v1375_v62 = vsel %vm1374_vm2, 1.0, %v2870_v44 }
0x1301   :  { %v1377_v34 = vmul.f32 0.3275911, %v1376_v33  ;;  %v1403_v45 = vsub.f32 0.0, %v1376_v33 }
0x1302   :  { %v1370_v24 = vpop.f32.mrf.mxu3 }
0x1303   :  { %v1378_v35 = vadd.f32 1.0, %v1377_v34  ;;  %v1404_v49 = vmul.f32 %v1403_v45, %v1376_v33 }
0x1305   :  { %2615 = vrcp.f32 %v1378_v35  ;;  %v1390_v38 = vand.u32 2147483648, %v1378_v35  ;;  %v1388_v40 = vand.u32 2147483647, %v1378_v35  ;;  %vm1384_vm14 = vweird.f32 %v1378_v35 }
0x1306   :  { %v1405_v52 = vmul.f32 1.442695, %v1404_v49 }
0x1307   :  { %v1391_v42 = vor.u32 1.1754944e-38, %v1390_v38  ;;  %vm1389_vm1 = vcmp.eq.f32.partialorder %v1388_v40, 8.507059e+37 }
0x1308   :  { %2617 = vpow2.f32 %v1405_v52 }
0x130b   :  { %v2616_v36 = vpop.eup %2615 }
0x130c   :  { %v1380_v27 = vmul.f32 %v2616_v36, %v1378_v35  ;;  %vm1385_vm13 = vweird.f32 %v2616_v36 }
0x130d   :  { %vm1386_vm15 = vmor %vm1384_vm14, %vm1385_vm13 }
0x130e   :  { %v1381_v37 = vsub.f32 1.0, %v1380_v27  ;;  %v2618_v59 = vpop.eup %2617 }
0x1310   :  { %v1382_v39 = vmul.f32 %v2616_v36, %v1381_v37 }
0x1312   :  { %v1383_v41 = vadd.f32 %v2616_v36, %v1382_v39 }
0x1314   :  { %v1387_v43 = vsel %vm1386_vm15, %v2616_v36, %v1383_v41 }
0x1315   :  { %v1392_v46 = vsel %vm1389_vm1, %v1391_v42, %v1387_v43 }
0x1316   :  { %v1394_v47 = vmul.f32 1.0614054, %v1392_v46 }
0x1318   :  { %v1395_v48 = vadd.f32 -1.4531521, %v1394_v47 }
0x131a   :  { %v1396_v50 = vmul.f32 %v1395_v48, %v1392_v46 }
0x131c   :  { %v1397_v51 = vadd.f32 1.4214138, %v1396_v50 }
0x131e   :  { %v1398_v53 = vmul.f32 %v1397_v51, %v1392_v46 }
0x1320   :  { %v1399_v54 = vadd.f32 -0.28449672, %v1398_v53 }
0x1322   :  { %v1400_v55 = vmul.f32 %v1399_v54, %v1392_v46 }
0x1324   :  { %v1401_v56 = vadd.f32 0.2548296, %v1400_v55 }
0x1326   :  { %v1402_v58 = vmul.f32 %v1401_v56, %v1392_v46 }
0x1328   :  { %v1407_v60 = vmul.f32 %v2618_v59, %v1402_v58 }
0x132a   :  { %v1408_v61 = vsub.f32 1.0, %v1407_v60 }
0x132c   :  { %v1409_v63 = vmul.f32 %v1408_v61, %v1375_v62 }
0x132e   :  { %v1410_v1 = vadd.f32 1.0, %v1409_v63 }
0x1330   :  { %v1411_v2 = vmul.f32 %v1410_v1, %v1372_v0 }
0x1332   :  { %v1416_v3 = vsel %vm277_vm6, %v1411_v2, 0.0 }
0x1333   :  { %1417 = vadd.xlane.f32.xlu2 %v1416_v3 }
0x13a6   :  { %v1418_v4 = vpop.xlane.xlu2 %1417 }
0x13a7   :  { %v1419_v5 = vmul.f32 %v1418_v4, %v3019_v57 }
0x13a9   :  { %v1420_v6 = vsub.f32 %v1411_v2, %v1419_v5 }
0x13ab   :  { %v1421_v7 = vmul.f32 %v1420_v6, %v1420_v6 }
0x13ad   :  { %v1422_v9 = vsel %vm277_vm6, %v1421_v7, 0.0 }
0x13ae   :  { %1423 = vadd.xlane.f32.xlu0 %v1422_v9 }
0x1421   :  { %v1424_v12 = vpop.xlane.xlu0 %1423 }
0x1422   :  { %v1425_v13 = vmul.f32 %v1424_v12, %v3019_v57  ;;  %v2475_v12 = vld [vmem:[%s3337_s3 + $0x60] sm:$0xff] }
0x1423   :  { %1593 = vmatpush.bf16.msrb.mxu1 %v2475_v12  ;;  %v2478_v12 = vld [vmem:[%s3341_s7 + $0x68] sm:$0xff] }
0x1424   :  { %v1426_v14 = vadd.f32 1e-05, %v1425_v13  ;;  %1705 = vmatpush.bf16.msrb.mxu2 %v2478_v12 }
0x1426   :  { %2619 = vrsqrt.f32 %v1426_v14  ;;  %vm1433_vm4 = vweird.f32 %v1426_v14 }
0x142c   :  { %v2620_v15 = vpop.eup %2619 }
0x142d   :  { %v1428_v16 = vmul.f32 %v2620_v15, %v1426_v14  ;;  %vm1434_vm3 = vweird.f32 %v2620_v15 }
0x142e   :  { %vm1435_vm5 = vmor %vm1433_vm4, %vm1434_vm3 }
0x142f   :  { %v1429_v17 = vmul.f32 %v2620_v15, %v1428_v16 }
0x1431   :  { %v1430_v19 = vmul.f32 0.5, %v1429_v17 }
0x1433   :  { %v1431_v20 = vsub.f32 1.5, %v1430_v19 }
0x1435   :  { %v1432_v22 = vmul.f32 %v2620_v15, %v1431_v20 }
0x1437   :  { %v1436_v25 = vsel %vm1435_vm5, %v2620_v15, %v1432_v22 }
0x1438   :  { %v1437_v26 = vmul.f32 %v1436_v25, %v1420_v6  ;;  %v2536_v25 = vld [vmem:[#allocation7 + $0x5] ss:$0 sm:$0xff] }
0x143a   :  { %v1441_v8 = vmul.f32 %v2533_v23, %v1437_v26 }
0x143c   :  { %v1445_v30 = vadd.f32 %v2534_v28, %v1441_v8  ;;  %v2537_v28 = vld [vmem:[#allocation8 + $0x5] ss:$0 sm:$0xff] }
0x143e   :  { %v1446_v18 = vpack.c.bf16 %v1445_v30, %v1445_v30 }
0x1440   :  { %2363 = vmatmul.msk.bf16.vlgmr.msrb.gmra.mxu0 %vm181_vm0, %v1446_v18 }
0x14bd   :  { %v1481_v32 = vpop.f32.mrf.mxu0 }
0x14be   :  { %v1482_v21 = vadd.f32 %v2535_v31, %v1481_v32 }
0x14c0   :  { %v1486_v33 = vmul.f32 0.70710677, %v1482_v21  ;;  %v1485_v1 = vmul.f32 0.5, %v1482_v21  ;;  %v2538_v21 = vld [vmem:[%s3338_s4 + $0x6] ss:$0 sm:$0xff] }
0x14c2   :  { %v1489_v34 = vand.u32 2147483647, %v1486_v33  ;;  %vm1487_vm11 = vcmp.ge.f32.partialorder %v1486_v33, 0.0 }
0x14c3   :  { %v1488_v63 = vsel %vm1487_vm11, 1.0, %v2870_v44 }
0x14c4   :  { %v1490_v24 = vmul.f32 0.3275911, %v1489_v34  ;;  %v1516_v46 = vsub.f32 0.0, %v1489_v34 }
0x14c5   :  { %v1483_v35 = vpop.f32.mrf.mxu0 }
0x14c6   :  { %v1491_v36 = vadd.f32 1.0, %v1490_v24  ;;  %v1517_v50 = vmul.f32 %v1516_v46, %v1489_v34 }
0x14c8   :  { %2621 = vrcp.f32 %v1491_v36  ;;  %v1503_v39 = vand.u32 2147483648, %v1491_v36  ;;  %v1501_v41 = vand.u32 2147483647, %v1491_v36  ;;  %vm1497_vm8 = vweird.f32 %v1491_v36 }
0x14c9   :  { %v1518_v53 = vmul.f32 1.442695, %v1517_v50 }
0x14ca   :  { %v1504_v43 = vor.u32 1.1754944e-38, %v1503_v39  ;;  %vm1502_vm10 = vcmp.eq.f32.partialorder %v1501_v41, 8.507059e+37 }
0x14cb   :  { %2623 = vpow2.f32 %v1518_v53 }
0x14ce   :  { %v2622_v27 = vpop.eup %2621 }
0x14cf   :  { %v1493_v37 = vmul.f32 %v2622_v27, %v1491_v36  ;;  %vm1498_vm7 = vweird.f32 %v2622_v27 }
0x14d0   :  { %vm1499_vm9 = vmor %vm1497_vm8, %vm1498_vm7 }
0x14d1   :  { %v1494_v38 = vsub.f32 1.0, %v1493_v37  ;;  %v2624_v60 = vpop.eup %2623 }
0x14d3   :  { %v1495_v40 = vmul.f32 %v2622_v27, %v1494_v38 }
0x14d5   :  { %v1496_v42 = vadd.f32 %v2622_v27, %v1495_v40 }
0x14d7   :  { %v1500_v45 = vsel %vm1499_vm9, %v2622_v27, %v1496_v42 }
0x14d8   :  { %v1505_v47 = vsel %vm1502_vm10, %v1504_v43, %v1500_v45 }
0x14d9   :  { %v1507_v48 = vmul.f32 1.0614054, %v1505_v47 }
0x14db   :  { %v1508_v49 = vadd.f32 -1.4531521, %v1507_v48 }
0x14dd   :  { %v1509_v51 = vmul.f32 %v1508_v49, %v1505_v47 }
0x14df   :  { %v1510_v52 = vadd.f32 1.4214138, %v1509_v51 }
0x14e1   :  { %v1511_v54 = vmul.f32 %v1510_v52, %v1505_v47 }
0x14e3   :  { %v1512_v55 = vadd.f32 -0.28449672, %v1511_v54 }
0x14e5   :  { %v1513_v56 = vmul.f32 %v1512_v55, %v1505_v47 }
0x14e7   :  { %v1514_v58 = vadd.f32 0.2548296, %v1513_v56 }
0x14e9   :  { %v1515_v59 = vmul.f32 %v1514_v58, %v1505_v47 }
0x14eb   :  { %v1520_v61 = vmul.f32 %v2624_v60, %v1515_v59 }
0x14ed   :  { %v1521_v62 = vsub.f32 1.0, %v1520_v61 }
0x14ef   :  { %v1522_v0 = vmul.f32 %v1521_v62, %v1488_v63 }
0x14f1   :  { %v1523_v2 = vadd.f32 1.0, %v1522_v0 }
0x14f3   :  { %v1524_v3 = vmul.f32 %v1523_v2, %v1485_v1 }
0x14f5   :  { %v1529_v4 = vsel %vm277_vm6, %v1524_v3, 0.0 }
0x14f6   :  { %1530 = vadd.xlane.f32.xlu1 %v1529_v4 }
0x1569   :  { %v1531_v5 = vpop.xlane.xlu1 %1530 }
0x156a   :  { %v1532_v6 = vmul.f32 %v1531_v5, %v3019_v57 }
0x156c   :  { %v1533_v7 = vsub.f32 %v1524_v3, %v1532_v6 }
0x156e   :  { %v1534_v9 = vmul.f32 %v1533_v7, %v1533_v7 }
0x1570   :  { %v1535_v10 = vsel %vm277_vm6, %v1534_v9, 0.0 }
0x1571   :  { %1536 = vadd.xlane.f32.xlu2 %v1535_v10 }
0x15e4   :  { %v1537_v13 = vpop.xlane.xlu2 %1536 }
0x15e5   :  { %v1538_v14 = vmul.f32 %v1537_v13, %v3019_v57  ;;  %v2477_v13 = vld [vmem:[%s3341_s7 + $0x60] sm:$0xff] }
0x15e6   :  { %1706 = vmatpush.bf16.msrb.mxu2 %v2477_v13  ;;  %v2480_v13 = vld [vmem:[%s3337_s3 + $0x78] sm:$0xff] }
0x15e7   :  { %v1539_v15 = vadd.f32 1e-05, %v1538_v14  ;;  %1819 = vmatpush.bf16.msrb.mxu3 %v2480_v13 }
0x15e9   :  { %2625 = vrsqrt.f32 %v1539_v15  ;;  %vm1546_vm13 = vweird.f32 %v1539_v15 }
0x15ef   :  { %v2626_v16 = vpop.eup %2625 }
0x15f0   :  { %v1541_v17 = vmul.f32 %v2626_v16, %v1539_v15  ;;  %vm1547_vm12 = vweird.f32 %v2626_v16 }
0x15f1   :  { %vm1548_vm14 = vmor %vm1546_vm13, %vm1547_vm12 }
0x15f2   :  { %v1542_v19 = vmul.f32 %v2626_v16, %v1541_v17 }
0x15f4   :  { %v1543_v20 = vmul.f32 0.5, %v1542_v19 }
0x15f6   :  { %v1544_v22 = vsub.f32 1.5, %v1543_v20 }
0x15f8   :  { %v1545_v23 = vmul.f32 %v2626_v16, %v1544_v22 }
0x15fa   :  { %v1549_v26 = vsel %vm1548_vm14, %v2626_v16, %v1545_v23 }
0x15fb   :  { %v1550_v8 = vmul.f32 %v1549_v26, %v1533_v7  ;;  %v2539_v26 = vld [vmem:[%s3339_s5 + $0x6] ss:$0 sm:$0xff] }
0x15fd   :  { %v1554_v30 = vmul.f32 %v2536_v25, %v1550_v8 }
0x15ff   :  { %v1558_v18 = vadd.f32 %v2537_v28, %v1554_v30  ;;  %v2540_v30 = vld [vmem:[%s3340_s6 + $0x6] ss:$0 sm:$0xff] }
0x1601   :  { %v3239_v31 = vadd.f32 %v1558_v18, %v3201_v29 }
0x1603   :  { %v1560_v32 = vpack.c.bf16 %v3239_v31, %v3239_v31 }
0x1605   :  { %2377 = vmatmul.msk.bf16.vlgmr.msrb.gmra.mxu1 %vm181_vm0, %v1560_v32 }
0x1682   :  { %v1595_v33 = vpop.f32.mrf.mxu1 }
0x1683   :  { %v1596_v34 = vadd.f32 %v2538_v21, %v1595_v33  ;;  %v2541_v33 = vld [vmem:[#allocation5 + $0x6] ss:$0 sm:$0xff] }
0x1685   :  { %v1600_v24 = vmul.f32 0.70710677, %v1596_v34  ;;  %v1599_v2 = vmul.f32 0.5, %v1596_v34 }
0x1687   :  { %v1603_v35 = vand.u32 2147483647, %v1600_v24  ;;  %vm1601_vm4 = vcmp.ge.f32.partialorder %v1600_v24, 0.0 }
0x1688   :  { %v1602_v0 = vsel %vm1601_vm4, 1.0, %v2870_v44 }
0x1689   :  { %v1604_v36 = vmul.f32 0.3275911, %v1603_v35  ;;  %v1630_v47 = vsub.f32 0.0, %v1603_v35 }
0x168a   :  { %v1597_v27 = vpop.f32.mrf.mxu1 }
0x168b   :  { %v1605_v37 = vadd.f32 1.0, %v1604_v36  ;;  %v1631_v51 = vmul.f32 %v1630_v47, %v1603_v35 }
0x168d   :  { %2627 = vrcp.f32 %v1605_v37  ;;  %v1617_v40 = vand.u32 2147483648, %v1605_v37  ;;  %v1615_v42 = vand.u32 2147483647, %v1605_v37  ;;  %vm1611_vm1 = vweird.f32 %v1605_v37 }
0x168e   :  { %v1632_v54 = vmul.f32 1.442695, %v1631_v51 }
0x168f   :  { %v1618_v45 = vor.u32 1.1754944e-38, %v1617_v40  ;;  %vm1616_vm3 = vcmp.eq.f32.partialorder %v1615_v42, 8.507059e+37 }
0x1690   :  { %2629 = vpow2.f32 %v1632_v54 }
0x1693   :  { %v2628_v38 = vpop.eup %2627 }
0x1694   :  { %v1607_v29 = vmul.f32 %v2628_v38, %v1605_v37  ;;  %vm1612_vm15 = vweird.f32 %v2628_v38 }
0x1695   :  { %vm1613_vm2 = vmor %vm1611_vm1, %vm1612_vm15 }
0x1696   :  { %v1608_v39 = vsub.f32 1.0, %v1607_v29  ;;  %v2630_v61 = vpop.eup %2629 }
0x1698   :  { %v1609_v41 = vmul.f32 %v2628_v38, %v1608_v39 }
0x169a   :  { %v1610_v43 = vadd.f32 %v2628_v38, %v1609_v41 }
0x169c   :  { %v1614_v46 = vsel %vm1613_vm2, %v2628_v38, %v1610_v43 }
0x169d   :  { %v1619_v48 = vsel %vm1616_vm3, %v1618_v45, %v1614_v46 }
0x169e   :  { %v1621_v49 = vmul.f32 1.0614054, %v1619_v48 }
0x16a0   :  { %v1622_v50 = vadd.f32 -1.4531521, %v1621_v49 }
0x16a2   :  { %v1623_v52 = vmul.f32 %v1622_v50, %v1619_v48 }
0x16a4   :  { %v1624_v53 = vadd.f32 1.4214138, %v1623_v52 }
0x16a6   :  { %v1625_v55 = vmul.f32 %v1624_v53, %v1619_v48 }
0x16a8   :  { %v1626_v56 = vadd.f32 -0.28449672, %v1625_v55 }
0x16aa   :  { %v1627_v58 = vmul.f32 %v1626_v56, %v1619_v48 }
0x16ac   :  { %v1628_v59 = vadd.f32 0.2548296, %v1627_v58 }
0x16ae   :  { %v1629_v60 = vmul.f32 %v1628_v59, %v1619_v48 }
0x16b0   :  { %v1634_v62 = vmul.f32 %v2630_v61, %v1629_v60 }
0x16b2   :  { %v1635_v63 = vsub.f32 1.0, %v1634_v62 }
0x16b4   :  { %v1636_v1 = vmul.f32 %v1635_v63, %v1602_v0 }
0x16b6   :  { %v1637_v3 = vadd.f32 1.0, %v1636_v1 }
0x16b8   :  { %v1638_v4 = vmul.f32 %v1637_v3, %v1599_v2 }
0x16ba   :  { %v1643_v5 = vsel %vm277_vm6, %v1638_v4, 0.0 }
0x16bb   :  { %1644 = vadd.xlane.f32.xlu0 %v1643_v5 }
0x172e   :  { %v1645_v6 = vpop.xlane.xlu0 %1644 }
0x172f   :  { %v1646_v7 = vmul.f32 %v1645_v6, %v3019_v57 }
0x1731   :  { %v1647_v9 = vsub.f32 %v1638_v4, %v1646_v7 }
0x1733   :  { %v1648_v10 = vmul.f32 %v1647_v9, %v1647_v9 }
0x1735   :  { %v1649_v11 = vsel %vm277_vm6, %v1648_v10, 0.0 }
0x1736   :  { %1650 = vadd.xlane.f32.xlu1 %v1649_v11 }
0x17a9   :  { %v1651_v14 = vpop.xlane.xlu1 %1650 }
0x17aa   :  { %v1652_v15 = vmul.f32 %v1651_v14, %v3019_v57  ;;  %v2479_v14 = vld [vmem:[%s3337_s3 + $0x70] sm:$0xff] }
0x17ab   :  { %1820 = vmatpush.bf16.msrb.mxu3 %v2479_v14  ;;  %v2482_v14 = vld [vmem:[%s3341_s7 + $0x78] sm:$0xff] }
0x17ac   :  { %v1653_v16 = vadd.f32 1e-05, %v1652_v15  ;;  %1932 = vmatpush.bf16.msra.mxu0 %v2482_v14 }
0x17ae   :  { %2631 = vrsqrt.f32 %v1653_v16  ;;  %vm1660_vm7 = vweird.f32 %v1653_v16 }
0x17b4   :  { %v2632_v17 = vpop.eup %2631 }
0x17b5   :  { %v1655_v19 = vmul.f32 %v2632_v17, %v1653_v16  ;;  %vm1661_vm5 = vweird.f32 %v2632_v17 }
0x17b6   :  { %vm1662_vm8 = vmor %vm1660_vm7, %vm1661_vm5 }
0x17b7   :  { %v1656_v20 = vmul.f32 %v2632_v17, %v1655_v19 }
0x17b9   :  { %v1657_v22 = vmul.f32 0.5, %v1656_v20 }
0x17bb   :  { %v1658_v23 = vsub.f32 1.5, %v1657_v22 }
0x17bd   :  { %v1659_v25 = vmul.f32 %v2632_v17, %v1658_v23 }
0x17bf   :  { %v1663_v28 = vsel %vm1662_vm8, %v2632_v17, %v1659_v25 }
0x17c0   :  { %v1664_v8 = vmul.f32 %v1663_v28, %v1647_v9  ;;  %v2542_v28 = vld [vmem:[#allocation7 + $0x6] ss:$0 sm:$0xff] }
0x17c2   :  { %v1668_v18 = vmul.f32 %v2539_v26, %v1664_v8 }
0x17c4   :  { %v1672_v32 = vadd.f32 %v2540_v30, %v1668_v18  ;;  %v2543_v30 = vld [vmem:[#allocation8 + $0x6] ss:$0 sm:$0xff] }
0x17c6   :  { %v1673_v21 = vpack.c.bf16 %v1672_v32, %v1672_v32 }
0x17c8   :  { %2392 = vmatmul.msk.bf16.vlgmr.msrb.gmra.mxu2 %vm181_vm0, %v1673_v21 }
0x184b   :  { %v1708_v34 = vpop.f32.mrf.mxu2 }
0x184c   :  { %v1709_v24 = vadd.f32 %v2541_v33, %v1708_v34 }
0x184e   :  { %v1713_v35 = vmul.f32 0.70710677, %v1709_v24  ;;  %v1712_v3 = vmul.f32 0.5, %v1709_v24  ;;  %v2544_v24 = vld [vmem:[%s3338_s4 + $0x7] ss:$0 sm:$0xff] }
0x1850   :  { %v1716_v36 = vand.u32 2147483647, %v1713_v35  ;;  %vm1714_vm13 = vcmp.ge.f32.partialorder %v1713_v35, 0.0 }
0x1851   :  { %v1715_v1 = vsel %vm1714_vm13, 1.0, %v2870_v44 }
0x1852   :  { %v1717_v27 = vmul.f32 0.3275911, %v1716_v36  ;;  %v1743_v48 = vsub.f32 0.0, %v1716_v36 }
0x1853   :  { %v1710_v37 = vpop.f32.mrf.mxu2 }
0x1854   :  { %v1718_v38 = vadd.f32 1.0, %v1717_v27  ;;  %v1744_v52 = vmul.f32 %v1743_v48, %v1716_v36 }
0x1856   :  { %2633 = vrcp.f32 %v1718_v38  ;;  %v1730_v41 = vand.u32 2147483648, %v1718_v38  ;;  %v1728_v43 = vand.u32 2147483647, %v1718_v38  ;;  %vm1724_vm10 = vweird.f32 %v1718_v38 }
0x1857   :  { %v1745_v55 = vmul.f32 1.442695, %v1744_v52 }
0x1858   :  { %v1731_v46 = vor.u32 1.1754944e-38, %v1730_v41  ;;  %vm1729_vm12 = vcmp.eq.f32.partialorder %v1728_v43, 8.507059e+37 }
0x1859   :  { %2635 = vpow2.f32 %v1745_v55 }
0x185c   :  { %v2634_v29 = vpop.eup %2633 }
0x185d   :  { %v1720_v39 = vmul.f32 %v2634_v29, %v1718_v38  ;;  %vm1725_vm9 = vweird.f32 %v2634_v29 }
0x185e   :  { %vm1726_vm11 = vmor %vm1724_vm10, %vm1725_vm9 }
0x185f   :  { %v1721_v40 = vsub.f32 1.0, %v1720_v39  ;;  %v2636_v62 = vpop.eup %2635 }
0x1861   :  { %v1722_v42 = vmul.f32 %v2634_v29, %v1721_v40 }
0x1863   :  { %v1723_v45 = vadd.f32 %v2634_v29, %v1722_v42 }
0x1865   :  { %v1727_v47 = vsel %vm1726_vm11, %v2634_v29, %v1723_v45 }
0x1866   :  { %v1732_v49 = vsel %vm1729_vm12, %v1731_v46, %v1727_v47 }
0x1867   :  { %v1734_v50 = vmul.f32 1.0614054, %v1732_v49 }
0x1869   :  { %v1735_v51 = vadd.f32 -1.4531521, %v1734_v50 }
0x186b   :  { %v1736_v53 = vmul.f32 %v1735_v51, %v1732_v49 }
0x186d   :  { %v1737_v54 = vadd.f32 1.4214138, %v1736_v53 }
0x186f   :  { %v1738_v56 = vmul.f32 %v1737_v54, %v1732_v49 }
0x1871   :  { %v1739_v58 = vadd.f32 -0.28449672, %v1738_v56 }
0x1873   :  { %v1740_v59 = vmul.f32 %v1739_v58, %v1732_v49 }
0x1875   :  { %v1741_v60 = vadd.f32 0.2548296, %v1740_v59 }
0x1877   :  { %v1742_v61 = vmul.f32 %v1741_v60, %v1732_v49 }
0x1879   :  { %v1747_v63 = vmul.f32 %v2636_v62, %v1742_v61 }
0x187b   :  { %v1748_v0 = vsub.f32 1.0, %v1747_v63 }
0x187d   :  { %v1749_v2 = vmul.f32 %v1748_v0, %v1715_v1 }
0x187f   :  { %v1750_v4 = vadd.f32 1.0, %v1749_v2 }
0x1881   :  { %v1751_v5 = vmul.f32 %v1750_v4, %v1712_v3 }
0x1883   :  { %v1756_v6 = vsel %vm277_vm6, %v1751_v5, 0.0 }
0x1884   :  { %1757 = vadd.xlane.f32.xlu2 %v1756_v6 }
0x18f7   :  { %v1758_v7 = vpop.xlane.xlu2 %1757 }
0x18f8   :  { %v1759_v9 = vmul.f32 %v1758_v7, %v3019_v57 }
0x18fa   :  { %v1760_v10 = vsub.f32 %v1751_v5, %v1759_v9 }
0x18fc   :  { %v1761_v11 = vmul.f32 %v1760_v10, %v1760_v10 }
0x18fe   :  { %v1762_v12 = vsel %vm277_vm6, %v1761_v11, 0.0 }
0x18ff   :  { %1763 = vadd.xlane.f32.xlu0 %v1762_v12 }
0x1972   :  { %v1764_v15 = vpop.xlane.xlu0 %1763 }
0x1973   :  { %v1765_v16 = vmul.f32 %v1764_v15, %v3019_v57  ;;  %v2481_v15 = vld [vmem:[%s3341_s7 + $0x70] sm:$0xff] }
0x1974   :  { %1933 = vmatpush.bf16.msra.mxu0 %v2481_v15  ;;  %v2484_v15 = vld [vmem:[%s3345_s11 + $0x8] sm:$0xff] }
0x1975   :  { %v1766_v17 = vadd.f32 1e-05, %v1765_v16  ;;  %2044 = vmatpush.bf16.msra.mxu1 %v2484_v15 }
0x1977   :  { %2637 = vrsqrt.f32 %v1766_v17  ;;  %vm1773_vm15 = vweird.f32 %v1766_v17 }
0x197d   :  { %v2638_v19 = vpop.eup %2637 }
0x197e   :  { %v1768_v20 = vmul.f32 %v2638_v19, %v1766_v17  ;;  %vm1774_vm14 = vweird.f32 %v2638_v19 }
0x197f   :  { %vm1775_vm1 = vmor %vm1773_vm15, %vm1774_vm14 }
0x1980   :  { %v1769_v22 = vmul.f32 %v2638_v19, %v1768_v20 }
0x1982   :  { %v1770_v23 = vmul.f32 0.5, %v1769_v22 }
0x1984   :  { %v1771_v25 = vsub.f32 1.5, %v1770_v23 }
0x1986   :  { %v1772_v26 = vmul.f32 %v2638_v19, %v1771_v25 }
0x1988   :  { %v1776_v8 = vsel %vm1775_vm1, %v2638_v19, %v1772_v26 }
0x1989   :  { %v1777_v18 = vmul.f32 %v1776_v8, %v1760_v10  ;;  %v2545_v8 = vld [vmem:[%s3339_s5 + $0x7] ss:$0 sm:$0xff] }
0x198b   :  { %v1781_v32 = vmul.f32 %v2542_v28, %v1777_v18 }
0x198d   :  { %v1785_v21 = vadd.f32 %v2543_v30, %v1781_v32  ;;  %v2546_v32 = vld [vmem:[%s3340_s6 + $0x7] ss:$0 sm:$0xff] }
0x198f   :  { %v3277_v33 = vadd.f32 %v1785_v21, %v3239_v31 }
0x1991   :  { %v1787_v34 = vpack.c.bf16 %v3277_v33, %v3277_v33 }
0x1993   :  { %2406 = vmatmul.msk.bf16.vlgmr.msrb.gmra.mxu3 %vm181_vm0, %v1787_v34 }
0x1a16   :  { %v1822_v35 = vpop.f32.mrf.mxu3 }
0x1a17   :  { %v1823_v36 = vadd.f32 %v2544_v24, %v1822_v35  ;;  %v2547_v35 = vld [vmem:[#allocation5 + $0x7] ss:$0 sm:$0xff] }
0x1a19   :  { %v1827_v27 = vmul.f32 0.70710677, %v1823_v36  ;;  %v1826_v4 = vmul.f32 0.5, %v1823_v36 }
0x1a1b   :  { %v1830_v37 = vand.u32 2147483647, %v1827_v27  ;;  %vm1828_vm7 = vcmp.ge.f32.partialorder %v1827_v27, 0.0 }
0x1a1c   :  { %v1829_v2 = vsel %vm1828_vm7, 1.0, %v2870_v44 }
0x1a1d   :  { %v1831_v38 = vmul.f32 0.3275911, %v1830_v37  ;;  %v1857_v49 = vsub.f32 0.0, %v1830_v37 }
0x1a1e   :  { %v1824_v29 = vpop.f32.mrf.mxu3 }
0x1a1f   :  { %v1832_v39 = vadd.f32 1.0, %v1831_v38  ;;  %v1858_v53 = vmul.f32 %v1857_v49, %v1830_v37 }
0x1a21   :  { %2639 = vrcp.f32 %v1832_v39  ;;  %v1844_v42 = vand.u32 2147483648, %v1832_v39  ;;  %v1842_v45 = vand.u32 2147483647, %v1832_v39  ;;  %vm1838_vm3 = vweird.f32 %v1832_v39 }
0x1a22   :  { %v1859_v56 = vmul.f32 1.442695, %v1858_v53 }
0x1a23   :  { %v1845_v47 = vor.u32 1.1754944e-38, %v1844_v42  ;;  %vm1843_vm5 = vcmp.eq.f32.partialorder %v1842_v45, 8.507059e+37 }
0x1a24   :  { %2641 = vpow2.f32 %v1859_v56 }
0x1a27   :  { %v2640_v40 = vpop.eup %2639 }
0x1a28   :  { %v1834_v31 = vmul.f32 %v2640_v40, %v1832_v39  ;;  %vm1839_vm2 = vweird.f32 %v2640_v40 }
0x1a29   :  { %vm1840_vm4 = vmor %vm1838_vm3, %vm1839_vm2 }
0x1a2a   :  { %v1835_v41 = vsub.f32 1.0, %v1834_v31  ;;  %v2642_v63 = vpop.eup %2641 }
0x1a2c   :  { %v1836_v43 = vmul.f32 %v2640_v40, %v1835_v41 }
0x1a2e   :  { %v1837_v46 = vadd.f32 %v2640_v40, %v1836_v43 }
0x1a30   :  { %v1841_v48 = vsel %vm1840_vm4, %v2640_v40, %v1837_v46 }
0x1a31   :  { %v1846_v50 = vsel %vm1843_vm5, %v1845_v47, %v1841_v48 }
0x1a32   :  { %v1848_v51 = vmul.f32 1.0614054, %v1846_v50 }
0x1a34   :  { %v1849_v52 = vadd.f32 -1.4531521, %v1848_v51 }
0x1a36   :  { %v1850_v54 = vmul.f32 %v1849_v52, %v1846_v50 }
0x1a38   :  { %v1851_v55 = vadd.f32 1.4214138, %v1850_v54 }
0x1a3a   :  { %v1852_v58 = vmul.f32 %v1851_v55, %v1846_v50 }
0x1a3c   :  { %v1853_v59 = vadd.f32 -0.28449672, %v1852_v58 }
0x1a3e   :  { %v1854_v60 = vmul.f32 %v1853_v59, %v1846_v50 }
0x1a40   :  { %v1855_v61 = vadd.f32 0.2548296, %v1854_v60 }
0x1a42   :  { %v1856_v62 = vmul.f32 %v1855_v61, %v1846_v50 }
0x1a44   :  { %v1861_v0 = vmul.f32 %v2642_v63, %v1856_v62 }
0x1a46   :  { %v1862_v1 = vsub.f32 1.0, %v1861_v0 }
0x1a48   :  { %v1863_v3 = vmul.f32 %v1862_v1, %v1829_v2 }
0x1a4a   :  { %v1864_v5 = vadd.f32 1.0, %v1863_v3 }
0x1a4c   :  { %v1865_v6 = vmul.f32 %v1864_v5, %v1826_v4 }
0x1a4e   :  { %v1870_v7 = vsel %vm277_vm6, %v1865_v6, 0.0 }
0x1a4f   :  { %1871 = vadd.xlane.f32.xlu1 %v1870_v7 }
0x1ac2   :  { %v1872_v9 = vpop.xlane.xlu1 %1871 }
0x1ac3   :  { %v1873_v10 = vmul.f32 %v1872_v9, %v3019_v57 }
0x1ac5   :  { %v1874_v11 = vsub.f32 %v1865_v6, %v1873_v10 }
0x1ac7   :  { %v1875_v12 = vmul.f32 %v1874_v11, %v1874_v11 }
0x1ac9   :  { %v1876_v13 = vsel %vm277_vm6, %v1875_v12, 0.0 }
0x1aca   :  { %1877 = vadd.xlane.f32.xlu2 %v1876_v13 }
0x1b3d   :  { %v1878_v16 = vpop.xlane.xlu2 %1877 }
0x1b3e   :  { %v1879_v17 = vmul.f32 %v1878_v16, %v3019_v57  ;;  %v2483_v16 = vld [vmem:[%s3345_s11] sm:$0xff] }
0x1b3f   :  { %2045 = vmatpush.bf16.msra.mxu1 %v2483_v16 }
0x1b40   :  { %v1880_v19 = vadd.f32 1e-05, %v1879_v17 }
0x1b42   :  { %2643 = vrsqrt.f32 %v1880_v19  ;;  %vm1887_vm9 = vweird.f32 %v1880_v19 }
0x1b48   :  { %v2644_v20 = vpop.eup %2643 }
0x1b49   :  { %v1882_v22 = vmul.f32 %v2644_v20, %v1880_v19  ;;  %vm1888_vm8 = vweird.f32 %v2644_v20 }
0x1b4a   :  { %vm1889_vm10 = vmor %vm1887_vm9, %vm1888_vm8  ;;  %vm2170_vm9 = vcmask 58368  }
0x1b4b   :  { %v1883_v23 = vmul.f32 %v2644_v20, %v1882_v22 }
0x1b4d   :  { %v1884_v25 = vmul.f32 0.5, %v1883_v23  ;;  %v2485_v23 = vld [vmem:[%s3347_s13] sm:$0xff] }
0x1b4f   :  { %v1885_v26 = vsub.f32 1.5, %v1884_v25 }
0x1b51   :  { %v1886_v28 = vmul.f32 %v2644_v20, %v1885_v26 }
0x1b53   :  { %v1890_v30 = vsel %vm1889_vm10, %v2644_v20, %v1886_v28  ;;  %v2486_v20 = vld [vmem:[%s3347_s13 + $0x8] sm:$0xff] }
0x1b54   :  { %v1891_v18 = vmul.f32 %v1890_v30, %v1874_v11  ;;  %2081 = vmatpush.bf16.msra.mxu2 %v2486_v20  ;;  %v2552_v20 = vld [vmem:[#allocation13] ss:$0 sm:$0xff] }
0x1b56   :  { %v1895_v21 = vmul.f32 %v2545_v8, %v1891_v18 }
0x1b58   :  { %v1899_v34 = vadd.f32 %v2546_v32, %v1895_v21  ;;  %2082 = vmatpush.bf16.msra.mxu2 %v2485_v23  ;;  %v2549_v21 = vld [vmem:[#allocation8 + $0x7] ss:$0 sm:$0xff] }
0x1b5a   :  { %v1900_v24 = vpack.c.bf16 %v1899_v34, %v1899_v34 }
0x1b5c   :  { %2421 = vmatmul.msk.bf16.vlgmr.msra.gmra.mxu0 %vm181_vm0, %v1900_v24 }
0x1bd9   :  { %v1935_v36 = vpop.f32.mrf.mxu0 }
0x1bda   :  { %v1936_v27 = vadd.f32 %v2547_v35, %v1935_v36 }
0x1bdc   :  { %v1940_v37 = vmul.f32 0.70710677, %v1936_v27  ;;  %v1939_v5 = vmul.f32 0.5, %v1936_v27 }
0x1bde   :  { %v1943_v38 = vand.u32 2147483647, %v1940_v37  ;;  %vm1941_vm15 = vcmp.ge.f32.partialorder %v1940_v37, 0.0  ;;  %v2550_v37 = vld [vmem:[#allocation10] ss:$0 sm:$0xff] }
0x1bdf   :  { %v1942_v3 = vsel %vm1941_vm15, 1.0, %v2870_v44 }
0x1be0   :  { %v1944_v29 = vmul.f32 0.3275911, %v1943_v38  ;;  %v1970_v50 = vsub.f32 0.0, %v1943_v38 }
0x1be1   :  { %v1937_v39 = vpop.f32.mrf.mxu0 }
0x1be2   :  { %v1945_v40 = vadd.f32 1.0, %v1944_v29  ;;  %v1971_v54 = vmul.f32 %v1970_v50, %v1943_v38  ;;  %v2488_v50 = vld [vmem:[%s3349_s15 + $0x8] sm:$0xff] }
0x1be3   :  { %2158 = vmatpush.bf16.msra.mxu3 %v2488_v50 }
0x1be4   :  { %2645 = vrcp.f32 %v1945_v40  ;;  %v1957_v43 = vand.u32 2147483648, %v1945_v40  ;;  %v1955_v46 = vand.u32 2147483647, %v1945_v40  ;;  %vm1951_vm12 = vweird.f32 %v1945_v40 }
0x1be5   :  { %v1972_v58 = vmul.f32 1.442695, %v1971_v54 }
0x1be6   :  { %v1958_v48 = vor.u32 1.1754944e-38, %v1957_v43  ;;  %vm1956_vm14 = vcmp.eq.f32.partialorder %v1955_v46, 8.507059e+37 }
0x1be7   :  { %2647 = vpow2.f32 %v1972_v58 }
0x1bea   :  { %v2646_v31 = vpop.eup %2645 }
0x1beb   :  { %v1947_v41 = vmul.f32 %v2646_v31, %v1945_v40  ;;  %vm1952_vm11 = vweird.f32 %v2646_v31 }
0x1bec   :  { %vm1953_vm13 = vmor %vm1951_vm12, %vm1952_vm11 }
0x1bed   :  { %v1948_v42 = vsub.f32 1.0, %v1947_v41  ;;  %v2648_v0 = vpop.eup %2647 }
0x1bef   :  { %v1949_v45 = vmul.f32 %v2646_v31, %v1948_v42 }
0x1bf1   :  { %v1950_v47 = vadd.f32 %v2646_v31, %v1949_v45 }
0x1bf3   :  { %v1954_v49 = vsel %vm1953_vm13, %v2646_v31, %v1950_v47  ;;  %v2551_v31 = vld [vmem:[#allocation11] ss:$0 sm:$0xff] }
0x1bf4   :  { %v1959_v51 = vsel %vm1956_vm14, %v1958_v48, %v1954_v49 }
0x1bf5   :  { %v1961_v52 = vmul.f32 1.0614054, %v1959_v51 }
0x1bf7   :  { %v1962_v53 = vadd.f32 -1.4531521, %v1961_v52 }
0x1bf9   :  { %v1963_v55 = vmul.f32 %v1962_v53, %v1959_v51 }
0x1bfb   :  { %v1964_v56 = vadd.f32 1.4214138, %v1963_v55  ;;  %v2487_v55 = vld [vmem:[%s3349_s15] sm:$0xff]  ;;  %s2872_s15 = smov [#allocation14]  }
0x1bfc   :  { %2159 = vmatpush.bf16.msra.mxu3 %v2487_v55  ;;  %s2177_s8 = sshll.u32 %s2872_s15, 4  ;;  %s2178_s8 = int_to_ptr.vmem [resolvable:$true] %s2177_s8 }
0x1bfd   :  { %v1965_v59 = vmul.f32 %v1964_v56, %v1959_v51 }
0x1bff   :  { %v1966_v60 = vadd.f32 -0.28449672, %v1965_v59 }
0x1c01   :  { %v1967_v61 = vmul.f32 %v1966_v60, %v1959_v51 }
0x1c03   :  { %v1968_v62 = vadd.f32 0.2548296, %v1967_v61 }
0x1c05   :  { %v1969_v63 = vmul.f32 %v1968_v62, %v1959_v51 }
0x1c07   :  { %v1974_v1 = vmul.f32 %v2648_v0, %v1969_v63 }
0x1c09   :  { %v1975_v2 = vsub.f32 1.0, %v1974_v1 }
0x1c0b   :  { %v1976_v4 = vmul.f32 %v1975_v2, %v1942_v3 }
0x1c0d   :  { %v1977_v6 = vadd.f32 1.0, %v1976_v4 }
0x1c0f   :  { %v1978_v7 = vmul.f32 %v1977_v6, %v1939_v5 }
0x1c11   :  { %v1983_v9 = vsel %vm277_vm6, %v1978_v7, 0.0 }
0x1c12   :  { %1984 = vadd.xlane.f32.xlu0 %v1983_v9 }
0x1c85   :  { %v1985_v10 = vpop.xlane.xlu0 %1984 }
0x1c86   :  { %v1986_v11 = vmul.f32 %v1985_v10, %v3019_v57 }
0x1c88   :  { %v1987_v12 = vsub.f32 %v1978_v7, %v1986_v11 }
0x1c8a   :  { %v1988_v13 = vmul.f32 %v1987_v12, %v1987_v12 }
0x1c8c   :  { %v1989_v14 = vsel %vm277_vm6, %v1988_v13, 0.0 }
0x1c8d   :  { %1990 = vadd.xlane.f32.xlu1 %v1989_v14 }
0x1d00   :  { %v1991_v17 = vpop.xlane.xlu1 %1990 }
0x1d01   :  { %v1992_v19 = vmul.f32 %v1991_v17, %v3019_v57  ;;  %v2548_v57 = vld [vmem:[#allocation7 + $0x7] ss:$0 sm:$0xff] }
0x1d03   :  { %v1993_v22 = vadd.f32 1e-05, %v1992_v19 }
0x1d05   :  { %2649 = vrsqrt.f32 %v1993_v22  ;;  %vm2000_vm1 = vweird.f32 %v1993_v22 }
0x1d0b   :  { %v2650_v25 = vpop.eup %2649 }
0x1d0c   :  { %v1995_v26 = vmul.f32 %v2650_v25, %v1993_v22  ;;  %vm2001_vm6 = vweird.f32 %v2650_v25 }
0x1d0d   :  { %vm2002_vm2 = vmor %vm2000_vm1, %vm2001_vm6 }
0x1d0e   :  { %v1996_v28 = vmul.f32 %v2650_v25, %v1995_v26 }
0x1d10   :  { %v1997_v8 = vmul.f32 0.5, %v1996_v28 }
0x1d12   :  { %v1998_v30 = vsub.f32 1.5, %v1997_v8 }
0x1d14   :  { %v1999_v18 = vmul.f32 %v2650_v25, %v1998_v30 }
0x1d16   :  { %v2003_v32 = vsel %vm2002_vm2, %v2650_v25, %v1999_v18 }
0x1d17   :  { %v2004_v34 = vmul.f32 %v2003_v32, %v1987_v12 }
0x1d19   :  { %v2008_v24 = vmul.f32 %v2548_v57, %v2004_v34 }
0x1d1b   :  { %v2012_v35 = vadd.f32 %v2549_v21, %v2008_v24 }
0x1d1d   :  { %v2013_v36 = vadd.f32 %v2012_v35, %v3277_v33 }
0x1d1f   :  { %v2014_v27 = vpack.c.bf16 %v2013_v36, %v2013_v36 }
0x1d21   :  { %2430 = vmatmul.msk.bf16.vlgmr.msra.gmra.mxu1 %vm181_vm0, %v2014_v27 }
0x1d9e   :  { %v2047_v38 = vpop.f32.mrf.mxu1 }
0x1d9f   :  { %v2048_v29 = vadd.f32 %v2550_v37, %v2047_v38 }
0x1da1   :  { %v2051_v39 = vpack.c.bf16 %v2048_v29, %v2048_v29 }
0x1da3   :  { %2439 = vmatmul.msk.bf16.vlgmr.msra.gmra.mxu2 %vm181_vm0, %v2051_v39 }
0x1da6   :  { %v2049_v40 = vpop.f32.mrf.mxu1 }
0x1e26   :  { %v2084_v41 = vpop.f32.mrf.mxu2 }
0x1e27   :  { %v2085_v42 = vadd.f32 %v2551_v31, %v2084_v41 }
0x1e29   :  { %v2089_v43 = vmul.f32 0.70710677, %v2085_v42  ;;  %v2088_v15 = vmul.f32 0.5, %v2085_v42 }
0x1e2b   :  { %v2092_v45 = vand.u32 2147483647, %v2089_v43  ;;  %vm2090_vm8 = vcmp.ge.f32.partialorder %v2089_v43, 0.0 }
0x1e2c   :  { %v2091_v13 = vsel %vm2090_vm8, 1.0, %v2870_v44 }
0x1e2d   :  { %v2093_v46 = vmul.f32 0.3275911, %v2092_v45  ;;  %v2119_v61 = vsub.f32 0.0, %v2092_v45 }
0x1e2e   :  { %v2086_v47 = vpop.f32.mrf.mxu2 }
0x1e2f   :  { %v2094_v48 = vadd.f32 1.0, %v2093_v46  ;;  %v2120_v0 = vmul.f32 %v2119_v61, %v2092_v45 }
0x1e31   :  { %2651 = vrcp.f32 %v2094_v48  ;;  %v2106_v52 = vand.u32 2147483648, %v2094_v48  ;;  %v2104_v54 = vand.u32 2147483647, %v2094_v48  ;;  %vm2100_vm4 = vweird.f32 %v2094_v48 }
0x1e32   :  { %v2121_v3 = vmul.f32 1.442695, %v2120_v0 }
0x1e33   :  { %v2107_v58 = vor.u32 1.1754944e-38, %v2106_v52  ;;  %vm2105_vm7 = vcmp.eq.f32.partialorder %v2104_v54, 8.507059e+37 }
0x1e34   :  { %2653 = vpow2.f32 %v2121_v3 }
0x1e37   :  { %v2652_v33 = vpop.eup %2651 }
0x1e38   :  { %v2096_v49 = vmul.f32 %v2652_v33, %v2094_v48  ;;  %vm2101_vm3 = vweird.f32 %v2652_v33 }
0x1e39   :  { %vm2102_vm5 = vmor %vm2100_vm4, %vm2101_vm3 }
0x1e3a   :  { %v2097_v51 = vsub.f32 1.0, %v2096_v49  ;;  %v2654_v10 = vpop.eup %2653 }
0x1e3c   :  { %v2098_v53 = vmul.f32 %v2652_v33, %v2097_v51 }
0x1e3e   :  { %v2099_v56 = vadd.f32 %v2652_v33, %v2098_v53 }
0x1e40   :  { %v2103_v59 = vsel %vm2102_vm5, %v2652_v33, %v2099_v56 }
0x1e41   :  { %v2108_v60 = vsel %vm2105_vm7, %v2107_v58, %v2103_v59 }
0x1e42   :  { %v2110_v62 = vmul.f32 1.0614054, %v2108_v60 }
0x1e44   :  { %v2111_v63 = vadd.f32 -1.4531521, %v2110_v62 }
0x1e46   :  { %v2112_v1 = vmul.f32 %v2111_v63, %v2108_v60 }
0x1e48   :  { %v2113_v2 = vadd.f32 1.4214138, %v2112_v1 }
0x1e4a   :  { %v2114_v4 = vmul.f32 %v2113_v2, %v2108_v60 }
0x1e4c   :  { %v2115_v5 = vadd.f32 -0.28449672, %v2114_v4 }
0x1e4e   :  { %v2116_v6 = vmul.f32 %v2115_v5, %v2108_v60 }
0x1e50   :  { %v2117_v7 = vadd.f32 0.2548296, %v2116_v6 }
0x1e52   :  { %v2118_v9 = vmul.f32 %v2117_v7, %v2108_v60 }
0x1e54   :  { %v2123_v11 = vmul.f32 %v2654_v10, %v2118_v9 }
0x1e56   :  { %v2124_v12 = vsub.f32 1.0, %v2123_v11 }
0x1e58   :  { %v2125_v14 = vmul.f32 %v2124_v12, %v2091_v13 }
0x1e5a   :  { %v2126_v16 = vadd.f32 1.0, %v2125_v14 }
0x1e5c   :  { %v2127_v17 = vmul.f32 %v2126_v16, %v2088_v15 }
0x1e5e   :  { %v2128_v19 = vpack.c.bf16 %v2127_v17, %v2127_v17 }
0x1e60   :  { %2448 = vmatmul.msk.bf16.vlgmr.msra.gmra.mxu3 %vm181_vm0, %v2128_v19 }
0x1ee3   :  { %v2161_v22 = vpop.f32.mrf.mxu3 }
0x1ee4   :  { %v2162_v23 = vadd.f32 %v2552_v20, %v2161_v22 }
0x1ee6   :  { %v2165_v25 = vmul.f32 0.2, %v2162_v23 }
0x1ee8   :  { %2655 = vtanh.f32 %v2165_v25 }
0x1eeb   :  { %v2163_v26 = vpop.f32.mrf.mxu3 }
0x1eee   :  { %v2656_v28 = vpop.eup %2655 }
0x1eef   :  { %v2167_v8 = vmul.f32 5.0, %v2656_v28 }
0x1ef1   :  { %v2168_v30 = vmul.f32 1.442695, %v2167_v8 }
0x1ef3   :  { %2657 = vpow2.f32 %v2168_v30 }
0x1ef9   :  { %v2658_v44 = vpop.eup %2657 }
0x1efa   :  { %2171 = vst.msk [vmem:[#allocation14] sm:$0x3] %vm2170_vm9, %v2658_v44 }
0x1efb   :  { %2182 = dma.vmem_to_hbm [thread:$0]  %s2178_s8, 32, %s2180_s23, [#allocation4]  }
0x1efc   :  { %2859 = dma.done.wait [#allocation4], 32  }
0x1efd   :  { %2860 = vsyncadd [#allocation4], 4294967264 }
0x1efe   :  { %2187 = vsyncpa [#allocation3], 1 }
0x1eff   :  { %2188 = vsyncpa [#allocation6], 1 }
0x1f00   :  { %2189 = vsyncpa [#allocation9], 1 }
0x1f01   :  { %2190 = vsyncpa [#allocation12], 1 }
0x1f02   :  { %2191 = vsyncpa [#allocation4], 1 }

</bundles_post_ra>
